<compile_context>
chip_gen: v7x
topology: tpu7x:2x2x1
jax: 0.10.0
libtpu: 0.0.40
codegen_flags: <defaults>
</compile_context>

<pallas_src>
import jax
import jax.numpy as jnp
from jax.experimental import pallas as pl
from jax.experimental.pallas import tpu as pltpu


# ----------------------------------------------------------------------------
# Fused Pallas kernel: whole forward pass for one image per grid step.
# ----------------------------------------------------------------------------
def _mnist_kernel(x1_ref, w1_ref, b1_ref, w2_ref, b2_ref,
                  wf1_ref, bf1_ref, wf2_ref, bf2_ref, o_ref, a1_scr):
    # ---- conv1 as one MXU matmul on pre-built patches: [768,25] @ [25,10] ----
    patches = x1_ref[0]                                            # [768, 25]
    c1 = jnp.dot(patches, w1_ref[...],
                 preferred_element_type=jnp.float32) + b1_ref[...]  # [768, 10]

    # ---- 2x2 max-pool + ReLU.  Rows are ordered (dy, dx, py, px16), so the
    # pool is a max over four contiguous, 8-aligned row blocks. ----
    p1 = jnp.maximum(jnp.maximum(c1[0:192], c1[192:384]),
                     jnp.maximum(c1[384:576], c1[576:768]))         # [192, 10]
    a1 = jnp.maximum(p1, 0.0)
    # (py, px<=15, cin); px >= 12 are padding columns never read by conv2.
    a1_scr[...] = a1.reshape(12, 16, 10)

    # ---- conv2: 25 per-offset MXU matmuls accumulated in f32 (in-kernel
    # "im2col" is just static slices of the VMEM-resident activation). ----
    acc2 = jnp.zeros((64, 20), dtype=jnp.float32)                   # rows (oy, ox)
    for k in range(25):
        di, dj = k // 5, k % 5                                      # (kh, kw)
        blk = a1_scr[di:di + 8, dj:dj + 8, :]                       # [8, 8, 10]
        acc2 = acc2 + jnp.dot(blk.reshape(64, 10), w2_ref[k],
                              preferred_element_type=jnp.float32)
    acc2 = acc2 + b2_ref[...]                                       # [64, 20]

    # ---- 2x2 max-pool + ReLU + fc1 (NCHW flatten folded into wf1 layout) ----
    y2 = acc2.reshape(4, 2, 8, 20)                                  # (py2, dy, ox, c)
    t1 = jnp.maximum(y2[:, 0], y2[:, 1])                            # [4, 8, 20]
    acc3 = bf1_ref[...]                                             # [1, 50]
    for px2 in range(4):
        piece = jnp.max(t1[:, 2 * px2:2 * px2 + 2, :], axis=1)      # [4(py2), 20]
        piece = jnp.maximum(piece, 0.0)                             # ReLU(layer2)
        for py2 in range(4):
            acc3 = acc3 + jnp.dot(piece[py2:py2 + 1, :],
                                  wf1_ref[px2 * 4 + py2],
                                  preferred_element_type=jnp.float32)
    h = jnp.maximum(acc3, 0.0)                                      # [1, 50]

    # ---- fc2 + log_softmax (fused) ----
    logits = jnp.dot(h, wf2_ref[...],
                     preferred_element_type=jnp.float32) + bf2_ref[...]  # [1, 10]
    m = jnp.max(logits, axis=-1, keepdims=True)
    s = logits - m
    lse = jnp.log(jnp.sum(jnp.exp(s), axis=-1, keepdims=True))
    o_ref[0] = (s - lse).astype(o_ref.dtype)


# ----------------------------------------------------------------------------
# Host-side (one-time) parameter layout conversion from PyTorch layouts.
# ----------------------------------------------------------------------------
def prepare_params(tp):
    """PyTorch-layout weights -> fused-kernel layouts (done once at load time)."""
    # conv1.weight [10,1,5,5] -> [25 (kh*5+kw), 10]
    w1 = jnp.transpose(tp["conv1_w"][:, 0], (1, 2, 0)).reshape(25, 10)
    # conv2.weight [20,10,5,5] -> [25 (kh*5+kw), 10 (cin), 20 (cout)]
    w2 = jnp.transpose(tp["conv2_w"], (2, 3, 1, 0)).reshape(25, 10, 20)
    # fc1.weight [50,320]; PyTorch flat index = c*16 + py2*4 + px2 (NCHW view).
    # Kernel consumes per-position blocks indexed p = px2*4 + py2, rows = c.
    wf1 = tp["fc1_w"].T.reshape(20, 4, 4, 50)            # [c, py2, px2, n]
    wf1 = jnp.transpose(wf1, (2, 1, 0, 3)).reshape(16, 20, 50)
    return {
        "w1": w1, "b1": tp["conv1_b"].reshape(1, 10),
        "w2": w2, "b2": tp["conv2_b"].reshape(1, 20),
        "wf1": wf1, "bf1": tp["fc1_b"].reshape(1, 50),
        "wf2": tp["fc2_w"].T, "bf2": tp["fc2_b"].reshape(1, 10),
    }


def _build_conv1_patches(x_nchw):
    """5x5 input patches, rows ordered (pool_dy, pool_dx, py, px padded to 16)."""
    x = x_nchw[:, 0]                                     # [B, 28, 28] (Cin = 1)
    B = x.shape[0]
    cols = [x[:, i:i + 24, j:j + 24] for i in range(5) for j in range(5)]
    p = jnp.stack(cols, axis=-1)                         # [B, 24, 24, 25]
    p = p.reshape(B, 12, 2, 12, 2, 25)                   # oy=(py,dy), ox=(px,dx)
    p = jnp.transpose(p, (0, 2, 4, 1, 3, 5))             # [B, dy, dx, py, px, 25]
    p = jnp.pad(p, ((0, 0),) * 4 + ((0, 4), (0, 0)))     # pad px: 12 -> 16
    return p.reshape(B, 768, 25)


# ----------------------------------------------------------------------------
# Forward pass: one fused pallas_call, grid over the batch ("parallel").
# ----------------------------------------------------------------------------
@jax.jit
def mnist_comparator_forward(x_nchw, kp):
    assert x_nchw.shape[1:] == (1, 28, 28), x_nchw.shape
    B = x_nchw.shape[0]
    patches = _build_conv1_patches(x_nchw)

    full2 = lambda i: (0, 0)
    full3 = lambda i: (0, 0, 0)
    out = pl.pallas_call(
        _mnist_kernel,
        out_shape=jax.ShapeDtypeStruct((B, 1, 10), jnp.float32),
        grid=(B,),
        in_specs=[
            pl.BlockSpec((1, 768, 25), lambda i: (i, 0, 0)),   # patches (per image)
            pl.BlockSpec((25, 10), full2),                      # w1
            pl.BlockSpec((1, 10), full2),                       # b1
            pl.BlockSpec((25, 10, 20), full3),                  # w2 (per offset)
            pl.BlockSpec((1, 20), full2),                       # b2
            pl.BlockSpec((16, 20, 50), full3),                  # fc1 (per position)
            pl.BlockSpec((1, 50), full2),                       # fc1 bias
            pl.BlockSpec((50, 10), full2),                      # fc2
            pl.BlockSpec((1, 10), full2),                       # fc2 bias
        ],
        out_specs=pl.BlockSpec((1, 1, 10), lambda i: (i, 0, 0)),
        scratch_shapes=[pltpu.VMEM((12, 16, 10), jnp.float32)],
        compiler_params=pltpu.CompilerParams(
            dimension_semantics=("parallel",)),
    )(patches, kp["w1"], kp["b1"], kp["w2"], kp["b2"],
      kp["wf1"], kp["bf1"], kp["wf2"], kp["bf2"])
    return out.reshape(B, 10)


# ----------------------------------------------------------------------------
# Pure-JAX reference of the PyTorch module (for correctness checking only).
# ----------------------------------------------------------------------------
def _reference_forward(x, tp):
    hi = jax.lax.Precision.HIGHEST
    dn = ("NCHW", "OIHW", "NCHW")
    y = jax.lax.conv_general_dilated(x, tp["conv1_w"], (1, 1), "VALID",
                                     dimension_numbers=dn, precision=hi)
    y = y + tp["conv1_b"][None, :, None, None]
    B, C, H, W = y.shape
    y = jnp.maximum(y.reshape(B, C, H // 2, 2, W // 2, 2).max(axis=(3, 5)), 0.0)
    y = jax.lax.conv_general_dilated(y, tp["conv2_w"], (1, 1), "VALID",
                                     dimension_numbers=dn, precision=hi)
    y = y + tp["conv2_b"][None, :, None, None]
    B, C, H, W = y.shape
    y = jnp.maximum(y.reshape(B, C, H // 2, 2, W // 2, 2).max(axis=(3, 5)), 0.0)
    y = y.reshape(B, 320)
    y = jnp.maximum(jnp.dot(y, tp["fc1_w"].T, precision=hi) + tp["fc1_b"], 0.0)
    y = jnp.dot(y, tp["fc2_w"].T, precision=hi) + tp["fc2_b"]
    return jax.nn.log_softmax(y, axis=1)


# ----------------------------------------------------------------------------
if __name__ == "__main__":
    key = jax.random.PRNGKey(0)
    ks = jax.random.split(key, 9)

    # MNIST-shaped input (28x28 is required for the 320-dim flatten), batch=2.
    x = jax.random.normal(ks[0], (2, 1, 28, 28), dtype=jnp.float32)

    # Synthetic parameters in the *PyTorch* layouts of the original module.
    torch_params = {
        "conv1_w": 0.10 * jax.random.normal(ks[1], (10, 1, 5, 5), jnp.float32),
        "conv1_b": 0.10 * jax.random.normal(ks[2], (10,), jnp.float32),
        "conv2_w": 0.05 * jax.random.normal(ks[3], (20, 10, 5, 5), jnp.float32),
        "conv2_b": 0.05 * jax.random.normal(ks[4], (20,), jnp.float32),
        "fc1_w": 0.05 * jax.random.normal(ks[5], (50, 320), jnp.float32),
        "fc1_b": 0.05 * jax.random.normal(ks[6], (50,), jnp.float32),
        "fc2_w": 0.10 * jax.random.normal(ks[7], (10, 50), jnp.float32),
        "fc2_b": 0.10 * jax.random.normal(ks[8], (10,), jnp.float32),
    }

    kparams = prepare_params(torch_params)   # one-time layout conversion
    out = mnist_comparator_forward(x, kparams)
    out = jax.block_until_ready(out)

    assert out.shape == (2, 10), out.shape
    assert out.dtype == jnp.float32
    # log_softmax rows must exponentiate-sum to ~1.
    assert bool(jnp.allclose(jnp.sum(jnp.exp(out), axis=1), 1.0, atol=1e-4))
    # Match a pure-JAX reference of the PyTorch forward pass.
    ref = _reference_forward(x, torch_params)
    assert bool(jnp.allclose(out, ref, atol=2e-2, rtol=1e-3)), \
        float(jnp.max(jnp.abs(out - ref)))

    print("KERNEL_OK")
</pallas_src>

<mosaic_0001>
module attributes {stable_mosaic.version = 11 : i64} {
  func.func @_mnist_kernel(%arg0: i32, %arg1: memref<1x768x25xf32, #tpu.memory_space<vmem>>, %arg2: memref<25x10xf32, #tpu.memory_space<vmem>>, %arg3: memref<1x10xf32, #tpu.memory_space<vmem>>, %arg4: memref<25x10x20xf32, #tpu.memory_space<vmem>>, %arg5: memref<1x20xf32, #tpu.memory_space<vmem>>, %arg6: memref<16x20x50xf32, #tpu.memory_space<vmem>>, %arg7: memref<1x50xf32, #tpu.memory_space<vmem>>, %arg8: memref<50x10xf32, #tpu.memory_space<vmem>>, %arg9: memref<1x10xf32, #tpu.memory_space<vmem>>, %arg10: memref<1x1x10xf32, #tpu.memory_space<vmem>>, %arg11: memref<12x16x10xf32, #tpu.memory_space<vmem>>) attributes {dimension_semantics = [#tpu.dimension_semantics<parallel>], iteration_bounds = array<i64: 2>, scalar_prefetch = 0 : i64, scratch_operands = 1 : i64, tpu.core_type = #tpu.core_type<tc>, window_params = [{transform_indices = @transform_0, window_bounds = array<i64: 1, 768, 25>}, {pipeline_mode = #tpu.pipeline_mode<synchronous>, transform_indices = @transform_1, window_bounds = array<i64: 25, 10>}, {pipeline_mode = #tpu.pipeline_mode<synchronous>, transform_indices = @transform_2, window_bounds = array<i64: 1, 10>}, {pipeline_mode = #tpu.pipeline_mode<synchronous>, transform_indices = @transform_3, window_bounds = array<i64: 25, 10, 20>}, {pipeline_mode = #tpu.pipeline_mode<synchronous>, transform_indices = @transform_4, window_bounds = array<i64: 1, 20>}, {pipeline_mode = #tpu.pipeline_mode<synchronous>, transform_indices = @transform_5, window_bounds = array<i64: 16, 20, 50>}, {pipeline_mode = #tpu.pipeline_mode<synchronous>, transform_indices = @transform_6, window_bounds = array<i64: 1, 50>}, {pipeline_mode = #tpu.pipeline_mode<synchronous>, transform_indices = @transform_7, window_bounds = array<i64: 50, 10>}, {pipeline_mode = #tpu.pipeline_mode<synchronous>, transform_indices = @transform_8, window_bounds = array<i64: 1, 10>}, {transform_indices = @transform_9, window_bounds = array<i64: 1, 1, 10>}]} {
    %c0 = arith.constant 0 : index
    %c0_0 = arith.constant 0 : index
    %c0_1 = arith.constant 0 : index
    %0 = vector.load %arg1[%c0, %c0_0, %c0_1] : memref<1x768x25xf32, #tpu.memory_space<vmem>>, vector<1x768x25xf32>
    %1 = vector.shape_cast %0 : vector<1x768x25xf32> to vector<768x25xf32>
    %c0_2 = arith.constant 0 : index
    %c0_3 = arith.constant 0 : index
    %2 = vector.load %arg2[%c0_2, %c0_3] : memref<25x10xf32, #tpu.memory_space<vmem>>, vector<25x10xf32>
    %cst = arith.constant dense<0.000000e+00> : vector<768x10xf32>
    %3 = tpu.matmul %1, %2, %cst {dimension_numbers = #tpu.dot_dimension_numbers<[1], [0], [0], [1], [0, 0, 1, 1], [], []>} : vector<768x25xf32>, vector<25x10xf32>, vector<768x10xf32> -> vector<768x10xf32>
    %c0_4 = arith.constant 0 : index
    %c0_5 = arith.constant 0 : index
    %4 = vector.load %arg3[%c0_4, %c0_5] : memref<1x10xf32, #tpu.memory_space<vmem>>, vector<1x10xf32>
    %5 = vector.broadcast %4 : vector<1x10xf32> to vector<768x10xf32>
    %6 = arith.addf %3, %5 : vector<768x10xf32>
    %7 = vector.extract_strided_slice %6 {offsets = [0, 0], sizes = [192, 10], strides = [1, 1]} : vector<768x10xf32> to vector<192x10xf32>
    %8 = vector.extract_strided_slice %6 {offsets = [192, 0], sizes = [192, 10], strides = [1, 1]} : vector<768x10xf32> to vector<192x10xf32>
    %9 = arith.maximumf %7, %8 : vector<192x10xf32>
    %10 = vector.extract_strided_slice %6 {offsets = [384, 0], sizes = [192, 10], strides = [1, 1]} : vector<768x10xf32> to vector<192x10xf32>
    %11 = vector.extract_strided_slice %6 {offsets = [576, 0], sizes = [192, 10], strides = [1, 1]} : vector<768x10xf32> to vector<192x10xf32>
    %12 = arith.maximumf %10, %11 : vector<192x10xf32>
    %13 = arith.maximumf %9, %12 : vector<192x10xf32>
    %cst_6 = arith.constant 0.000000e+00 : f32
    %14 = vector.broadcast %cst_6 : f32 to vector<192x10xf32>
    %15 = arith.maximumf %13, %14 : vector<192x10xf32>
    %16 = vector.shape_cast %15 : vector<192x10xf32> to vector<12x16x10xf32>
    %c0_7 = arith.constant 0 : index
    %c0_8 = arith.constant 0 : index
    %c0_9 = arith.constant 0 : index
    %17 = vector.load %arg11[%c0_7, %c0_8, %c0_9] : memref<12x16x10xf32, #tpu.memory_space<vmem>>, vector<12x16x10xf32>
    tpu.vector_store %arg11[%c0_7, %c0_8, %c0_9], %16 {strides = array<i32>} : memref<12x16x10xf32, #tpu.memory_space<vmem>>, vector<12x16x10xf32>,
    %cst_10 = arith.constant 0.000000e+00 : f32
    %18 = vector.broadcast %cst_10 : f32 to vector<64x20xf32>
    %c0_11 = arith.constant 0 : index
    %c0_12 = arith.constant 0 : index
    %c0_13 = arith.constant 0 : index
    %19 = vector.load %arg11[%c0_11, %c0_12, %c0_13] : memref<12x16x10xf32, #tpu.memory_space<vmem>>, vector<8x8x10xf32>
    %20 = vector.shape_cast %19 : vector<8x8x10xf32> to vector<64x10xf32>
    %c0_14 = arith.constant 0 : index
    %c0_15 = arith.constant 0 : index
    %c0_16 = arith.constant 0 : index
    %21 = vector.load %arg4[%c0_14, %c0_15, %c0_16] : memref<25x10x20xf32, #tpu.memory_space<vmem>>, vector<1x10x20xf32>
    %22 = vector.shape_cast %21 : vector<1x10x20xf32> to vector<10x20xf32>
    %cst_17 = arith.constant dense<0.000000e+00> : vector<64x20xf32>
    %23 = tpu.matmul %20, %22, %cst_17 {dimension_numbers = #tpu.dot_dimension_numbers<[1], [0], [0], [1], [0, 0, 1, 1], [], []>} : vector<64x10xf32>, vector<10x20xf32>, vector<64x20xf32> -> vector<64x20xf32>
    %24 = arith.addf %18, %23 : vector<64x20xf32>
    %c0_18 = arith.constant 0 : index
    %c1 = arith.constant 1 : index
    %c0_19 = arith.constant 0 : index
    %25 = vector.load %arg11[%c0_18, %c1, %c0_19] : memref<12x16x10xf32, #tpu.memory_space<vmem>>, vector<8x8x10xf32>
    %26 = vector.shape_cast %25 : vector<8x8x10xf32> to vector<64x10xf32>
    %c1_20 = arith.constant 1 : index
    %c0_21 = arith.constant 0 : index
    %c0_22 = arith.constant 0 : index
    %27 = vector.load %arg4[%c1_20, %c0_21, %c0_22] : memref<25x10x20xf32, #tpu.memory_space<vmem>>, vector<1x10x20xf32>
    %28 = vector.shape_cast %27 : vector<1x10x20xf32> to vector<10x20xf32>
    %cst_23 = arith.constant dense<0.000000e+00> : vector<64x20xf32>
    %29 = tpu.matmul %26, %28, %cst_23 {dimension_numbers = #tpu.dot_dimension_numbers<[1], [0], [0], [1], [0, 0, 1, 1], [], []>} : vector<64x10xf32>, vector<10x20xf32>, vector<64x20xf32> -> vector<64x20xf32>
    %30 = arith.addf %24, %29 : vector<64x20xf32>
    %c0_24 = arith.constant 0 : index
    %c2 = arith.constant 2 : index
    %c0_25 = arith.constant 0 : index
    %31 = vector.load %arg11[%c0_24, %c2, %c0_25] : memref<12x16x10xf32, #tpu.memory_space<vmem>>, vector<8x8x10xf32>
    %32 = vector.shape_cast %31 : vector<8x8x10xf32> to vector<64x10xf32>
    %c2_26 = arith.constant 2 : index
    %c0_27 = arith.constant 0 : index
    %c0_28 = arith.constant 0 : index
    %33 = vector.load %arg4[%c2_26, %c0_27, %c0_28] : memref<25x10x20xf32, #tpu.memory_space<vmem>>, vector<1x10x20xf32>
    %34 = vector.shape_cast %33 : vector<1x10x20xf32> to vector<10x20xf32>
    %cst_29 = arith.constant dense<0.000000e+00> : vector<64x20xf32>
    %35 = tpu.matmul %32, %34, %cst_29 {dimension_numbers = #tpu.dot_dimension_numbers<[1], [0], [0], [1], [0, 0, 1, 1], [], []>} : vector<64x10xf32>, vector<10x20xf32>, vector<64x20xf32> -> vector<64x20xf32>
    %36 = arith.addf %30, %35 : vector<64x20xf32>
    %c0_30 = arith.constant 0 : index
    %c3 = arith.constant 3 : index
    %c0_31 = arith.constant 0 : index
    %37 = vector.load %arg11[%c0_30, %c3, %c0_31] : memref<12x16x10xf32, #tpu.memory_space<vmem>>, vector<8x8x10xf32>
    %38 = vector.shape_cast %37 : vector<8x8x10xf32> to vector<64x10xf32>
    %c3_32 = arith.constant 3 : index
    %c0_33 = arith.constant 0 : index
    %c0_34 = arith.constant 0 : index
    %39 = vector.load %arg4[%c3_32, %c0_33, %c0_34] : memref<25x10x20xf32, #tpu.memory_space<vmem>>, vector<1x10x20xf32>
    %40 = vector.shape_cast %39 : vector<1x10x20xf32> to vector<10x20xf32>
    %cst_35 = arith.constant dense<0.000000e+00> : vector<64x20xf32>
    %41 = tpu.matmul %38, %40, %cst_35 {dimension_numbers = #tpu.dot_dimension_numbers<[1], [0], [0], [1], [0, 0, 1, 1], [], []>} : vector<64x10xf32>, vector<10x20xf32>, vector<64x20xf32> -> vector<64x20xf32>
    %42 = arith.addf %36, %41 : vector<64x20xf32>
    %c0_36 = arith.constant 0 : index
    %c4 = arith.constant 4 : index
    %c0_37 = arith.constant 0 : index
    %43 = vector.load %arg11[%c0_36, %c4, %c0_37] : memref<12x16x10xf32, #tpu.memory_space<vmem>>, vector<8x8x10xf32>
    %44 = vector.shape_cast %43 : vector<8x8x10xf32> to vector<64x10xf32>
    %c4_38 = arith.constant 4 : index
    %c0_39 = arith.constant 0 : index
    %c0_40 = arith.constant 0 : index
    %45 = vector.load %arg4[%c4_38, %c0_39, %c0_40] : memref<25x10x20xf32, #tpu.memory_space<vmem>>, vector<1x10x20xf32>
    %46 = vector.shape_cast %45 : vector<1x10x20xf32> to vector<10x20xf32>
    %cst_41 = arith.constant dense<0.000000e+00> : vector<64x20xf32>
    %47 = tpu.matmul %44, %46, %cst_41 {dimension_numbers = #tpu.dot_dimension_numbers<[1], [0], [0], [1], [0, 0, 1, 1], [], []>} : vector<64x10xf32>, vector<10x20xf32>, vector<64x20xf32> -> vector<64x20xf32>
    %48 = arith.addf %42, %47 : vector<64x20xf32>
    %c1_42 = arith.constant 1 : index
    %c0_43 = arith.constant 0 : index
    %c0_44 = arith.constant 0 : index
    %49 = vector.load %arg11[%c1_42, %c0_43, %c0_44] : memref<12x16x10xf32, #tpu.memory_space<vmem>>, vector<8x8x10xf32>
    %50 = vector.shape_cast %49 : vector<8x8x10xf32> to vector<64x10xf32>
    %c5 = arith.constant 5 : index
    %c0_45 = arith.constant 0 : index
    %c0_46 = arith.constant 0 : index
    %51 = vector.load %arg4[%c5, %c0_45, %c0_46] : memref<25x10x20xf32, #tpu.memory_space<vmem>>, vector<1x10x20xf32>
    %52 = vector.shape_cast %51 : vector<1x10x20xf32> to vector<10x20xf32>
    %cst_47 = arith.constant dense<0.000000e+00> : vector<64x20xf32>
    %53 = tpu.matmul %50, %52, %cst_47 {dimension_numbers = #tpu.dot_dimension_numbers<[1], [0], [0], [1], [0, 0, 1, 1], [], []>} : vector<64x10xf32>, vector<10x20xf32>, vector<64x20xf32> -> vector<64x20xf32>
    %54 = arith.addf %48, %53 : vector<64x20xf32>
    %c1_48 = arith.constant 1 : index
    %c1_49 = arith.constant 1 : index
    %c0_50 = arith.constant 0 : index
    %55 = vector.load %arg11[%c1_48, %c1_49, %c0_50] : memref<12x16x10xf32, #tpu.memory_space<vmem>>, vector<8x8x10xf32>
    %56 = vector.shape_cast %55 : vector<8x8x10xf32> to vector<64x10xf32>
    %c6 = arith.constant 6 : index
    %c0_51 = arith.constant 0 : index
    %c0_52 = arith.constant 0 : index
    %57 = vector.load %arg4[%c6, %c0_51, %c0_52] : memref<25x10x20xf32, #tpu.memory_space<vmem>>, vector<1x10x20xf32>
    %58 = vector.shape_cast %57 : vector<1x10x20xf32> to vector<10x20xf32>
    %cst_53 = arith.constant dense<0.000000e+00> : vector<64x20xf32>
    %59 = tpu.matmul %56, %58, %cst_53 {dimension_numbers = #tpu.dot_dimension_numbers<[1], [0], [0], [1], [0, 0, 1, 1], [], []>} : vector<64x10xf32>, vector<10x20xf32>, vector<64x20xf32> -> vector<64x20xf32>
    %60 = arith.addf %54, %59 : vector<64x20xf32>
    %c1_54 = arith.constant 1 : index
    %c2_55 = arith.constant 2 : index
    %c0_56 = arith.constant 0 : index
    %61 = vector.load %arg11[%c1_54, %c2_55, %c0_56] : memref<12x16x10xf32, #tpu.memory_space<vmem>>, vector<8x8x10xf32>
    %62 = vector.shape_cast %61 : vector<8x8x10xf32> to vector<64x10xf32>
    %c7 = arith.constant 7 : index
    %c0_57 = arith.constant 0 : index
    %c0_58 = arith.constant 0 : index
    %63 = vector.load %arg4[%c7, %c0_57, %c0_58] : memref<25x10x20xf32, #tpu.memory_space<vmem>>, vector<1x10x20xf32>
    %64 = vector.shape_cast %63 : vector<1x10x20xf32> to vector<10x20xf32>
    %cst_59 = arith.constant dense<0.000000e+00> : vector<64x20xf32>
    %65 = tpu.matmul %62, %64, %cst_59 {dimension_numbers = #tpu.dot_dimension_numbers<[1], [0], [0], [1], [0, 0, 1, 1], [], []>} : vector<64x10xf32>, vector<10x20xf32>, vector<64x20xf32> -> vector<64x20xf32>
    %66 = arith.addf %60, %65 : vector<64x20xf32>
    %c1_60 = arith.constant 1 : index
    %c3_61 = arith.constant 3 : index
    %c0_62 = arith.constant 0 : index
    %67 = vector.load %arg11[%c1_60, %c3_61, %c0_62] : memref<12x16x10xf32, #tpu.memory_space<vmem>>, vector<8x8x10xf32>
    %68 = vector.shape_cast %67 : vector<8x8x10xf32> to vector<64x10xf32>
    %c8 = arith.constant 8 : index
    %c0_63 = arith.constant 0 : index
    %c0_64 = arith.constant 0 : index
    %69 = vector.load %arg4[%c8, %c0_63, %c0_64] : memref<25x10x20xf32, #tpu.memory_space<vmem>>, vector<1x10x20xf32>
    %70 = vector.shape_cast %69 : vector<1x10x20xf32> to vector<10x20xf32>
    %cst_65 = arith.constant dense<0.000000e+00> : vector<64x20xf32>
    %71 = tpu.matmul %68, %70, %cst_65 {dimension_numbers = #tpu.dot_dimension_numbers<[1], [0], [0], [1], [0, 0, 1, 1], [], []>} : vector<64x10xf32>, vector<10x20xf32>, vector<64x20xf32> -> vector<64x20xf32>
    %72 = arith.addf %66, %71 : vector<64x20xf32>
    %c1_66 = arith.constant 1 : index
    %c4_67 = arith.constant 4 : index
    %c0_68 = arith.constant 0 : index
    %73 = vector.load %arg11[%c1_66, %c4_67, %c0_68] : memref<12x16x10xf32, #tpu.memory_space<vmem>>, vector<8x8x10xf32>
    %74 = vector.shape_cast %73 : vector<8x8x10xf32> to vector<64x10xf32>
    %c9 = arith.constant 9 : index
    %c0_69 = arith.constant 0 : index
    %c0_70 = arith.constant 0 : index
    %75 = vector.load %arg4[%c9, %c0_69, %c0_70] : memref<25x10x20xf32, #tpu.memory_space<vmem>>, vector<1x10x20xf32>
    %76 = vector.shape_cast %75 : vector<1x10x20xf32> to vector<10x20xf32>
    %cst_71 = arith.constant dense<0.000000e+00> : vector<64x20xf32>
    %77 = tpu.matmul %74, %76, %cst_71 {dimension_numbers = #tpu.dot_dimension_numbers<[1], [0], [0], [1], [0, 0, 1, 1], [], []>} : vector<64x10xf32>, vector<10x20xf32>, vector<64x20xf32> -> vector<64x20xf32>
    %78 = arith.addf %72, %77 : vector<64x20xf32>
    %c2_72 = arith.constant 2 : index
    %c0_73 = arith.constant 0 : index
    %c0_74 = arith.constant 0 : index
    %79 = vector.load %arg11[%c2_72, %c0_73, %c0_74] : memref<12x16x10xf32, #tpu.memory_space<vmem>>, vector<8x8x10xf32>
    %80 = vector.shape_cast %79 : vector<8x8x10xf32> to vector<64x10xf32>
    %c10 = arith.constant 10 : index
    %c0_75 = arith.constant 0 : index
    %c0_76 = arith.constant 0 : index
    %81 = vector.load %arg4[%c10, %c0_75, %c0_76] : memref<25x10x20xf32, #tpu.memory_space<vmem>>, vector<1x10x20xf32>
    %82 = vector.shape_cast %81 : vector<1x10x20xf32> to vector<10x20xf32>
    %cst_77 = arith.constant dense<0.000000e+00> : vector<64x20xf32>
    %83 = tpu.matmul %80, %82, %cst_77 {dimension_numbers = #tpu.dot_dimension_numbers<[1], [0], [0], [1], [0, 0, 1, 1], [], []>} : vector<64x10xf32>, vector<10x20xf32>, vector<64x20xf32> -> vector<64x20xf32>
    %84 = arith.addf %78, %83 : vector<64x20xf32>
    %c2_78 = arith.constant 2 : index
    %c1_79 = arith.constant 1 : index
    %c0_80 = arith.constant 0 : index
    %85 = vector.load %arg11[%c2_78, %c1_79, %c0_80] : memref<12x16x10xf32, #tpu.memory_space<vmem>>, vector<8x8x10xf32>
    %86 = vector.shape_cast %85 : vector<8x8x10xf32> to vector<64x10xf32>
    %c11 = arith.constant 11 : index
    %c0_81 = arith.constant 0 : index
    %c0_82 = arith.constant 0 : index
    %87 = vector.load %arg4[%c11, %c0_81, %c0_82] : memref<25x10x20xf32, #tpu.memory_space<vmem>>, vector<1x10x20xf32>
    %88 = vector.shape_cast %87 : vector<1x10x20xf32> to vector<10x20xf32>
    %cst_83 = arith.constant dense<0.000000e+00> : vector<64x20xf32>
    %89 = tpu.matmul %86, %88, %cst_83 {dimension_numbers = #tpu.dot_dimension_numbers<[1], [0], [0], [1], [0, 0, 1, 1], [], []>} : vector<64x10xf32>, vector<10x20xf32>, vector<64x20xf32> -> vector<64x20xf32>
    %90 = arith.addf %84, %89 : vector<64x20xf32>
    %c2_84 = arith.constant 2 : index
    %c2_85 = arith.constant 2 : index
    %c0_86 = arith.constant 0 : index
    %91 = vector.load %arg11[%c2_84, %c2_85, %c0_86] : memref<12x16x10xf32, #tpu.memory_space<vmem>>, vector<8x8x10xf32>
    %92 = vector.shape_cast %91 : vector<8x8x10xf32> to vector<64x10xf32>
    %c12 = arith.constant 12 : index
    %c0_87 = arith.constant 0 : index
    %c0_88 = arith.constant 0 : index
    %93 = vector.load %arg4[%c12, %c0_87, %c0_88] : memref<25x10x20xf32, #tpu.memory_space<vmem>>, vector<1x10x20xf32>
    %94 = vector.shape_cast %93 : vector<1x10x20xf32> to vector<10x20xf32>
    %cst_89 = arith.constant dense<0.000000e+00> : vector<64x20xf32>
    %95 = tpu.matmul %92, %94, %cst_89 {dimension_numbers = #tpu.dot_dimension_numbers<[1], [0], [0], [1], [0, 0, 1, 1], [], []>} : vector<64x10xf32>, vector<10x20xf32>, vector<64x20xf32> -> vector<64x20xf32>
    %96 = arith.addf %90, %95 : vector<64x20xf32>
    %c2_90 = arith.constant 2 : index
    %c3_91 = arith.constant 3 : index
    %c0_92 = arith.constant 0 : index
    %97 = vector.load %arg11[%c2_90, %c3_91, %c0_92] : memref<12x16x10xf32, #tpu.memory_space<vmem>>, vector<8x8x10xf32>
    %98 = vector.shape_cast %97 : vector<8x8x10xf32> to vector<64x10xf32>
    %c13 = arith.constant 13 : index
    %c0_93 = arith.constant 0 : index
    %c0_94 = arith.constant 0 : index
    %99 = vector.load %arg4[%c13, %c0_93, %c0_94] : memref<25x10x20xf32, #tpu.memory_space<vmem>>, vector<1x10x20xf32>
    %100 = vector.shape_cast %99 : vector<1x10x20xf32> to vector<10x20xf32>
    %cst_95 = arith.constant dense<0.000000e+00> : vector<64x20xf32>
    %101 = tpu.matmul %98, %100, %cst_95 {dimension_numbers = #tpu.dot_dimension_numbers<[1], [0], [0], [1], [0, 0, 1, 1], [], []>} : vector<64x10xf32>, vector<10x20xf32>, vector<64x20xf32> -> vector<64x20xf32>
    %102 = arith.addf %96, %101 : vector<64x20xf32>
    %c2_96 = arith.constant 2 : index
    %c4_97 = arith.constant 4 : index
    %c0_98 = arith.constant 0 : index
    %103 = vector.load %arg11[%c2_96, %c4_97, %c0_98] : memref<12x16x10xf32, #tpu.memory_space<vmem>>, vector<8x8x10xf32>
    %104 = vector.shape_cast %103 : vector<8x8x10xf32> to vector<64x10xf32>
    %c14 = arith.constant 14 : index
    %c0_99 = arith.constant 0 : index
    %c0_100 = arith.constant 0 : index
    %105 = vector.load %arg4[%c14, %c0_99, %c0_100] : memref<25x10x20xf32, #tpu.memory_space<vmem>>, vector<1x10x20xf32>
    %106 = vector.shape_cast %105 : vector<1x10x20xf32> to vector<10x20xf32>
    %cst_101 = arith.constant dense<0.000000e+00> : vector<64x20xf32>
    %107 = tpu.matmul %104, %106, %cst_101 {dimension_numbers = #tpu.dot_dimension_numbers<[1], [0], [0], [1], [0, 0, 1, 1], [], []>} : vector<64x10xf32>, vector<10x20xf32>, vector<64x20xf32> -> vector<64x20xf32>
    %108 = arith.addf %102, %107 : vector<64x20xf32>
    %c3_102 = arith.constant 3 : index
    %c0_103 = arith.constant 0 : index
    %c0_104 = arith.constant 0 : index
    %109 = vector.load %arg11[%c3_102, %c0_103, %c0_104] : memref<12x16x10xf32, #tpu.memory_space<vmem>>, vector<8x8x10xf32>
    %110 = vector.shape_cast %109 : vector<8x8x10xf32> to vector<64x10xf32>
    %c15 = arith.constant 15 : index
    %c0_105 = arith.constant 0 : index
    %c0_106 = arith.constant 0 : index
    %111 = vector.load %arg4[%c15, %c0_105, %c0_106] : memref<25x10x20xf32, #tpu.memory_space<vmem>>, vector<1x10x20xf32>
    %112 = vector.shape_cast %111 : vector<1x10x20xf32> to vector<10x20xf32>
    %cst_107 = arith.constant dense<0.000000e+00> : vector<64x20xf32>
    %113 = tpu.matmul %110, %112, %cst_107 {dimension_numbers = #tpu.dot_dimension_numbers<[1], [0], [0], [1], [0, 0, 1, 1], [], []>} : vector<64x10xf32>, vector<10x20xf32>, vector<64x20xf32> -> vector<64x20xf32>
    %114 = arith.addf %108, %113 : vector<64x20xf32>
    %c3_108 = arith.constant 3 : index
    %c1_109 = arith.constant 1 : index
    %c0_110 = arith.constant 0 : index
    %115 = vector.load %arg11[%c3_108, %c1_109, %c0_110] : memref<12x16x10xf32, #tpu.memory_space<vmem>>, vector<8x8x10xf32>
    %116 = vector.shape_cast %115 : vector<8x8x10xf32> to vector<64x10xf32>
    %c16 = arith.constant 16 : index
    %c0_111 = arith.constant 0 : index
    %c0_112 = arith.constant 0 : index
    %117 = vector.load %arg4[%c16, %c0_111, %c0_112] : memref<25x10x20xf32, #tpu.memory_space<vmem>>, vector<1x10x20xf32>
    %118 = vector.shape_cast %117 : vector<1x10x20xf32> to vector<10x20xf32>
    %cst_113 = arith.constant dense<0.000000e+00> : vector<64x20xf32>
    %119 = tpu.matmul %116, %118, %cst_113 {dimension_numbers = #tpu.dot_dimension_numbers<[1], [0], [0], [1], [0, 0, 1, 1], [], []>} : vector<64x10xf32>, vector<10x20xf32>, vector<64x20xf32> -> vector<64x20xf32>
    %120 = arith.addf %114, %119 : vector<64x20xf32>
    %c3_114 = arith.constant 3 : index
    %c2_115 = arith.constant 2 : index
    %c0_116 = arith.constant 0 : index
    %121 = vector.load %arg11[%c3_114, %c2_115, %c0_116] : memref<12x16x10xf32, #tpu.memory_space<vmem>>, vector<8x8x10xf32>
    %122 = vector.shape_cast %121 : vector<8x8x10xf32> to vector<64x10xf32>
    %c17 = arith.constant 17 : index
    %c0_117 = arith.constant 0 : index
    %c0_118 = arith.constant 0 : index
    %123 = vector.load %arg4[%c17, %c0_117, %c0_118] : memref<25x10x20xf32, #tpu.memory_space<vmem>>, vector<1x10x20xf32>
    %124 = vector.shape_cast %123 : vector<1x10x20xf32> to vector<10x20xf32>
    %cst_119 = arith.constant dense<0.000000e+00> : vector<64x20xf32>
    %125 = tpu.matmul %122, %124, %cst_119 {dimension_numbers = #tpu.dot_dimension_numbers<[1], [0], [0], [1], [0, 0, 1, 1], [], []>} : vector<64x10xf32>, vector<10x20xf32>, vector<64x20xf32> -> vector<64x20xf32>
    %126 = arith.addf %120, %125 : vector<64x20xf32>
    %c3_120 = arith.constant 3 : index
    %c3_121 = arith.constant 3 : index
    %c0_122 = arith.constant 0 : index
    %127 = vector.load %arg11[%c3_120, %c3_121, %c0_122] : memref<12x16x10xf32, #tpu.memory_space<vmem>>, vector<8x8x10xf32>
    %128 = vector.shape_cast %127 : vector<8x8x10xf32> to vector<64x10xf32>
    %c18 = arith.constant 18 : index
    %c0_123 = arith.constant 0 : index
    %c0_124 = arith.constant 0 : index
    %129 = vector.load %arg4[%c18, %c0_123, %c0_124] : memref<25x10x20xf32, #tpu.memory_space<vmem>>, vector<1x10x20xf32>
    %130 = vector.shape_cast %129 : vector<1x10x20xf32> to vector<10x20xf32>
    %cst_125 = arith.constant dense<0.000000e+00> : vector<64x20xf32>
    %131 = tpu.matmul %128, %130, %cst_125 {dimension_numbers = #tpu.dot_dimension_numbers<[1], [0], [0], [1], [0, 0, 1, 1], [], []>} : vector<64x10xf32>, vector<10x20xf32>, vector<64x20xf32> -> vector<64x20xf32>
    %132 = arith.addf %126, %131 : vector<64x20xf32>
    %c3_126 = arith.constant 3 : index
    %c4_127 = arith.constant 4 : index
    %c0_128 = arith.constant 0 : index
    %133 = vector.load %arg11[%c3_126, %c4_127, %c0_128] : memref<12x16x10xf32, #tpu.memory_space<vmem>>, vector<8x8x10xf32>
    %134 = vector.shape_cast %133 : vector<8x8x10xf32> to vector<64x10xf32>
    %c19 = arith.constant 19 : index
    %c0_129 = arith.constant 0 : index
    %c0_130 = arith.constant 0 : index
    %135 = vector.load %arg4[%c19, %c0_129, %c0_130] : memref<25x10x20xf32, #tpu.memory_space<vmem>>, vector<1x10x20xf32>
    %136 = vector.shape_cast %135 : vector<1x10x20xf32> to vector<10x20xf32>
    %cst_131 = arith.constant dense<0.000000e+00> : vector<64x20xf32>
    %137 = tpu.matmul %134, %136, %cst_131 {dimension_numbers = #tpu.dot_dimension_numbers<[1], [0], [0], [1], [0, 0, 1, 1], [], []>} : vector<64x10xf32>, vector<10x20xf32>, vector<64x20xf32> -> vector<64x20xf32>
    %138 = arith.addf %132, %137 : vector<64x20xf32>
    %c4_132 = arith.constant 4 : index
    %c0_133 = arith.constant 0 : index
    %c0_134 = arith.constant 0 : index
    %139 = vector.load %arg11[%c4_132, %c0_133, %c0_134] : memref<12x16x10xf32, #tpu.memory_space<vmem>>, vector<8x8x10xf32>
    %140 = vector.shape_cast %139 : vector<8x8x10xf32> to vector<64x10xf32>
    %c20 = arith.constant 20 : index
    %c0_135 = arith.constant 0 : index
    %c0_136 = arith.constant 0 : index
    %141 = vector.load %arg4[%c20, %c0_135, %c0_136] : memref<25x10x20xf32, #tpu.memory_space<vmem>>, vector<1x10x20xf32>
    %142 = vector.shape_cast %141 : vector<1x10x20xf32> to vector<10x20xf32>
    %cst_137 = arith.constant dense<0.000000e+00> : vector<64x20xf32>
    %143 = tpu.matmul %140, %142, %cst_137 {dimension_numbers = #tpu.dot_dimension_numbers<[1], [0], [0], [1], [0, 0, 1, 1], [], []>} : vector<64x10xf32>, vector<10x20xf32>, vector<64x20xf32> -> vector<64x20xf32>
    %144 = arith.addf %138, %143 : vector<64x20xf32>
    %c4_138 = arith.constant 4 : index
    %c1_139 = arith.constant 1 : index
    %c0_140 = arith.constant 0 : index
    %145 = vector.load %arg11[%c4_138, %c1_139, %c0_140] : memref<12x16x10xf32, #tpu.memory_space<vmem>>, vector<8x8x10xf32>
    %146 = vector.shape_cast %145 : vector<8x8x10xf32> to vector<64x10xf32>
    %c21 = arith.constant 21 : index
    %c0_141 = arith.constant 0 : index
    %c0_142 = arith.constant 0 : index
    %147 = vector.load %arg4[%c21, %c0_141, %c0_142] : memref<25x10x20xf32, #tpu.memory_space<vmem>>, vector<1x10x20xf32>
    %148 = vector.shape_cast %147 : vector<1x10x20xf32> to vector<10x20xf32>
    %cst_143 = arith.constant dense<0.000000e+00> : vector<64x20xf32>
    %149 = tpu.matmul %146, %148, %cst_143 {dimension_numbers = #tpu.dot_dimension_numbers<[1], [0], [0], [1], [0, 0, 1, 1], [], []>} : vector<64x10xf32>, vector<10x20xf32>, vector<64x20xf32> -> vector<64x20xf32>
    %150 = arith.addf %144, %149 : vector<64x20xf32>
    %c4_144 = arith.constant 4 : index
    %c2_145 = arith.constant 2 : index
    %c0_146 = arith.constant 0 : index
    %151 = vector.load %arg11[%c4_144, %c2_145, %c0_146] : memref<12x16x10xf32, #tpu.memory_space<vmem>>, vector<8x8x10xf32>
    %152 = vector.shape_cast %151 : vector<8x8x10xf32> to vector<64x10xf32>
    %c22 = arith.constant 22 : index
    %c0_147 = arith.constant 0 : index
    %c0_148 = arith.constant 0 : index
    %153 = vector.load %arg4[%c22, %c0_147, %c0_148] : memref<25x10x20xf32, #tpu.memory_space<vmem>>, vector<1x10x20xf32>
    %154 = vector.shape_cast %153 : vector<1x10x20xf32> to vector<10x20xf32>
    %cst_149 = arith.constant dense<0.000000e+00> : vector<64x20xf32>
    %155 = tpu.matmul %152, %154, %cst_149 {dimension_numbers = #tpu.dot_dimension_numbers<[1], [0], [0], [1], [0, 0, 1, 1], [], []>} : vector<64x10xf32>, vector<10x20xf32>, vector<64x20xf32> -> vector<64x20xf32>
    %156 = arith.addf %150, %155 : vector<64x20xf32>
    %c4_150 = arith.constant 4 : index
    %c3_151 = arith.constant 3 : index
    %c0_152 = arith.constant 0 : index
    %157 = vector.load %arg11[%c4_150, %c3_151, %c0_152] : memref<12x16x10xf32, #tpu.memory_space<vmem>>, vector<8x8x10xf32>
    %158 = vector.shape_cast %157 : vector<8x8x10xf32> to vector<64x10xf32>
    %c23 = arith.constant 23 : index
    %c0_153 = arith.constant 0 : index
    %c0_154 = arith.constant 0 : index
    %159 = vector.load %arg4[%c23, %c0_153, %c0_154] : memref<25x10x20xf32, #tpu.memory_space<vmem>>, vector<1x10x20xf32>
    %160 = vector.shape_cast %159 : vector<1x10x20xf32> to vector<10x20xf32>
    %cst_155 = arith.constant dense<0.000000e+00> : vector<64x20xf32>
    %161 = tpu.matmul %158, %160, %cst_155 {dimension_numbers = #tpu.dot_dimension_numbers<[1], [0], [0], [1], [0, 0, 1, 1], [], []>} : vector<64x10xf32>, vector<10x20xf32>, vector<64x20xf32> -> vector<64x20xf32>
    %162 = arith.addf %156, %161 : vector<64x20xf32>
    %c4_156 = arith.constant 4 : index
    %c4_157 = arith.constant 4 : index
    %c0_158 = arith.constant 0 : index
    %163 = vector.load %arg11[%c4_156, %c4_157, %c0_158] : memref<12x16x10xf32, #tpu.memory_space<vmem>>, vector<8x8x10xf32>
    %164 = vector.shape_cast %163 : vector<8x8x10xf32> to vector<64x10xf32>
    %c24 = arith.constant 24 : index
    %c0_159 = arith.constant 0 : index
    %c0_160 = arith.constant 0 : index
    %165 = vector.load %arg4[%c24, %c0_159, %c0_160] : memref<25x10x20xf32, #tpu.memory_space<vmem>>, vector<1x10x20xf32>
    %166 = vector.shape_cast %165 : vector<1x10x20xf32> to vector<10x20xf32>
    %cst_161 = arith.constant dense<0.000000e+00> : vector<64x20xf32>
    %167 = tpu.matmul %164, %166, %cst_161 {dimension_numbers = #tpu.dot_dimension_numbers<[1], [0], [0], [1], [0, 0, 1, 1], [], []>} : vector<64x10xf32>, vector<10x20xf32>, vector<64x20xf32> -> vector<64x20xf32>
    %168 = arith.addf %162, %167 : vector<64x20xf32>
    %c0_162 = arith.constant 0 : index
    %c0_163 = arith.constant 0 : index
    %169 = vector.load %arg5[%c0_162, %c0_163] : memref<1x20xf32, #tpu.memory_space<vmem>>, vector<1x20xf32>
    %170 = vector.broadcast %169 : vector<1x20xf32> to vector<64x20xf32>
    %171 = arith.addf %168, %170 : vector<64x20xf32>
    %172 = vector.shape_cast %171 : vector<64x20xf32> to vector<4x2x8x20xf32>
    %173 = vector.extract_strided_slice %172 {offsets = [0, 0, 0, 0], sizes = [4, 1, 8, 20], strides = [1, 1, 1, 1]} : vector<4x2x8x20xf32> to vector<4x1x8x20xf32>
    %174 = vector.shape_cast %173 : vector<4x1x8x20xf32> to vector<4x8x20xf32>
    %175 = vector.extract_strided_slice %172 {offsets = [0, 1, 0, 0], sizes = [4, 1, 8, 20], strides = [1, 1, 1, 1]} : vector<4x2x8x20xf32> to vector<4x1x8x20xf32>
    %176 = vector.shape_cast %175 : vector<4x1x8x20xf32> to vector<4x8x20xf32>
    %177 = arith.maximumf %174, %176 : vector<4x8x20xf32>
    %c0_164 = arith.constant 0 : index
    %c0_165 = arith.constant 0 : index
    %178 = vector.load %arg7[%c0_164, %c0_165] : memref<1x50xf32, #tpu.memory_space<vmem>>, vector<1x50xf32>
    %179 = vector.extract_strided_slice %177 {offsets = [0, 0, 0], sizes = [4, 2, 20], strides = [1, 1, 1]} : vector<4x8x20xf32> to vector<4x2x20xf32>
    %cst_166 = arith.constant dense<0xFF800000> : vector<4x20xf32>
    %180 = vector.multi_reduction <maximumf>, %179, %cst_166 [1] : vector<4x2x20xf32> to vector<4x20xf32>
    %cst_167 = arith.constant 0.000000e+00 : f32
    %181 = vector.broadcast %cst_167 : f32 to vector<4x20xf32>
    %182 = arith.maximumf %180, %181 : vector<4x20xf32>
    %183 = vector.extract_strided_slice %182 {offsets = [0, 0], sizes = [1, 20], strides = [1, 1]} : vector<4x20xf32> to vector<1x20xf32>
    %c0_168 = arith.constant 0 : index
    %c0_169 = arith.constant 0 : index
    %c0_170 = arith.constant 0 : index
    %184 = vector.load %arg6[%c0_168, %c0_169, %c0_170] : memref<16x20x50xf32, #tpu.memory_space<vmem>>, vector<1x20x50xf32>
    %185 = vector.shape_cast %184 : vector<1x20x50xf32> to vector<20x50xf32>
    %cst_171 = arith.constant dense<0.000000e+00> : vector<1x50xf32>
    %186 = tpu.matmul %183, %185, %cst_171 {dimension_numbers = #tpu.dot_dimension_numbers<[1], [0], [0], [1], [0, 0, 1, 1], [], []>} : vector<1x20xf32>, vector<20x50xf32>, vector<1x50xf32> -> vector<1x50xf32>
    %187 = arith.addf %178, %186 : vector<1x50xf32>
    %188 = vector.extract_strided_slice %182 {offsets = [1, 0], sizes = [1, 20], strides = [1, 1]} : vector<4x20xf32> to vector<1x20xf32>
    %c1_172 = arith.constant 1 : index
    %c0_173 = arith.constant 0 : index
    %c0_174 = arith.constant 0 : index
    %189 = vector.load %arg6[%c1_172, %c0_173, %c0_174] : memref<16x20x50xf32, #tpu.memory_space<vmem>>, vector<1x20x50xf32>
    %190 = vector.shape_cast %189 : vector<1x20x50xf32> to vector<20x50xf32>
    %cst_175 = arith.constant dense<0.000000e+00> : vector<1x50xf32>
    %191 = tpu.matmul %188, %190, %cst_175 {dimension_numbers = #tpu.dot_dimension_numbers<[1], [0], [0], [1], [0, 0, 1, 1], [], []>} : vector<1x20xf32>, vector<20x50xf32>, vector<1x50xf32> -> vector<1x50xf32>
    %192 = arith.addf %187, %191 : vector<1x50xf32>
    %193 = vector.extract_strided_slice %182 {offsets = [2, 0], sizes = [1, 20], strides = [1, 1]} : vector<4x20xf32> to vector<1x20xf32>
    %c2_176 = arith.constant 2 : index
    %c0_177 = arith.constant 0 : index
    %c0_178 = arith.constant 0 : index
    %194 = vector.load %arg6[%c2_176, %c0_177, %c0_178] : memref<16x20x50xf32, #tpu.memory_space<vmem>>, vector<1x20x50xf32>
    %195 = vector.shape_cast %194 : vector<1x20x50xf32> to vector<20x50xf32>
    %cst_179 = arith.constant dense<0.000000e+00> : vector<1x50xf32>
    %196 = tpu.matmul %193, %195, %cst_179 {dimension_numbers = #tpu.dot_dimension_numbers<[1], [0], [0], [1], [0, 0, 1, 1], [], []>} : vector<1x20xf32>, vector<20x50xf32>, vector<1x50xf32> -> vector<1x50xf32>
    %197 = arith.addf %192, %196 : vector<1x50xf32>
    %198 = vector.extract_strided_slice %182 {offsets = [3, 0], sizes = [1, 20], strides = [1, 1]} : vector<4x20xf32> to vector<1x20xf32>
    %c3_180 = arith.constant 3 : index
    %c0_181 = arith.constant 0 : index
    %c0_182 = arith.constant 0 : index
    %199 = vector.load %arg6[%c3_180, %c0_181, %c0_182] : memref<16x20x50xf32, #tpu.memory_space<vmem>>, vector<1x20x50xf32>
    %200 = vector.shape_cast %199 : vector<1x20x50xf32> to vector<20x50xf32>
    %cst_183 = arith.constant dense<0.000000e+00> : vector<1x50xf32>
    %201 = tpu.matmul %198, %200, %cst_183 {dimension_numbers = #tpu.dot_dimension_numbers<[1], [0], [0], [1], [0, 0, 1, 1], [], []>} : vector<1x20xf32>, vector<20x50xf32>, vector<1x50xf32> -> vector<1x50xf32>
    %202 = arith.addf %197, %201 : vector<1x50xf32>
    %203 = vector.extract_strided_slice %177 {offsets = [0, 2, 0], sizes = [4, 2, 20], strides = [1, 1, 1]} : vector<4x8x20xf32> to vector<4x2x20xf32>
    %cst_184 = arith.constant dense<0xFF800000> : vector<4x20xf32>
    %204 = vector.multi_reduction <maximumf>, %203, %cst_184 [1] : vector<4x2x20xf32> to vector<4x20xf32>
    %cst_185 = arith.constant 0.000000e+00 : f32
    %205 = vector.broadcast %cst_185 : f32 to vector<4x20xf32>
    %206 = arith.maximumf %204, %205 : vector<4x20xf32>
    %207 = vector.extract_strided_slice %206 {offsets = [0, 0], sizes = [1, 20], strides = [1, 1]} : vector<4x20xf32> to vector<1x20xf32>
    %c4_186 = arith.constant 4 : index
    %c0_187 = arith.constant 0 : index
    %c0_188 = arith.constant 0 : index
    %208 = vector.load %arg6[%c4_186, %c0_187, %c0_188] : memref<16x20x50xf32, #tpu.memory_space<vmem>>, vector<1x20x50xf32>
    %209 = vector.shape_cast %208 : vector<1x20x50xf32> to vector<20x50xf32>
    %cst_189 = arith.constant dense<0.000000e+00> : vector<1x50xf32>
    %210 = tpu.matmul %207, %209, %cst_189 {dimension_numbers = #tpu.dot_dimension_numbers<[1], [0], [0], [1], [0, 0, 1, 1], [], []>} : vector<1x20xf32>, vector<20x50xf32>, vector<1x50xf32> -> vector<1x50xf32>
    %211 = arith.addf %202, %210 : vector<1x50xf32>
    %212 = vector.extract_strided_slice %206 {offsets = [1, 0], sizes = [1, 20], strides = [1, 1]} : vector<4x20xf32> to vector<1x20xf32>
    %c5_190 = arith.constant 5 : index
    %c0_191 = arith.constant 0 : index
    %c0_192 = arith.constant 0 : index
    %213 = vector.load %arg6[%c5_190, %c0_191, %c0_192] : memref<16x20x50xf32, #tpu.memory_space<vmem>>, vector<1x20x50xf32>
    %214 = vector.shape_cast %213 : vector<1x20x50xf32> to vector<20x50xf32>
    %cst_193 = arith.constant dense<0.000000e+00> : vector<1x50xf32>
    %215 = tpu.matmul %212, %214, %cst_193 {dimension_numbers = #tpu.dot_dimension_numbers<[1], [0], [0], [1], [0, 0, 1, 1], [], []>} : vector<1x20xf32>, vector<20x50xf32>, vector<1x50xf32> -> vector<1x50xf32>
    %216 = arith.addf %211, %215 : vector<1x50xf32>
    %217 = vector.extract_strided_slice %206 {offsets = [2, 0], sizes = [1, 20], strides = [1, 1]} : vector<4x20xf32> to vector<1x20xf32>
    %c6_194 = arith.constant 6 : index
    %c0_195 = arith.constant 0 : index
    %c0_196 = arith.constant 0 : index
    %218 = vector.load %arg6[%c6_194, %c0_195, %c0_196] : memref<16x20x50xf32, #tpu.memory_space<vmem>>, vector<1x20x50xf32>
    %219 = vector.shape_cast %218 : vector<1x20x50xf32> to vector<20x50xf32>
    %cst_197 = arith.constant dense<0.000000e+00> : vector<1x50xf32>
    %220 = tpu.matmul %217, %219, %cst_197 {dimension_numbers = #tpu.dot_dimension_numbers<[1], [0], [0], [1], [0, 0, 1, 1], [], []>} : vector<1x20xf32>, vector<20x50xf32>, vector<1x50xf32> -> vector<1x50xf32>
    %221 = arith.addf %216, %220 : vector<1x50xf32>
    %222 = vector.extract_strided_slice %206 {offsets = [3, 0], sizes = [1, 20], strides = [1, 1]} : vector<4x20xf32> to vector<1x20xf32>
    %c7_198 = arith.constant 7 : index
    %c0_199 = arith.constant 0 : index
    %c0_200 = arith.constant 0 : index
    %223 = vector.load %arg6[%c7_198, %c0_199, %c0_200] : memref<16x20x50xf32, #tpu.memory_space<vmem>>, vector<1x20x50xf32>
    %224 = vector.shape_cast %223 : vector<1x20x50xf32> to vector<20x50xf32>
    %cst_201 = arith.constant dense<0.000000e+00> : vector<1x50xf32>
    %225 = tpu.matmul %222, %224, %cst_201 {dimension_numbers = #tpu.dot_dimension_numbers<[1], [0], [0], [1], [0, 0, 1, 1], [], []>} : vector<1x20xf32>, vector<20x50xf32>, vector<1x50xf32> -> vector<1x50xf32>
    %226 = arith.addf %221, %225 : vector<1x50xf32>
    %227 = vector.extract_strided_slice %177 {offsets = [0, 4, 0], sizes = [4, 2, 20], strides = [1, 1, 1]} : vector<4x8x20xf32> to vector<4x2x20xf32>
    %cst_202 = arith.constant dense<0xFF800000> : vector<4x20xf32>
    %228 = vector.multi_reduction <maximumf>, %227, %cst_202 [1] : vector<4x2x20xf32> to vector<4x20xf32>
    %cst_203 = arith.constant 0.000000e+00 : f32
    %229 = vector.broadcast %cst_203 : f32 to vector<4x20xf32>
    %230 = arith.maximumf %228, %229 : vector<4x20xf32>
    %231 = vector.extract_strided_slice %230 {offsets = [0, 0], sizes = [1, 20], strides = [1, 1]} : vector<4x20xf32> to vector<1x20xf32>
    %c8_204 = arith.constant 8 : index
    %c0_205 = arith.constant 0 : index
    %c0_206 = arith.constant 0 : index
    %232 = vector.load %arg6[%c8_204, %c0_205, %c0_206] : memref<16x20x50xf32, #tpu.memory_space<vmem>>, vector<1x20x50xf32>
    %233 = vector.shape_cast %232 : vector<1x20x50xf32> to vector<20x50xf32>
    %cst_207 = arith.constant dense<0.000000e+00> : vector<1x50xf32>
    %234 = tpu.matmul %231, %233, %cst_207 {dimension_numbers = #tpu.dot_dimension_numbers<[1], [0], [0], [1], [0, 0, 1, 1], [], []>} : vector<1x20xf32>, vector<20x50xf32>, vector<1x50xf32> -> vector<1x50xf32>
    %235 = arith.addf %226, %234 : vector<1x50xf32>
    %236 = vector.extract_strided_slice %230 {offsets = [1, 0], sizes = [1, 20], strides = [1, 1]} : vector<4x20xf32> to vector<1x20xf32>
    %c9_208 = arith.constant 9 : index
    %c0_209 = arith.constant 0 : index
    %c0_210 = arith.constant 0 : index
    %237 = vector.load %arg6[%c9_208, %c0_209, %c0_210] : memref<16x20x50xf32, #tpu.memory_space<vmem>>, vector<1x20x50xf32>
    %238 = vector.shape_cast %237 : vector<1x20x50xf32> to vector<20x50xf32>
    %cst_211 = arith.constant dense<0.000000e+00> : vector<1x50xf32>
    %239 = tpu.matmul %236, %238, %cst_211 {dimension_numbers = #tpu.dot_dimension_numbers<[1], [0], [0], [1], [0, 0, 1, 1], [], []>} : vector<1x20xf32>, vector<20x50xf32>, vector<1x50xf32> -> vector<1x50xf32>
    %240 = arith.addf %235, %239 : vector<1x50xf32>
    %241 = vector.extract_strided_slice %230 {offsets = [2, 0], sizes = [1, 20], strides = [1, 1]} : vector<4x20xf32> to vector<1x20xf32>
    %c10_212 = arith.constant 10 : index
    %c0_213 = arith.constant 0 : index
    %c0_214 = arith.constant 0 : index
    %242 = vector.load %arg6[%c10_212, %c0_213, %c0_214] : memref<16x20x50xf32, #tpu.memory_space<vmem>>, vector<1x20x50xf32>
    %243 = vector.shape_cast %242 : vector<1x20x50xf32> to vector<20x50xf32>
    %cst_215 = arith.constant dense<0.000000e+00> : vector<1x50xf32>
    %244 = tpu.matmul %241, %243, %cst_215 {dimension_numbers = #tpu.dot_dimension_numbers<[1], [0], [0], [1], [0, 0, 1, 1], [], []>} : vector<1x20xf32>, vector<20x50xf32>, vector<1x50xf32> -> vector<1x50xf32>
    %245 = arith.addf %240, %244 : vector<1x50xf32>
    %246 = vector.extract_strided_slice %230 {offsets = [3, 0], sizes = [1, 20], strides = [1, 1]} : vector<4x20xf32> to vector<1x20xf32>
    %c11_216 = arith.constant 11 : index
    %c0_217 = arith.constant 0 : index
    %c0_218 = arith.constant 0 : index
    %247 = vector.load %arg6[%c11_216, %c0_217, %c0_218] : memref<16x20x50xf32, #tpu.memory_space<vmem>>, vector<1x20x50xf32>
    %248 = vector.shape_cast %247 : vector<1x20x50xf32> to vector<20x50xf32>
    %cst_219 = arith.constant dense<0.000000e+00> : vector<1x50xf32>
    %249 = tpu.matmul %246, %248, %cst_219 {dimension_numbers = #tpu.dot_dimension_numbers<[1], [0], [0], [1], [0, 0, 1, 1], [], []>} : vector<1x20xf32>, vector<20x50xf32>, vector<1x50xf32> -> vector<1x50xf32>
    %250 = arith.addf %245, %249 : vector<1x50xf32>
    %251 = vector.extract_strided_slice %177 {offsets = [0, 6, 0], sizes = [4, 2, 20], strides = [1, 1, 1]} : vector<4x8x20xf32> to vector<4x2x20xf32>
    %cst_220 = arith.constant dense<0xFF800000> : vector<4x20xf32>
    %252 = vector.multi_reduction <maximumf>, %251, %cst_220 [1] : vector<4x2x20xf32> to vector<4x20xf32>
    %cst_221 = arith.constant 0.000000e+00 : f32
    %253 = vector.broadcast %cst_221 : f32 to vector<4x20xf32>
    %254 = arith.maximumf %252, %253 : vector<4x20xf32>
    %255 = vector.extract_strided_slice %254 {offsets = [0, 0], sizes = [1, 20], strides = [1, 1]} : vector<4x20xf32> to vector<1x20xf32>
    %c12_222 = arith.constant 12 : index
    %c0_223 = arith.constant 0 : index
    %c0_224 = arith.constant 0 : index
    %256 = vector.load %arg6[%c12_222, %c0_223, %c0_224] : memref<16x20x50xf32, #tpu.memory_space<vmem>>, vector<1x20x50xf32>
    %257 = vector.shape_cast %256 : vector<1x20x50xf32> to vector<20x50xf32>
    %cst_225 = arith.constant dense<0.000000e+00> : vector<1x50xf32>
    %258 = tpu.matmul %255, %257, %cst_225 {dimension_numbers = #tpu.dot_dimension_numbers<[1], [0], [0], [1], [0, 0, 1, 1], [], []>} : vector<1x20xf32>, vector<20x50xf32>, vector<1x50xf32> -> vector<1x50xf32>
    %259 = arith.addf %250, %258 : vector<1x50xf32>
    %260 = vector.extract_strided_slice %254 {offsets = [1, 0], sizes = [1, 20], strides = [1, 1]} : vector<4x20xf32> to vector<1x20xf32>
    %c13_226 = arith.constant 13 : index
    %c0_227 = arith.constant 0 : index
    %c0_228 = arith.constant 0 : index
    %261 = vector.load %arg6[%c13_226, %c0_227, %c0_228] : memref<16x20x50xf32, #tpu.memory_space<vmem>>, vector<1x20x50xf32>
    %262 = vector.shape_cast %261 : vector<1x20x50xf32> to vector<20x50xf32>
    %cst_229 = arith.constant dense<0.000000e+00> : vector<1x50xf32>
    %263 = tpu.matmul %260, %262, %cst_229 {dimension_numbers = #tpu.dot_dimension_numbers<[1], [0], [0], [1], [0, 0, 1, 1], [], []>} : vector<1x20xf32>, vector<20x50xf32>, vector<1x50xf32> -> vector<1x50xf32>
    %264 = arith.addf %259, %263 : vector<1x50xf32>
    %265 = vector.extract_strided_slice %254 {offsets = [2, 0], sizes = [1, 20], strides = [1, 1]} : vector<4x20xf32> to vector<1x20xf32>
    %c14_230 = arith.constant 14 : index
    %c0_231 = arith.constant 0 : index
    %c0_232 = arith.constant 0 : index
    %266 = vector.load %arg6[%c14_230, %c0_231, %c0_232] : memref<16x20x50xf32, #tpu.memory_space<vmem>>, vector<1x20x50xf32>
    %267 = vector.shape_cast %266 : vector<1x20x50xf32> to vector<20x50xf32>
    %cst_233 = arith.constant dense<0.000000e+00> : vector<1x50xf32>
    %268 = tpu.matmul %265, %267, %cst_233 {dimension_numbers = #tpu.dot_dimension_numbers<[1], [0], [0], [1], [0, 0, 1, 1], [], []>} : vector<1x20xf32>, vector<20x50xf32>, vector<1x50xf32> -> vector<1x50xf32>
    %269 = arith.addf %264, %268 : vector<1x50xf32>
    %270 = vector.extract_strided_slice %254 {offsets = [3, 0], sizes = [1, 20], strides = [1, 1]} : vector<4x20xf32> to vector<1x20xf32>
    %c15_234 = arith.constant 15 : index
    %c0_235 = arith.constant 0 : index
    %c0_236 = arith.constant 0 : index
    %271 = vector.load %arg6[%c15_234, %c0_235, %c0_236] : memref<16x20x50xf32, #tpu.memory_space<vmem>>, vector<1x20x50xf32>
    %272 = vector.shape_cast %271 : vector<1x20x50xf32> to vector<20x50xf32>
    %cst_237 = arith.constant dense<0.000000e+00> : vector<1x50xf32>
    %273 = tpu.matmul %270, %272, %cst_237 {dimension_numbers = #tpu.dot_dimension_numbers<[1], [0], [0], [1], [0, 0, 1, 1], [], []>} : vector<1x20xf32>, vector<20x50xf32>, vector<1x50xf32> -> vector<1x50xf32>
    %274 = arith.addf %269, %273 : vector<1x50xf32>
    %cst_238 = arith.constant 0.000000e+00 : f32
    %275 = vector.broadcast %cst_238 : f32 to vector<1x50xf32>
    %276 = arith.maximumf %274, %275 : vector<1x50xf32>
    %c0_239 = arith.constant 0 : index
    %c0_240 = arith.constant 0 : index
    %277 = vector.load %arg8[%c0_239, %c0_240] : memref<50x10xf32, #tpu.memory_space<vmem>>, vector<50x10xf32>
    %cst_241 = arith.constant dense<0.000000e+00> : vector<1x10xf32>
    %278 = tpu.matmul %276, %277, %cst_241 {dimension_numbers = #tpu.dot_dimension_numbers<[1], [0], [0], [1], [0, 0, 1, 1], [], []>} : vector<1x50xf32>, vector<50x10xf32>, vector<1x10xf32> -> vector<1x10xf32>
    %c0_242 = arith.constant 0 : index
    %c0_243 = arith.constant 0 : index
    %279 = vector.load %arg9[%c0_242, %c0_243] : memref<1x10xf32, #tpu.memory_space<vmem>>, vector<1x10xf32>
    %280 = arith.addf %278, %279 : vector<1x10xf32>
    %cst_244 = arith.constant dense<0xFF800000> : vector<1xf32>
    %281 = vector.multi_reduction <maximumf>, %280, %cst_244 [1] : vector<1x10xf32> to vector<1xf32>
    %282 = vector.shape_cast %281 : vector<1xf32> to vector<1x1xf32>
    %283 = vector.broadcast %282 : vector<1x1xf32> to vector<1x10xf32>
    %284 = arith.subf %280, %283 : vector<1x10xf32>
    %285 = math.exp %284 : vector<1x10xf32>
    %cst_245 = arith.constant dense<0.000000e+00> : vector<1xf32>
    %286 = vector.multi_reduction <add>, %285, %cst_245 [1] : vector<1x10xf32> to vector<1xf32>
    %287 = vector.shape_cast %286 : vector<1xf32> to vector<1x1xf32>
    %288 = math.log %287 : vector<1x1xf32>
    %289 = vector.broadcast %288 : vector<1x1xf32> to vector<1x10xf32>
    %290 = arith.subf %284, %289 : vector<1x10xf32>
    %c0_246 = arith.constant 0 : index
    %c0_247 = arith.constant 0 : index
    %c0_248 = arith.constant 0 : index
    %291 = vector.load %arg10[%c0_246, %c0_247, %c0_248] : memref<1x1x10xf32, #tpu.memory_space<vmem>>, vector<1x1x10xf32>
    %292 = vector.shape_cast %291 : vector<1x1x10xf32> to vector<1x10xf32>
    %293 = vector.shape_cast %290 : vector<1x10xf32> to vector<1x1x10xf32>
    tpu.vector_store %arg10[%c0_246, %c0_247, %c0_248], %293 {strides = array<i32>} : memref<1x1x10xf32, #tpu.memory_space<vmem>>, vector<1x1x10xf32>,
    return
  }
  func.func @transform_0(%arg0: i32) -> (i32, i32, i32) {
    %c0_i32 = arith.constant 0 : i32
    %c0_i32_0 = arith.constant 0 : i32
    %c0_i32_1 = arith.constant 0 : i32
    return %arg0, %c0_i32, %c0_i32_0 : i32, i32, i32
  }
  func.func @transform_1(%arg0: i32) -> (i32, i32) {
    %c0_i32 = arith.constant 0 : i32
    %c0_i32_0 = arith.constant 0 : i32
    %c0_i32_1 = arith.constant 0 : i32
    return %c0_i32, %c0_i32_0 : i32, i32
  }
  func.func @transform_2(%arg0: i32) -> (i32, i32) {
    %c0_i32 = arith.constant 0 : i32
    %c0_i32_0 = arith.constant 0 : i32
    %c0_i32_1 = arith.constant 0 : i32
    return %c0_i32, %c0_i32_0 : i32, i32
  }
  func.func @transform_3(%arg0: i32) -> (i32, i32, i32) {
    %c0_i32 = arith.constant 0 : i32
    %c0_i32_0 = arith.constant 0 : i32
    %c0_i32_1 = arith.constant 0 : i32
    %c0_i32_2 = arith.constant 0 : i32
    return %c0_i32, %c0_i32_0, %c0_i32_1 : i32, i32, i32
  }
  func.func @transform_4(%arg0: i32) -> (i32, i32) {
    %c0_i32 = arith.constant 0 : i32
    %c0_i32_0 = arith.constant 0 : i32
    %c0_i32_1 = arith.constant 0 : i32
    return %c0_i32, %c0_i32_0 : i32, i32
  }
  func.func @transform_5(%arg0: i32) -> (i32, i32, i32) {
    %c0_i32 = arith.constant 0 : i32
    %c0_i32_0 = arith.constant 0 : i32
    %c0_i32_1 = arith.constant 0 : i32
    %c0_i32_2 = arith.constant 0 : i32
    return %c0_i32, %c0_i32_0, %c0_i32_1 : i32, i32, i32
  }
  func.func @transform_6(%arg0: i32) -> (i32, i32) {
    %c0_i32 = arith.constant 0 : i32
    %c0_i32_0 = arith.constant 0 : i32
    %c0_i32_1 = arith.constant 0 : i32
    return %c0_i32, %c0_i32_0 : i32, i32
  }
  func.func @transform_7(%arg0: i32) -> (i32, i32) {
    %c0_i32 = arith.constant 0 : i32
    %c0_i32_0 = arith.constant 0 : i32
    %c0_i32_1 = arith.constant 0 : i32
    return %c0_i32, %c0_i32_0 : i32, i32
  }
  func.func @transform_8(%arg0: i32) -> (i32, i32) {
    %c0_i32 = arith.constant 0 : i32
    %c0_i32_0 = arith.constant 0 : i32
    %c0_i32_1 = arith.constant 0 : i32
    return %c0_i32, %c0_i32_0 : i32, i32
  }
  func.func @transform_9(%arg0: i32) -> (i32, i32, i32) {
    %c0_i32 = arith.constant 0 : i32
    %c0_i32_0 = arith.constant 0 : i32
    %c0_i32_1 = arith.constant 0 : i32
    return %arg0, %c0_i32, %c0_i32_0 : i32, i32, i32
  }
}

</mosaic_0001>

<bundles_post_ra>
// kernel: mnist_comparator_forward.1
= control target key start
LH: loop header
LB: loop body
LE: loop exit
PB: predicated region body
PF: predicated region fallthrough
CT: control target
= control target key end

     0   :  { %14 = vsyncpa [#allocation4], 0  ;;  %s10818_s0 = inlined_call_operand.vmem [shape: f32[2,768,25], index: 0, kind: input, shape index: {}]   ;;  %s10819_s1 = inlined_call_operand.vmem [shape: f32[25,10], index: 1, kind: input, shape index: {}]   ;;  %s10820_s2 = inlined_call_operand.vmem [shape: f32[1,10], index: 2, kind: input, shape index: {}]   ;;  %s10821_s3 = inlined_call_operand.vmem [shape: f32[25,10,20], index: 3, kind: input, shape index: {}]   ;;  %s10822_s4 = inlined_call_operand.vmem [shape: f32[1,20], index: 4, kind: input, shape index: {}]   ;;  %s10823_s5 = inlined_call_operand.vmem [shape: f32[16,20,50], index: 5, kind: input, shape index: {}]   ;;  %s10824_s6 = inlined_call_operand.vmem [shape: f32[1,50], index: 6, kind: input, shape index: {}]   ;;  %s10825_s7 = inlined_call_operand.vmem [shape: f32[50,10], index: 7, kind: input, shape index: {}]   ;;  %s10826_s8 = inlined_call_operand.vmem [shape: f32[1,10], index: 8, kind: input, shape index: {}]   ;;  %s10827_s9 = inlined_call_operand.hbm [shape: f32[2,1,10], index: 9, kind: output, shape index: {}]  }
   0x1   :  { %16 = vsyncpa [#allocation4 + $0x1], 0  ;;  %s8977_s30 = smov 0   ;;  %s8979_s10 = smov 0  }
   0x2   :  { %s8981_s11 = smov 0   ;;  %s8983_s12 = smov 0  }
   0x3 LB: > { %s8998_s13 = sadd.s32 4294967295, %s8920_s12   ;;  %s6776_s14 = sadd.s32 4294967294, %s8920_s12   ;;  %s8920_s12 = sphi %s8983_s12, %s10930_s12   ;;  %s8916_s11 = sphi %s8981_s11, %s10929_s11   ;;  %s8912_s10 = sphi %s8979_s10, %s10928_s10   ;;  %s8908_s30 = sphi %s8977_s30, %s10927_s30  }
   0x4   : > { %s9002_s15 = sadd.s32 1, %s8920_s12   ;;  %s223_s16 = sadd.s32 1, %s8916_s11 }
   0x5   : > { %s220_s17 = ssub.s32 %s8920_s12, %s9002_s15  ;;  %p233_p0 = scmp.ne.s32.totalorder %s8916_s11, %s8912_s10 }
   0x6   : > { %p221_p1 = scmp.eq.s32.totalorder %s220_s17, 0  ;;  %p234_p2 = scmp.eq.s32.totalorder %s8998_s13, 1 }
   0x7   : > { %p239_p3 = scmp.ne.s32.totalorder %s8912_s10, %s8908_s30  ;;  %p240_p4 = scmp.eq.s32.totalorder %s6776_s14, 1 }
   0x8   : > { %s9013_s18 = scalar_select %p221_p1, %s8916_s11, %s223_s16  }
   0x9   : > { %p9015_p5 = por %p234_p2, %p233_p0  ;;  %p9019_p6 = por %p240_p4, %p239_p3 }
   0xa   : > { %p6779_p7 = scmp.ge.s32.totalorder %s8920_s12, 1  ;;  %p290_p8 = scmp.lt.s32.totalorder %s8920_s12, 3 }
   0xc   : > { %p291_p9 = pnand %p6779_p7, %p290_p8 }
   0xe   : > { %294 = sbr.rel (%p291_p9) target bundleno = 1872 (0x750), region = 56 }
  0x15   : > { %v426_v0 = vld [vmem:[%s10819_s1] sm:$0xff]  ;;  %v427_v1 = vld [vmem:[%s10819_s1 + $0x8] sm:$0xff]  ;;  %v428_v2 = vld [vmem:[%s10819_s1 + $0x10] sm:$0xff]  ;;  %vm726_vm0 = vcmask 1040384   ;;  %p325_p10 = scmp.lt.s32.totalorder %s8998_s13, 1  ;;  %vm8922_vm1 = vmmov 1  }
  0x16   : > { %v8370_v3 = vpack.c.bf16 %v427_v1, %v426_v0  ;;  %v429_v4 = vld [vmem:[%s10819_s1 + $0x18] sm:$0x1]  ;;  %vm8375_vm2 = vmpackc.low %vm726_vm0, %vm8922_vm1  ;;  %vm437_vm3 = vcmask 203776   ;;  %vm1441_vm4 = vcmask 1041408   ;;  %vm1371_vm6 = vcmask 80896   ;;  %s323_s24 = sand.u32 1, %s8912_s10  }
  0x17   : > { %v8374_v5 = vpack.c.bf16 %v429_v4, %v428_v2  ;;  %s326_s29 = scalar_select %p325_p10, %s8998_s13, 1  ;;  %vm9257_vm5 = vmpackc.low %vm1441_vm4, %vm8922_vm1  ;;  %vm5219_vm7 = vcmask 1043456   ;;  %vm8925_vm8 = vmmov 0   ;;  %vm5179_vm9 = vcmask 156672  }
  0x18   : > { %8371 = vmatprep.subr.bf16.mxu0 %v8370_v3  ;;  %vm5215_vm10 = vcmask 162816   ;;  %vm5537_vm11 = vcmask 158722   ;;  %vm5894_vm12 = vcmask 160772   ;;  %vm6251_vm13 = vcmask 162822   ;;  %s7232_s25 = sshll.u32 %s8998_s13, 4  ;;  %s324_s26 = scalar_lea.vmem [#allocation3], %s323_s24 }
  0x19   : > { %8373 = vmatpush3.bf16.msra.mxu0 %v8370_v3  ;;  %s8810_s14 = smul.u32 768, %s326_s29  ;;  %vm6617_vm14 = vcmask 408576   ;;  %vm6694_vm15 = vcmask 73728   ;;  %s6721_s27 = sshll.u32 %s324_s26, 4  ;;  %s10777_s27 = int_to_ptr.vmem [resolvable:$true] %s6721_s27 }
  0x1a   : > { %8376 = vmatprep.subr.msk.bf16.mxu0 %vm8375_vm2, %v8374_v5  ;;  %s6709_s16 = scalar_lea.sflag [#allocation4], %s323_s24  ;;  %s8858_s17 = scalar_lea.vmem %s10777_s27, 16 }
  0x1b   : > { %s9043_s21 = scalar_lea.vmem %s10818_s0, %s8810_s14  ;;  %s10775_s14 = scalar_lea.hbm %s10827_s9, %s7232_s25 }
  0x1c   : > { %v330_v6 = vld [vmem:[%s9043_s21] sm:$0xff]  ;;  %v331_v7 = vld [vmem:[%s9043_s21 + $0x8] sm:$0xff]  ;;  %v332_v8 = vld [vmem:[%s9043_s21 + $0x10] sm:$0xff]  ;;  %p8859_p11 = scmp.ne.s32.totalorder %s10777_s27, %s8858_s17  ;;  %s8926_s13 = smov [#allocation3]  }
  0x1d   : > { %8379 = vmatpush3.bf16.msk.msra.mxu0 %vm8375_vm2, %v8374_v5  ;;  %7665 = vmatprep.mubr.msk.f32.mxu0 %vm437_vm3, %v330_v6  ;;  %v333_v9 = vld [vmem:[%s9043_s21 + $0x18] sm:$0xff]  ;;  %v334_v10 = vld [vmem:[%s9043_s21 + $0x20] sm:$0xff]  ;;  %v335_v11 = vld [vmem:[%s9043_s21 + $0x28] sm:$0xff] }
  0x1e   : > { %v336_v12 = vld [vmem:[%s9043_s21 + $0x30] sm:$0xff]  ;;  %v337_v13 = vld [vmem:[%s9043_s21 + $0x38] sm:$0xff]  ;;  %v338_v14 = vld [vmem:[%s9043_s21 + $0x40] sm:$0xff]  ;;  %p8860_p12 = pnand %p8859_p11, %p9015_p5 }
  0x1f   : > { %v339_v15 = vld [vmem:[%s9043_s21 + $0x48] sm:$0xff]  ;;  %v340_v16 = vld [vmem:[%s9043_s21 + $0x50] sm:$0xff]  ;;  %v341_v17 = vld [vmem:[%s9043_s21 + $0x58] sm:$0xff] }
  0x20   : > { %7666 = vmatmul.mubr.msk.f32.vlgmr.msra.gmra.mrb[0].mxu0 %vm437_vm3, %v331_v7  ;;  %v342_v18 = vld [vmem:[%s9043_s21 + $0x60] sm:$0xff]  ;;  %v343_v19 = vld [vmem:[%s9043_s21 + $0x68] sm:$0xff]  ;;  %v344_v20 = vld [vmem:[%s9043_s21 + $0x70] sm:$0xff]  ;;  %p8861_p13 = pneg %p8860_p12 }
  0x21   : > { %7668 = vmatprep.mubr.msk.f32.mxu0 %vm437_vm3, %v332_v8  ;;  %v345_v21 = vld [vmem:[%s9043_s21 + $0x78] sm:$0xff]  ;;  %v346_v22 = vld [vmem:[%s9043_s21 + $0x80] sm:$0xff]  ;;  %v347_v23 = vld [vmem:[%s9043_s21 + $0x88] sm:$0xff] }
  0x22   : > { %v348_v24 = vld [vmem:[%s9043_s21 + $0x90] sm:$0xff]  ;;  %v349_v25 = vld [vmem:[%s9043_s21 + $0x98] sm:$0xff]  ;;  %v350_v26 = vld [vmem:[%s9043_s21 + $0xa0] sm:$0xff] }
  0x23   : > { %v351_v27 = vld [vmem:[%s9043_s21 + $0xa8] sm:$0xff]  ;;  %v352_v28 = vld [vmem:[%s9043_s21 + $0xb0] sm:$0xff]  ;;  %v353_v29 = vld [vmem:[%s9043_s21 + $0xb8] sm:$0xff] }
  0x24   : > { %7669 = vmatmul.mubr.msk.f32.gmra.mrb[2].mxu0 %vm437_vm3, %v333_v9  ;;  %v354_v30 = vld [vmem:[%s9043_s21 + $0xc0] sm:$0xff]  ;;  %v355_v31 = vld [vmem:[%s9043_s21 + $0xc8] sm:$0xff]  ;;  %v356_v32 = vld [vmem:[%s9043_s21 + $0xd0] sm:$0xff] }
  0x25   : > { %7671 = vmatprep.mubr.msk.f32.mxu0 %vm437_vm3, %v334_v10  ;;  %v357_v33 = vld [vmem:[%s9043_s21 + $0xd8] sm:$0xff]  ;;  %v358_v34 = vld [vmem:[%s9043_s21 + $0xe0] sm:$0xff]  ;;  %v359_v35 = vld [vmem:[%s9043_s21 + $0xe8] sm:$0xff] }
  0x26   : > { %v360_v36 = vld [vmem:[%s9043_s21 + $0xf0] sm:$0xff]  ;;  %v361_v37 = vld [vmem:[%s9043_s21 + $0xf8] sm:$0xff]  ;;  %v362_v38 = vld [vmem:[%s9043_s21 + $0x100] sm:$0xff] }
  0x27   : > { %v363_v39 = vld [vmem:[%s9043_s21 + $0x108] sm:$0xff]  ;;  %v364_v40 = vld [vmem:[%s9043_s21 + $0x110] sm:$0xff]  ;;  %v365_v41 = vld [vmem:[%s9043_s21 + $0x118] sm:$0xff] }
  0x28   : > { %7672 = vmatmul.mubr.msk.f32.gmra.mrb[4].mxu0 %vm437_vm3, %v335_v11  ;;  %v366_v42 = vld [vmem:[%s9043_s21 + $0x120] sm:$0xff]  ;;  %v367_v43 = vld [vmem:[%s9043_s21 + $0x128] sm:$0xff]  ;;  %v368_v44 = vld [vmem:[%s9043_s21 + $0x130] sm:$0xff] }
  0x29   : > { %7674 = vmatprep.mubr.msk.f32.mxu0 %vm437_vm3, %v336_v12  ;;  %v369_v45 = vld [vmem:[%s9043_s21 + $0x138] sm:$0xff]  ;;  %v370_v46 = vld [vmem:[%s9043_s21 + $0x140] sm:$0xff]  ;;  %v371_v47 = vld [vmem:[%s9043_s21 + $0x148] sm:$0xff] }
  0x2a   : > { %v372_v48 = vld [vmem:[%s9043_s21 + $0x150] sm:$0xff]  ;;  %v373_v49 = vld [vmem:[%s9043_s21 + $0x158] sm:$0xff]  ;;  %v374_v50 = vld [vmem:[%s9043_s21 + $0x160] sm:$0xff] }
  0x2b   : > { %v375_v51 = vld [vmem:[%s9043_s21 + $0x168] sm:$0xff]  ;;  %v376_v52 = vld [vmem:[%s9043_s21 + $0x170] sm:$0xff]  ;;  %v377_v53 = vld [vmem:[%s9043_s21 + $0x178] sm:$0xff] }
  0x2c   : > { %7675 = vmatmul.mubr.msk.f32.gmra.mrb[6].mxu0 %vm437_vm3, %v337_v13  ;;  %v378_v54 = vld [vmem:[%s9043_s21 + $0x180] sm:$0xff]  ;;  %v379_v55 = vld [vmem:[%s9043_s21 + $0x188] sm:$0xff]  ;;  %v380_v56 = vld [vmem:[%s9043_s21 + $0x190] sm:$0xff] }
  0x2d   : > { %7677 = vmatprep.mubr.msk.f32.mxu0 %vm437_vm3, %v338_v14  ;;  %v381_v57 = vld [vmem:[%s9043_s21 + $0x198] sm:$0xff]  ;;  %v382_v58 = vld [vmem:[%s9043_s21 + $0x1a0] sm:$0xff]  ;;  %v383_v59 = vld [vmem:[%s9043_s21 + $0x1a8] sm:$0xff] }
  0x2e   : > { %v384_v60 = vld [vmem:[%s9043_s21 + $0x1b0] sm:$0xff]  ;;  %v385_v61 = vld [vmem:[%s9043_s21 + $0x1b8] sm:$0xff]  ;;  %v386_v62 = vld [vmem:[%s9043_s21 + $0x1c0] sm:$0xff] }
  0x2f   : > { %v387_v63 = vld [vmem:[%s9043_s21 + $0x1c8] sm:$0xff]  ;;  %v388_v0 = vld [vmem:[%s9043_s21 + $0x1d0] sm:$0xff]  ;;  %v389_v1 = vld [vmem:[%s9043_s21 + $0x1d8] sm:$0xff] }
  0x30   : > { %7678 = vmatmul.mubr.msk.f32.gmra.mrb[8].mxu0 %vm437_vm3, %v339_v15  ;;  %v390_v2 = vld [vmem:[%s9043_s21 + $0x1e0] sm:$0xff]  ;;  %v391_v3 = vld [vmem:[%s9043_s21 + $0x1e8] sm:$0xff]  ;;  %v392_v4 = vld [vmem:[%s9043_s21 + $0x1f0] sm:$0xff] }
  0x31   : > { %7680 = vmatprep.mubr.msk.f32.mxu0 %vm437_vm3, %v340_v16  ;;  %v393_v5 = vld [vmem:[%s9043_s21 + $0x1f8] sm:$0xff]  ;;  %v394_v6 = vld [vmem:[%s9043_s21 + $0x200] sm:$0xff]  ;;  %v395_v7 = vld [vmem:[%s9043_s21 + $0x208] sm:$0xff] }
  0x32   : > { %v396_v8 = vld [vmem:[%s9043_s21 + $0x210] sm:$0xff]  ;;  %v397_v9 = vld [vmem:[%s9043_s21 + $0x218] sm:$0xff]  ;;  %v398_v10 = vld [vmem:[%s9043_s21 + $0x220] sm:$0xff] }
  0x33   : > { %v399_v11 = vld [vmem:[%s9043_s21 + $0x228] sm:$0xff]  ;;  %v400_v12 = vld [vmem:[%s9043_s21 + $0x230] sm:$0xff]  ;;  %v401_v13 = vld [vmem:[%s9043_s21 + $0x238] sm:$0xff] }
  0x34   : > { %7681 = vmatmul.mubr.msk.f32.gmra.mrb[10].mxu0 %vm437_vm3, %v341_v17  ;;  %v402_v14 = vld [vmem:[%s9043_s21 + $0x240] sm:$0xff]  ;;  %v403_v15 = vld [vmem:[%s9043_s21 + $0x248] sm:$0xff]  ;;  %v404_v16 = vld [vmem:[%s9043_s21 + $0x250] sm:$0xff] }
  0x35   : > { %7683 = vmatprep.mubr.msk.f32.mxu0 %vm437_vm3, %v342_v18  ;;  %v405_v17 = vld [vmem:[%s9043_s21 + $0x258] sm:$0xff]  ;;  %v406_v18 = vld [vmem:[%s9043_s21 + $0x260] sm:$0xff] }
  0x38   : > { %7684 = vmatmul.mubr.msk.f32.gmra.mrb[12].mxu0 %vm437_vm3, %v343_v19  ;;  %v407_v19 = vld [vmem:[%s9043_s21 + $0x268] sm:$0xff] }
  0x39   : > { %7686 = vmatprep.mubr.msk.f32.mxu0 %vm437_vm3, %v344_v20  ;;  %v408_v20 = vld [vmem:[%s9043_s21 + $0x270] sm:$0xff] }
  0x3c   : > { %7687 = vmatmul.mubr.msk.f32.gmra.mrb[14].mxu0 %vm437_vm3, %v345_v21  ;;  %v409_v21 = vld [vmem:[%s9043_s21 + $0x278] sm:$0xff] }
  0x3d   : > { %7689 = vmatprep.mubr.msk.f32.mxu0 %vm437_vm3, %v346_v22  ;;  %v410_v22 = vld [vmem:[%s9043_s21 + $0x280] sm:$0xff] }
  0x40   : > { %7690 = vmatmul.mubr.msk.f32.gmra.mrb[16].mxu0 %vm437_vm3, %v347_v23  ;;  %v411_v23 = vld [vmem:[%s9043_s21 + $0x288] sm:$0xff] }
  0x41   : > { %7692 = vmatprep.mubr.msk.f32.mxu0 %vm437_vm3, %v348_v24  ;;  %v412_v24 = vld [vmem:[%s9043_s21 + $0x290] sm:$0xff] }
  0x44   : > { %7693 = vmatmul.mubr.msk.f32.gmra.mrb[18].mxu0 %vm437_vm3, %v349_v25  ;;  %v413_v25 = vld [vmem:[%s9043_s21 + $0x298] sm:$0xff] }
  0x45   : > { %7695 = vmatprep.mubr.msk.f32.mxu0 %vm437_vm3, %v350_v26  ;;  %v414_v26 = vld [vmem:[%s9043_s21 + $0x2a0] sm:$0xff] }
  0x48   : > { %7696 = vmatmul.mubr.msk.f32.gmra.mrb[20].mxu0 %vm437_vm3, %v351_v27  ;;  %v415_v27 = vld [vmem:[%s9043_s21 + $0x2a8] sm:$0xff] }
  0x49   : > { %7698 = vmatprep.mubr.msk.f32.mxu0 %vm437_vm3, %v352_v28  ;;  %v416_v28 = vld [vmem:[%s9043_s21 + $0x2b0] sm:$0xff] }
  0x4c   : > { %7699 = vmatmul.mubr.msk.f32.gmra.mrb[22].mxu0 %vm437_vm3, %v353_v29  ;;  %v417_v29 = vld [vmem:[%s9043_s21 + $0x2b8] sm:$0xff] }
  0x4d   : > { %7701 = vmatprep.mubr.msk.f32.mxu0 %vm437_vm3, %v354_v30  ;;  %v418_v30 = vld [vmem:[%s9043_s21 + $0x2c0] sm:$0xff] }
  0x50   : > { %7702 = vmatmul.mubr.msk.f32.gmra.mrb[24].mxu0 %vm437_vm3, %v355_v31  ;;  %v419_v31 = vld [vmem:[%s9043_s21 + $0x2c8] sm:$0xff] }
  0x51   : > { %7704 = vmatprep.mubr.msk.f32.mxu0 %vm437_vm3, %v356_v32  ;;  %v420_v32 = vld [vmem:[%s9043_s21 + $0x2d0] sm:$0xff] }
  0x54   : > { %7705 = vmatmul.mubr.msk.f32.gmra.mrb[26].mxu0 %vm437_vm3, %v357_v33  ;;  %v421_v33 = vld [vmem:[%s9043_s21 + $0x2d8] sm:$0xff] }
  0x55   : > { %7707 = vmatprep.mubr.msk.f32.mxu0 %vm437_vm3, %v358_v34  ;;  %v422_v34 = vld [vmem:[%s9043_s21 + $0x2e0] sm:$0xff] }
  0x58   : > { %7708 = vmatmul.mubr.msk.f32.gmra.mrb[28].mxu0 %vm437_vm3, %v359_v35  ;;  %v423_v35 = vld [vmem:[%s9043_s21 + $0x2e8] sm:$0xff] }
  0x59   : > { %7710 = vmatprep.mubr.msk.f32.mxu0 %vm437_vm3, %v360_v36  ;;  %v424_v36 = vld [vmem:[%s9043_s21 + $0x2f0] sm:$0xff] }
  0x5c   : > { %7711 = vmatmul.mubr.msk.f32.gmra.mrb[30].mxu0 %vm437_vm3, %v361_v37  ;;  %v425_v37 = vld [vmem:[%s9043_s21 + $0x2f8] sm:$0xff]  ;;  %s8862_s21 = sshll.u32 %s8926_s13, 4  ;;  %s8863_s21 = int_to_ptr.vmem [resolvable:$false] %s8862_s21 }
  0x5d   : > { %7713 = vmatprep.mubr.msk.f32.mxu0 %vm437_vm3, %v362_v38  ;;  %s8864_s22 = scalar_lea.vmem %s8863_s21, 32  ;;  %p8865_p0 = scmp.lt.s32.totalorder %s10777_s27, %s8863_s21 }
  0x5e   : > { %p8866_p1 = scmp.lt.s32.totalorder %s8864_s22, %s8858_s17 }
  0x60   : > { %7714 = vmatmul.mubr.msk.f32.gmra.mrb[32].mxu0 %vm437_vm3, %v363_v39  ;;  %p8867_p2 = por %p8866_p1, %p8865_p0 }
  0x61   : > { %7716 = vmatprep.mubr.msk.f32.mxu0 %vm437_vm3, %v364_v40 }
  0x62   : > { %p8868_p3 = pnand %p8867_p2, %p8861_p13 }
  0x64   : > { %7717 = vmatmul.mubr.msk.f32.gmra.mrb[34].mxu0 %vm437_vm3, %v365_v41 }
  0x65   : > { %7719 = vmatprep.mubr.msk.f32.mxu0 %vm437_vm3, %v366_v42 }
  0x68   : > { %7720 = vmatmul.mubr.msk.f32.gmra.mrb[36].mxu0 %vm437_vm3, %v367_v43 }
  0x69   : > { %7722 = vmatprep.mubr.msk.f32.mxu0 %vm437_vm3, %v368_v44 }
  0x6c   : > { %7723 = vmatmul.mubr.msk.f32.gmra.mrb[38].mxu0 %vm437_vm3, %v369_v45 }
  0x6d   : > { %7725 = vmatprep.mubr.msk.f32.mxu0 %vm437_vm3, %v370_v46 }
  0x70   : > { %7726 = vmatmul.mubr.msk.f32.gmra.mrb[40].mxu0 %vm437_vm3, %v371_v47 }
  0x71   : > { %7728 = vmatprep.mubr.msk.f32.mxu0 %vm437_vm3, %v372_v48 }
  0x74   : > { %7729 = vmatmul.mubr.msk.f32.gmra.mrb[42].mxu0 %vm437_vm3, %v373_v49 }
  0x75   : > { %7731 = vmatprep.mubr.msk.f32.mxu0 %vm437_vm3, %v374_v50 }
  0x78   : > { %7732 = vmatmul.mubr.msk.f32.gmra.mrb[44].mxu0 %vm437_vm3, %v375_v51 }
  0x79   : > { %7734 = vmatprep.mubr.msk.f32.mxu0 %vm437_vm3, %v376_v52 }
  0x7c   : > { %7735 = vmatmul.mubr.msk.f32.gmra.mrb[46].mxu0 %vm437_vm3, %v377_v53 }
  0x7d   : > { %7737 = vmatprep.mubr.msk.f32.mxu0 %vm437_vm3, %v378_v54 }
  0x80   : > { %7738 = vmatmul.mubr.msk.f32.gmra.mrb[48].mxu0 %vm437_vm3, %v379_v55  ;;  %v6879_v55 = vld [vmem:[%s10821_s3 + $0x10] sm:$0xff] }
  0x81   : > { %7740 = vmatprep.mubr.msk.f32.mxu0 %vm437_vm3, %v380_v56  ;;  %v6880_v56 = vld [vmem:[%s10821_s3 + $0x18] sm:$0x3] }
  0x84   : > { %7741 = vmatmul.mubr.msk.f32.gmra.mrb[50].mxu0 %vm437_vm3, %v381_v57  ;;  %v6910_v57 = vld [vmem:[%s10821_s3 + $0x30] sm:$0xff] }
  0x85   : > { %7743 = vmatprep.mubr.msk.f32.mxu0 %vm437_vm3, %v382_v58 }
  0x88   : > { %7744 = vmatmul.mubr.msk.f32.gmra.mrb[52].mxu0 %vm437_vm3, %v383_v59  ;;  %v8380_v59 = vpack.c.bf16 %v6880_v56, %v6879_v55 }
  0x89   : > { %7746 = vmatprep.mubr.msk.f32.mxu0 %vm437_vm3, %v384_v60  ;;  %v6911_v60 = vld [vmem:[%s10821_s3 + $0x38] sm:$0x3] }
  0x8a   : > { %8382 = vmatprep.subr.msk.bf16.mxu0 %vm9257_vm5, %v8380_v59 }
  0x8b   : > { %8385 = vmatpush3.bf16.msk.msra.mxu0 %vm9257_vm5, %v8380_v59 }
  0x8c   : > { %7747 = vmatmul.mubr.msk.f32.gmra.mrb[54].mxu0 %vm437_vm3, %v385_v61 }
  0x8d   : > { %7749 = vmatprep.mubr.msk.f32.mxu0 %vm437_vm3, %v386_v62  ;;  %v8398_v62 = vpack.c.bf16 %v6911_v60, %v6910_v57 }
  0x8f   : > { %8400 = vmatprep.subr.msk.bf16.mxu1 %vm9257_vm5, %v8398_v62 }
  0x90   : > { %7750 = vmatmul.mubr.msk.f32.gmra.mrb[56].mxu0 %vm437_vm3, %v387_v63  ;;  %8403 = vmatpush3.bf16.msk.msra.mxu1 %vm9257_vm5, %v8398_v62 }
  0x91   : > { %7752 = vmatprep.mubr.msk.f32.mxu0 %vm437_vm3, %v388_v0 }
  0x94   : > { %7753 = vmatmul.mubr.msk.f32.gmra.mrb[58].mxu0 %vm437_vm3, %v389_v1 }
  0x95   : > { %7755 = vmatprep.mubr.msk.f32.mxu0 %vm437_vm3, %v390_v2 }
  0x98   : > { %7756 = vmatmul.mubr.msk.f32.gmra.mrb[60].mxu0 %vm437_vm3, %v391_v3 }
  0x99   : > { %7758 = vmatprep.mubr.msk.f32.mxu0 %vm437_vm3, %v392_v4 }
  0x9c   : > { %7759 = vmatmul.mubr.msk.f32.gmra.mrb[62].mxu0 %vm437_vm3, %v393_v5  ;;  %v9300_v5 = vld [vmem:[%s10820_s2] ss:$0 sm:$0xff] }
  0x9d   : > { %7761 = vmatprep.mubr.msk.f32.mxu0 %vm437_vm3, %v394_v6 }
  0xa0   : > { %7762 = vmatmul.mubr.msk.f32.gmra.mrb[64].mxu0 %vm437_vm3, %v395_v7 }
  0xa1   : > { %7764 = vmatprep.mubr.msk.f32.mxu0 %vm437_vm3, %v396_v8 }
  0xa4   : > { %7765 = vmatmul.mubr.msk.f32.gmra.mrb[66].mxu0 %vm437_vm3, %v397_v9 }
  0xa5   : > { %7767 = vmatprep.mubr.msk.f32.mxu0 %vm437_vm3, %v398_v10 }
  0xa8   : > { %7768 = vmatmul.mubr.msk.f32.gmra.mrb[68].mxu0 %vm437_vm3, %v399_v11 }
  0xa9   : > { %7770 = vmatprep.mubr.msk.f32.mxu0 %vm437_vm3, %v400_v12 }
  0xac   : > { %7771 = vmatmul.mubr.msk.f32.gmra.mrb[70].mxu0 %vm437_vm3, %v401_v13 }
  0xad   : > { %7773 = vmatprep.mubr.msk.f32.mxu0 %vm437_vm3, %v402_v14 }
  0xb0   : > { %7774 = vmatmul.mubr.msk.f32.gmra.mrb[72].mxu0 %vm437_vm3, %v403_v15 }
  0xb1   : > { %7776 = vmatprep.mubr.msk.f32.mxu0 %vm437_vm3, %v404_v16 }
  0xb4   : > { %7777 = vmatmul.mubr.msk.f32.gmra.mrb[74].mxu0 %vm437_vm3, %v405_v17 }
  0xb5   : > { %7779 = vmatprep.mubr.msk.f32.mxu0 %vm437_vm3, %v406_v18 }
  0xb8   : > { %7780 = vmatmul.mubr.msk.f32.gmra.mrb[76].mxu0 %vm437_vm3, %v407_v19 }
  0xb9   : > { %7782 = vmatprep.mubr.msk.f32.mxu0 %vm437_vm3, %v408_v20 }
  0xbc   : > { %7783 = vmatmul.mubr.msk.f32.gmra.mrb[78].mxu0 %vm437_vm3, %v409_v21 }
  0xbd   : > { %7785 = vmatprep.mubr.msk.f32.mxu0 %vm437_vm3, %v410_v22 }
  0xc0   : > { %7786 = vmatmul.mubr.msk.f32.gmra.mrb[80].mxu0 %vm437_vm3, %v411_v23 }
  0xc1   : > { %7788 = vmatprep.mubr.msk.f32.mxu0 %vm437_vm3, %v412_v24 }
  0xc4   : > { %7789 = vmatmul.mubr.msk.f32.gmra.mrb[82].mxu0 %vm437_vm3, %v413_v25 }
  0xc5   : > { %7791 = vmatprep.mubr.msk.f32.mxu0 %vm437_vm3, %v414_v26 }
  0xc8   : > { %7792 = vmatmul.mubr.msk.f32.gmra.mrb[84].mxu0 %vm437_vm3, %v415_v27 }
  0xc9   : > { %7794 = vmatprep.mubr.msk.f32.mxu0 %vm437_vm3, %v416_v28  ;;  %v6921_v28 = vld [vmem:[%s10821_s3 + $0x40] sm:$0xff] }
  0xcc   : > { %7795 = vmatmul.mubr.msk.f32.gmra.mrb[86].mxu0 %vm437_vm3, %v417_v29  ;;  %v6922_v29 = vld [vmem:[%s10821_s3 + $0x48] sm:$0x3] }
  0xcd   : > { %7797 = vmatprep.mubr.msk.f32.mxu0 %vm437_vm3, %v418_v30 }
  0xd0   : > { %7798 = vmatmul.mubr.msk.f32.gmra.mrb[88].mxu0 %vm437_vm3, %v419_v31  ;;  %v9354_v31 = vpack.c.bf16 %v6922_v29, %v6921_v28 }
  0xd1   : > { %7800 = vmatprep.mubr.msk.f32.mxu0 %vm437_vm3, %v420_v32  ;;  %v1404_v32 = vld [vmem:[%s10821_s3] sm:$0xff] }
  0xd2   : > { %8406 = vmatprep.subr.msk.bf16.mxu1 %vm9257_vm5, %v9354_v31 }
  0xd4   : > { %7801 = vmatmul.mubr.msk.f32.gmra.mrb[90].mxu0 %vm437_vm3, %v421_v33  ;;  %v1405_v33 = vld [vmem:[%s10821_s3 + $0x8] sm:$0x3] }
  0xd5   : > { %7803 = vmatprep.mubr.msk.f32.mxu0 %vm437_vm3, %v422_v34 }
  0xd8   : > { %7804 = vmatmul.mubr.msk.f32.gmra.mrb[92].mxu0 %vm437_vm3, %v423_v35 }
  0xd9   : > { %7806 = vmatprep.mubr.msk.f32.mxu0 %vm437_vm3, %v424_v36  ;;  %v9364_v36 = vpack.c.bf16 %v1405_v33, %v1404_v32 }
  0xdb   : > { %8388 = vmatprep.subr.msk.bf16.mxu0 %vm9257_vm5, %v9364_v36 }
  0xdc   : > { %7807 = vmatmul.mubr.msk.f32.gmra.mrb[94].mxu0 %vm437_vm3, %v425_v37 }
  0xf3   : > { %v7667_v38 = vpop.f32.mrb[0].mxu0 }
  0xf4   : > { %v796_v39 = vpop.f32.mrb[1].mxu0  ;;  %v9303_v7 = vadd.f32 %v7667_v38, %v9300_v5 }
  0xf5   : > { %v9309_v10 = vadd.f32 %v9300_v5, %v796_v39 }
  0xf7   : > { %v7670_v40 = vpop.f32.mrb[2].mxu0 }
  0xf8   : > { %v806_v41 = vpop.f32.mrb[3].mxu0  ;;  %v9319_v15 = vadd.f32 %v7670_v40, %v9300_v5 }
  0xf9   : > { %v9325_v18 = vadd.f32 %v9300_v5, %v806_v41 }
  0xfb   : > { %v7673_v42 = vpop.f32.mrb[4].mxu0 }
  0xfc   : > { %v816_v43 = vpop.f32.mrb[5].mxu0  ;;  %v9335_v23 = vadd.f32 %v7673_v42, %v9300_v5 }
  0xfd   : > { %v9341_v26 = vadd.f32 %v9300_v5, %v816_v43 }
  0xff   : > { %v7676_v44 = vpop.f32.mrb[6].mxu0 }
 0x100   : > { %v9237_v45 = vpop.f32.mrb[7].mxu0  ;;  %v9367_v37 = vadd.f32 %v7676_v44, %v9300_v5 }
 0x101   : > { %v9377_v40 = vadd.f32 %v9300_v5, %v9237_v45 }
 0x103   : > { %v9239_v46 = vpop.f32.mrb[8].mxu0 }
 0x104   : > { %v9241_v47 = vpop.f32.mrb[9].mxu0  ;;  %v9391_v55 = vadd.f32 %v9239_v46, %v9300_v5 }
 0x105   : > { %v9398_v57 = vadd.f32 %v9300_v5, %v9241_v47 }
 0x107   : > { %v9243_v48 = vpop.f32.mrb[10].mxu0 }
 0x108   : > { %v9245_v49 = vpop.f32.mrb[11].mxu0  ;;  %v9409_v46 = vadd.f32 %v9243_v48, %v9300_v5 }
 0x109   : > { %v9416_v47 = vadd.f32 %v9300_v5, %v9245_v49 }
 0x10b   : > { %v9247_v50 = vpop.f32.mrb[12].mxu0 }
 0x10c   : > { %v9249_v51 = vpop.f32.mrb[13].mxu0  ;;  %v9427_v48 = vadd.f32 %v9247_v50, %v9300_v5 }
 0x10d   : > { %v9434_v49 = vadd.f32 %v9300_v5, %v9249_v51 }
 0x10f   : > { %v9251_v52 = vpop.f32.mrb[14].mxu0 }
 0x110   : > { %v9253_v53 = vpop.f32.mrb[15].mxu0  ;;  %v9445_v50 = vadd.f32 %v9251_v52, %v9300_v5 }
 0x111   : > { %v9452_v51 = vadd.f32 %v9300_v5, %v9253_v53 }
 0x113   : > { %v9270_v58 = vpop.f32.mrb[16].mxu0  ;;  %10852 = vst [vmem:[#allocation7_spill] sm:$0xff] %v9452_v51 }
 0x114   : > { %v9275_v61 = vpop.f32.mrb[17].mxu0  ;;  %v9463_v52 = vadd.f32 %v9270_v58, %v9300_v5 }
 0x115   : > { %v9470_v53 = vadd.f32 %v9300_v5, %v9275_v61 }
 0x116   : > { %10854 = vst [vmem:[#allocation9_spill] sm:$0xff] %v9463_v52 }
 0x117   : > { %v9283_v63 = vpop.f32.mrb[18].mxu0  ;;  %10856 = vst [vmem:[#allocation11_spill] sm:$0xff] %v9470_v53 }
 0x118   : > { %v9287_v0 = vpop.f32.mrb[19].mxu0  ;;  %v9481_v58 = vadd.f32 %v9283_v63, %v9300_v5 }
 0x119   : > { %v9488_v61 = vadd.f32 %v9300_v5, %v9287_v0 }
 0x11a   : > { %10858 = vst [vmem:[#allocation13_spill] sm:$0xff] %v9481_v58 }
 0x11b   : > { %v9289_v1 = vpop.f32.mrb[20].mxu0  ;;  %10860 = vst [vmem:[#allocation15_spill] sm:$0xff] %v9488_v61 }
 0x11c   : > { %v9291_v2 = vpop.f32.mrb[21].mxu0  ;;  %v9499_v63 = vadd.f32 %v9289_v1, %v9300_v5 }
 0x11d   : > { %v9506_v0 = vadd.f32 %v9300_v5, %v9291_v2 }
 0x11e   : > { %10862 = vst [vmem:[#allocation17_spill] sm:$0xff] %v9499_v63 }
 0x11f   : > { %v9293_v3 = vpop.f32.mrb[22].mxu0  ;;  %10864 = vst [vmem:[#allocation19_spill] sm:$0xff] %v9506_v0 }
 0x120   : > { %v9295_v4 = vpop.f32.mrb[23].mxu0  ;;  %v9517_v1 = vadd.f32 %v9293_v3, %v9300_v5 }
 0x121   : > { %v9524_v2 = vadd.f32 %v9300_v5, %v9295_v4 }
 0x122   : > { %10866 = vst [vmem:[#allocation21_spill] sm:$0xff] %v9517_v1 }
 0x123   : > { %v7703_v6 = vpop.f32.mrb[24].mxu0  ;;  %10868 = vst [vmem:[#allocation23_spill] sm:$0xff] %v9524_v2 }
 0x124   : > { %v9306_v8 = vadd.f32 %v7703_v6, %v9300_v5  ;;  %v916_v9 = vpop.f32.mrb[25].mxu0 }
 0x125   : > { %v9312_v11 = vadd.f32 %v9300_v5, %v916_v9 }
 0x127   : > { %v7706_v14 = vpop.f32.mrb[26].mxu0 }
 0x128   : > { %v9322_v16 = vadd.f32 %v7706_v14, %v9300_v5  ;;  %v926_v17 = vpop.f32.mrb[27].mxu0 }
 0x129   : > { %v9328_v19 = vadd.f32 %v9300_v5, %v926_v17 }
 0x12b   : > { %v7709_v22 = vpop.f32.mrb[28].mxu0 }
 0x12c   : > { %v9338_v24 = vadd.f32 %v7709_v22, %v9300_v5  ;;  %v936_v25 = vpop.f32.mrb[29].mxu0 }
 0x12d   : > { %v9344_v27 = vadd.f32 %v9300_v5, %v936_v25 }
 0x12f   : > { %v7712_v35 = vpop.f32.mrb[30].mxu0 }
 0x130   : > { %v9370_v38 = vadd.f32 %v7712_v35, %v9300_v5  ;;  %v946_v39 = vpop.f32.mrb[31].mxu0 }
 0x131   : > { %v9380_v41 = vadd.f32 %v9300_v5, %v946_v39 }
 0x133   : > { %v7715_v44 = vpop.f32.mrb[32].mxu0 }
 0x134   : > { %v9394_v45 = vadd.f32 %v7715_v44, %v9300_v5  ;;  %v956_v56 = vpop.f32.mrb[33].mxu0 }
 0x135   : > { %v9401_v59 = vadd.f32 %v9300_v5, %v956_v56 }
 0x137   : > { %v7718_v6 = vpop.f32.mrb[34].mxu0 }
 0x138   : > { %v9412_v9 = vadd.f32 %v7718_v6, %v9300_v5  ;;  %v966_v14 = vpop.f32.mrb[35].mxu0 }
 0x139   : > { %v9419_v17 = vadd.f32 %v9300_v5, %v966_v14 }
 0x13b   : > { %v7721_v28 = vpop.f32.mrb[36].mxu0 }
 0x13c   : > { %v9430_v29 = vadd.f32 %v7721_v28, %v9300_v5  ;;  %v976_v32 = vpop.f32.mrb[37].mxu0 }
 0x13d   : > { %v9437_v33 = vadd.f32 %v9300_v5, %v976_v32 }
 0x13f   : > { %v7724_v44 = vpop.f32.mrb[38].mxu0 }
 0x140   : > { %v9448_v56 = vadd.f32 %v7724_v44, %v9300_v5  ;;  %v986_v6 = vpop.f32.mrb[39].mxu0 }
 0x141   : > { %v9455_v14 = vadd.f32 %v9300_v5, %v986_v6 }
 0x142   : > { %10851 = vst [vmem:[#allocation6_spill] sm:$0xff] %v9448_v56 }
 0x143   : > { %10853 = vst [vmem:[#allocation8_spill] sm:$0xff] %v9455_v14  ;;  %v7727_v39 = vpop.f32.mrb[40].mxu0 }
 0x144   : > { %v9466_v44 = vadd.f32 %v7727_v39, %v9300_v5  ;;  %v996_v35 = vpop.f32.mrb[41].mxu0 }
 0x145   : > { %v9473_v6 = vadd.f32 %v9300_v5, %v996_v35 }
 0x146   : > { %10855 = vst [vmem:[#allocation10_spill] sm:$0xff] %v9466_v44 }
 0x147   : > { %10857 = vst [vmem:[#allocation12_spill] sm:$0xff] %v9473_v6  ;;  %v7730_v25 = vpop.f32.mrb[42].mxu0 }
 0x148   : > { %v9484_v39 = vadd.f32 %v7730_v25, %v9300_v5  ;;  %v1006_v22 = vpop.f32.mrb[43].mxu0 }
 0x149   : > { %v9491_v35 = vadd.f32 %v9300_v5, %v1006_v22 }
 0x14a   : > { %10859 = vst [vmem:[#allocation14_spill] sm:$0xff] %v9484_v39 }
 0x14b   : > { %10861 = vst [vmem:[#allocation16_spill] sm:$0xff] %v9491_v35  ;;  %v7733_v62 = vpop.f32.mrb[44].mxu0 }
 0x14c   : > { %v9502_v25 = vadd.f32 %v7733_v62, %v9300_v5  ;;  %v1016_v60 = vpop.f32.mrb[45].mxu0 }
 0x14d   : > { %v9509_v22 = vadd.f32 %v9300_v5, %v1016_v60 }
 0x14e   : > { %10863 = vst [vmem:[#allocation18_spill] sm:$0xff] %v9502_v25 }
 0x14f   : > { %10865 = vst [vmem:[#allocation20_spill] sm:$0xff] %v9509_v22  ;;  %v7736_v43 = vpop.f32.mrb[46].mxu0 }
 0x150   : > { %v9520_v62 = vadd.f32 %v7736_v43, %v9300_v5  ;;  %v1026_v42 = vpop.f32.mrb[47].mxu0 }
 0x151   : > { %v9527_v60 = vadd.f32 %v9300_v5, %v1026_v42 }
 0x152   : > { %10867 = vst [vmem:[#allocation22_spill] sm:$0xff] %v9520_v62 }
 0x153   : > { %10869 = vst [vmem:[#allocation24_spill] sm:$0xff] %v9527_v60  ;;  %v7739_v34 = vpop.f32.mrb[48].mxu0 }
 0x154   : > { %v1036_v3 = vpop.f32.mrb[49].mxu0  ;;  %v1042_v53 = vadd.f32 %v7739_v34, %v9300_v5 }
 0x155   : > { %v1037_v14 = vadd.f32 %v9300_v5, %v1036_v3 }
 0x157   : > { %v7742_v30 = vpop.f32.mrb[50].mxu0 }
 0x158   : > { %v1046_v21 = vpop.f32.mrb[51].mxu0 }
 0x159   : > { %v1047_v34 = vadd.f32 %v9300_v5, %v1046_v21 }
 0x15b   : > { %v7745_v43 = vpop.f32.mrb[52].mxu0 }
 0x15c   : > { %v1056_v20 = vpop.f32.mrb[53].mxu0 }
 0x15f   : > { %v7748_v13 = vpop.f32.mrb[54].mxu0 }
 0x160   : > { %v1066_v12 = vpop.f32.mrb[55].mxu0 }
 0x163   : > { %v9533_v22 = vpop.f32.mrb[56].mxu0 }
 0x164   : > { %v9535_v4 = vpop.f32.mrb[57].mxu0 }
 0x167   : > { %v9537_v42 = vpop.f32.mrb[58].mxu0 }
 0x168   : > { %v9539_v0 = vpop.f32.mrb[59].mxu0 }
 0x16b   : > { %v9541_v28 = vpop.f32.mrb[60].mxu0 }
 0x16c   : > { %v9543_v62 = vpop.f32.mrb[61].mxu0 }
 0x16f   : > { %v9545_v32 = vpop.f32.mrb[62].mxu0 }
 0x170   : > { %v9547_v60 = vpop.f32.mrb[63].mxu0 }
 0x173   : > { %v9549_v2 = vpop.f32.mrb[64].mxu0 }
 0x174   : > { %v9551_v1 = vpop.f32.mrb[65].mxu0 }
 0x175   : > { %10870 = vst [vmem:[#allocation25_spill] sm:$0xff] %v9551_v1 }
 0x177   : > { %v9553_v25 = vpop.f32.mrb[66].mxu0 }
 0x178   : > { %10871 = vst [vmem:[#allocation26_spill] sm:$0xff] %v9553_v25  ;;  %v9555_v63 = vpop.f32.mrb[67].mxu0 }
 0x179   : > { %10872 = vst [vmem:[#allocation27_spill] sm:$0xff] %v9555_v63 }
 0x17b   : > { %v9557_v35 = vpop.f32.mrb[68].mxu0 }
 0x17c   : > { %10873 = vst [vmem:[#allocation28_spill] sm:$0xff] %v9557_v35  ;;  %v9559_v61 = vpop.f32.mrb[69].mxu0  ;;  %v1052_v35 = vadd.f32 %v7742_v30, %v9300_v5 }
 0x17d   : > { %10874 = vst [vmem:[#allocation29_spill] sm:$0xff] %v9559_v61 }
 0x17f   : > { %v9561_v39 = vpop.f32.mrb[70].mxu0 }
 0x180   : > { %10875 = vst [vmem:[#allocation30_spill] sm:$0xff] %v9561_v39  ;;  %v9563_v58 = vpop.f32.mrb[71].mxu0  ;;  %v10877_v39 = vmax.f32 %v9303_v7, %v9306_v8  ;;  %v1062_v7 = vadd.f32 %v7745_v43, %v9300_v5  ;;  %v10879_v8 = vmax.f32 %v9319_v15, %v9322_v16  ;;  %v1072_v15 = vadd.f32 %v7748_v13, %v9300_v5 }
 0x181   : > { %10876 = vst [vmem:[#allocation31_spill] sm:$0xff] %v9563_v58  ;;  %v10881_v16 = vmax.f32 %v9335_v23, %v9338_v24  ;;  %v6932_v23 = vld [vmem:[%s10821_s3 + $0x50] sm:$0xff]  ;;  %v6899_v24 = vld [vmem:[%s10821_s3 + $0x20] sm:$0xff] }
 0x183   : > { %v7775_v6 = vpop.f32.mrb[72].mxu0 }
 0x184   : > { %v1162_v44 = vadd.f32 %v7775_v6, %v9300_v5  ;;  %v1156_v52 = vpop.f32.mrb[73].mxu0  ;;  %v10878_v6 = vmax.f32 %v9309_v10, %v9312_v11  ;;  %v1057_v10 = vadd.f32 %v9300_v5, %v1056_v20  ;;  %v10880_v11 = vmax.f32 %v9325_v18, %v9328_v19 }
 0x185   : > { %v1157_v25 = vadd.f32 %v9300_v5, %v1156_v52  ;;  %v1067_v18 = vadd.f32 %v9300_v5, %v1066_v12  ;;  %v10882_v19 = vmax.f32 %v9341_v26, %v9344_v27  ;;  %v6933_v12 = vld [vmem:[%s10821_s3 + $0x58] sm:$0x3]  ;;  %v1082_v26 = vadd.f32 %v9533_v22, %v9300_v5 }
 0x186   : > { %v1300_v51 = vmax.f32 %v1042_v53, %v1162_v44  ;;  %v10883_v27 = vmax.f32 %v9367_v37, %v9370_v38  ;;  %v10884_v22 = vmax.f32 %v9377_v40, %v9380_v41  ;;  %v10885_v40 = vmax.f32 %v9391_v55, %v9394_v45 }
 0x187   : > { %v1299_v63 = vmax.f32 %v1037_v14, %v1157_v25  ;;  %v7778_v1 = vpop.f32.mrb[74].mxu0 }
 0x188   : > { %v1324_v61 = vmax.f32 %v10877_v39, %v1300_v51  ;;  %v1172_v58 = vadd.f32 %v7778_v1, %v9300_v5  ;;  %v1166_v56 = vpop.f32.mrb[75].mxu0 }
 0x189   : > { %v1323_v3 = vmax.f32 %v10878_v6, %v1299_v63  ;;  %v1167_v52 = vadd.f32 %v9300_v5, %v1166_v56 }
 0x18a   : > { %v1348_v14 = vmax.f32 %v1324_v61, 0.0  ;;  %v1302_v44 = vmax.f32 %v1052_v35, %v1172_v58 }
 0x18b   : > { %v1347_v53 = vmax.f32 %v1323_v3, 0.0  ;;  %v1301_v30 = vmax.f32 %v1047_v34, %v1167_v52  ;;  %v7781_v25 = vpop.f32.mrb[76].mxu0 }
 0x18c   : > { %1373 = vst.msk [vmem:[#allocation2 + $0x8] sm:$0xff] %vm1371_vm6, %v1348_v14  ;;  %v1326_v21 = vmax.f32 %v10879_v8, %v1302_v44  ;;  %v1182_v51 = vadd.f32 %v7781_v25, %v9300_v5  ;;  %v1176_v39 = vpop.f32.mrb[77].mxu0 }
 0x18d   : > { %1372 = vst.msk [vmem:[#allocation2] sm:$0xff] %vm1371_vm6, %v1347_v53  ;;  %v1325_v56 = vmax.f32 %v10880_v11, %v1301_v30  ;;  %v1177_v58 = vadd.f32 %v9300_v5, %v1176_v39  ;;  %v6900_v39 = vld [vmem:[%s10821_s3 + $0x28] sm:$0x3] }
 0x18e   : > { %v1350_v61 = vmax.f32 %v1326_v21, 0.0  ;;  %v1304_v35 = vmax.f32 %v1062_v7, %v1182_v51 }
 0x18f   : > { %v1349_v63 = vmax.f32 %v1325_v56, 0.0  ;;  %v1303_v1 = vmax.f32 %v1057_v10, %v1177_v58  ;;  %v7784_v43 = vpop.f32.mrb[78].mxu0  ;;  %v1077_v10 = vadd.f32 %v9300_v5, %v9535_v4  ;;  %v9633_v4 = vpack.c.bf16 %v6900_v39, %v6899_v24 }
 0x190   : > { %1375 = vst.msk [vmem:[#allocation2 + $0x18] sm:$0xff] %vm1371_vm6, %v1350_v61  ;;  %v1328_v20 = vmax.f32 %v10881_v16, %v1304_v35  ;;  %v1192_v34 = vadd.f32 %v7784_v43, %v9300_v5  ;;  %v1186_v6 = vpop.f32.mrb[79].mxu0 }
 0x191   : > { %1374 = vst.msk [vmem:[#allocation2 + $0x10] sm:$0xff] %vm1371_vm6, %v1349_v63  ;;  %v1327_v3 = vmax.f32 %v10882_v19, %v1303_v1  ;;  %v1187_v52 = vadd.f32 %v9300_v5, %v1186_v6  ;;  %v9631_v63 = vpack.c.bf16 %v6933_v12, %v6932_v23  ;;  %v1092_v1 = vadd.f32 %v9537_v42, %v9300_v5 }
 0x192   : > { %v1352_v13 = vmax.f32 %v1328_v20, 0.0  ;;  %v1306_v14 = vmax.f32 %v1072_v15, %v1192_v34  ;;  %v1087_v34 = vadd.f32 %v9300_v5, %v9539_v0  ;;  %v10886_v42 = vmax.f32 %v9398_v57, %v9401_v59 }
 0x193   : > { %v1351_v44 = vmax.f32 %v1327_v3, 0.0  ;;  %v1305_v53 = vmax.f32 %v1067_v18, %v1187_v52  ;;  %v7787_v30 = vpop.f32.mrb[80].mxu0  ;;  %v1102_v19 = vadd.f32 %v9541_v28, %v9300_v5  ;;  %v10888_v28 = vmax.f32 %v9416_v47, %v9419_v17 }
 0x194   : > { %1377 = vst.msk [vmem:[#allocation2 + $0x28] sm:$0xff] %vm1371_vm6, %v1352_v13  ;;  %v1330_v25 = vmax.f32 %v10883_v27, %v1306_v14  ;;  %v1202_v7 = vadd.f32 %v7787_v30, %v9300_v5  ;;  %v1196_v8 = vpop.f32.mrb[81].mxu0  ;;  %v1406_v21 = vld [vmem:[#allocation2 + $0x1] sm:$0xff]  ;;  %v10889_v47 = vmax.f32 %v9427_v48, %v9430_v29 }
 0x195   : > { %v1833_v51 = vld [vmem:[#allocation2 + $0x3] sm:$0xff]  ;;  %1376 = vst.msk [vmem:[#allocation2 + $0x20] sm:$0xff] %vm1371_vm6, %v1351_v44  ;;  %v1329_v11 = vmax.f32 %v10884_v22, %v1305_v53  ;;  %v1197_v37 = vadd.f32 %v9300_v5, %v1196_v8  ;;  %7813 = vmatprep.mubr.msk.f32.mxu0 %vm1371_vm6, %v1406_v21  ;;  %v1097_v44 = vadd.f32 %v9300_v5, %v9543_v62 }
 0x196   : > { %7861 = vmatprep.mubr.msk.f32.mxu1 %vm1371_vm6, %v1833_v51  ;;  %v1354_v38 = vmax.f32 %v1330_v25, 0.0  ;;  %v1308_v56 = vmax.f32 %v1082_v26, %v1202_v7  ;;  %v1112_v62 = vadd.f32 %v9545_v32, %v9300_v5  ;;  %v1107_v8 = vadd.f32 %v9300_v5, %v9547_v60 }
 0x197   : > { %v1353_v58 = vmax.f32 %v1329_v11, 0.0  ;;  %v1307_v61 = vmax.f32 %v1077_v10, %v1197_v37  ;;  %v7790_v35 = vpop.f32.mrb[82].mxu0  ;;  %v10890_v32 = vmax.f32 %v9434_v49, %v9437_v33  ;;  %v1122_v60 = vadd.f32 %v9549_v2, %v9300_v5  ;;  %v10891_v49 = vld [vmem:[#allocation6_spill] sm:$0xff]  ;;  %v10895_v2 = vld [vmem:[#allocation8_spill] sm:$0xff] }
 0x198   : > { %1379 = vst.msk [vmem:[#allocation2 + $0x38] sm:$0xff] %vm1371_vm6, %v1354_v38  ;;  %v1332_v41 = vmax.f32 %v10885_v40, %v1308_v56  ;;  %v1212_v43 = vadd.f32 %v7790_v35, %v9300_v5  ;;  %v1206_v15 = vpop.f32.mrb[83].mxu0  ;;  %v9642_v16 = vld [vmem:[#allocation2 + $0x11] sm:$0xff]  ;;  %v10892_v33 = vmax.f32 %v9445_v50, %v10891_v49 }
 0x199   : > { %v9644_v20 = vld [vmem:[#allocation2 + $0x13] sm:$0xff]  ;;  %1378 = vst.msk [vmem:[#allocation2 + $0x30] sm:$0xff] %vm1371_vm6, %v1353_v58  ;;  %v1331_v6 = vmax.f32 %v10886_v42, %v1307_v61  ;;  %v1207_v18 = vadd.f32 %v9300_v5, %v1206_v15  ;;  %7814 = vmatmul.mubr.msk.f32.vlgmr.msra.gmra.mrb[96].mxu0 %vm1371_vm6, %v9642_v16 }
 0x19a   : > { %7862 = vmatmul.mubr.msk.f32.vlgmr.msra.gmra.mrb[0].mxu1 %vm1371_vm6, %v9644_v20  ;;  %v1356_v55 = vmax.f32 %v1332_v41, 0.0  ;;  %v1310_v45 = vmax.f32 %v1092_v1, %v1212_v43  ;;  %8391 = vmatpush3.bf16.msk.msra.mxu0 %vm9257_vm5, %v9364_v36  ;;  %v10893_v61 = vld [vmem:[#allocation25_spill] sm:$0xff]  ;;  %v10894_v1 = vld [vmem:[#allocation7_spill] sm:$0xff]  ;;  %v10911_v49 = vld [vmem:[#allocation16_spill] sm:$0xff] }
 0x19b   : > { %8409 = vmatpush3.bf16.msk.msra.mxu1 %vm9257_vm5, %v9354_v31  ;;  %v1355_v57 = vmax.f32 %v1331_v6, 0.0  ;;  %v1309_v59 = vmax.f32 %v1087_v34, %v1207_v18  ;;  %v7793_v0 = vpop.f32.mrb[84].mxu0  ;;  %8394 = vmatprep.subr.msk.bf16.mxu0 %vm9257_vm5, %v9633_v4  ;;  %v10887_v31 = vmax.f32 %v9409_v46, %v9412_v9  ;;  %v1117_v35 = vadd.f32 %v9300_v5, %v10893_v61  ;;  %v10897_v18 = vld [vmem:[#allocation26_spill] sm:$0xff] }
 0x19c   : > { %8412 = vmatprep.subr.msk.bf16.mxu1 %vm9257_vm5, %v9631_v63  ;;  %1381 = vst.msk [vmem:[#allocation2 + $0x48] sm:$0xff] %vm1371_vm6, %v1356_v55  ;;  %v1222_v3 = vadd.f32 %v7793_v0, %v9300_v5  ;;  %v1216_v52 = vpop.f32.mrb[85].mxu0  ;;  %v9676_v13 = vld [vmem:[#allocation2 + $0x21] sm:$0xff]  ;;  %v10896_v40 = vmax.f32 %v10894_v1, %v10895_v2  ;;  %v1132_v55 = vadd.f32 %v10897_v18, %v9300_v5 }
 0x19d   : > { %v1334_v36 = vmax.f32 %v10887_v31, %v1310_v45  ;;  %v9678_v14 = vld [vmem:[#allocation2 + $0x23] sm:$0xff]  ;;  %1380 = vst.msk [vmem:[#allocation2 + $0x40] sm:$0xff] %vm1371_vm6, %v1355_v57  ;;  %v1333_v53 = vmax.f32 %v10888_v28, %v1309_v59  ;;  %v1217_v30 = vadd.f32 %v9300_v5, %v1216_v52  ;;  %7816 = vmatprep.mubr.msk.f32.mxu0 %vm1371_vm6, %v9676_v13  ;;  %v10898_v45 = vld [vmem:[#allocation9_spill] sm:$0xff] }
 0x19e   : > { %7864 = vmatprep.mubr.msk.f32.mxu1 %vm1371_vm6, %v9678_v14  ;;  %v1312_v9 = vmax.f32 %v1102_v19, %v1222_v3  ;;  %v10899_v57 = vld [vmem:[#allocation10_spill] sm:$0xff]  ;;  %v10901_v52 = vld [vmem:[#allocation27_spill] sm:$0xff] }
 0x19f   : > { %v1358_v46 = vmax.f32 %v1334_v36, 0.0  ;;  %v1357_v23 = vmax.f32 %v1333_v53, 0.0  ;;  %v1311_v12 = vmax.f32 %v1097_v44, %v1217_v30  ;;  %v7796_v24 = vpop.f32.mrb[86].mxu0  ;;  %v10900_v59 = vmax.f32 %v10898_v45, %v10899_v57  ;;  %v10902_v28 = vld [vmem:[#allocation11_spill] sm:$0xff]  ;;  %v10903_v53 = vld [vmem:[#allocation12_spill] sm:$0xff]  ;;  %v6943_v45 = vld [vmem:[%s10821_s3 + $0x60] sm:$0xff] }
 0x1a0   : > { %v1336_v17 = vmax.f32 %v10889_v47, %v1312_v9  ;;  %v1232_v26 = vadd.f32 %v7796_v24, %v9300_v5  ;;  %v1226_v27 = vpop.f32.mrb[87].mxu0  ;;  %v9698_v25 = vld [vmem:[#allocation2 + $0x31] sm:$0xff]  ;;  %v1127_v44 = vadd.f32 %v9300_v5, %v10901_v52  ;;  %v10904_v30 = vmax.f32 %v10902_v28, %v10903_v53  ;;  %v1396_v28 = vld [vmem:[#allocation2] sm:$0xff] }
 0x1a1   : > { %1383 = vst.msk [vmem:[#allocation2 + $0x58] sm:$0xff] %vm1371_vm6, %v1358_v46  ;;  %v9700_v7 = vld [vmem:[#allocation2 + $0x33] sm:$0xff]  ;;  %1382 = vst.msk [vmem:[#allocation2 + $0x50] sm:$0xff] %vm1371_vm6, %v1357_v23  ;;  %v1335_v21 = vmax.f32 %v10890_v32, %v1311_v12  ;;  %v1227_v51 = vadd.f32 %v9300_v5, %v1226_v27  ;;  %7817 = vmatmul.mubr.msk.f32.gmra.mrb[98].mxu0 %vm1371_vm6, %v9698_v25  ;;  %v10917_v57 = vld [vmem:[#allocation31_spill] sm:$0xff] }
 0x1a2   : > { %7865 = vmatmul.mubr.msk.f32.gmra.mrb[2].mxu1 %vm1371_vm6, %v9700_v7  ;;  %v1360_v48 = vmax.f32 %v1336_v17, 0.0  ;;  %v1314_v29 = vmax.f32 %v1112_v62, %v1232_v26  ;;  %v10905_v17 = vld [vmem:[#allocation28_spill] sm:$0xff]  ;;  %v10906_v27 = vld [vmem:[#allocation13_spill] sm:$0xff]  ;;  %v1984_v53 = vld [vmem:[#allocation2 + $0x4] sm:$0xff] }
 0x1a3   : > { %v1359_v39 = vmax.f32 %v1335_v21, 0.0  ;;  %v1313_v10 = vmax.f32 %v1107_v8, %v1227_v51  ;;  %v7799_v22 = vpop.f32.mrb[88].mxu0  ;;  %v1142_v26 = vadd.f32 %v10905_v17, %v9300_v5  ;;  %v10907_v8 = vld [vmem:[#allocation14_spill] sm:$0xff]  ;;  %v1397_v17 = vld [vmem:[#allocation2 + $0x10] sm:$0xff] }
 0x1a4   : > { %1385 = vst.msk [vmem:[#allocation2 + $0x68] sm:$0xff] %vm1371_vm6, %v1360_v48  ;;  %v1338_v11 = vmax.f32 %v10892_v33, %v1314_v29  ;;  %v1242_v37 = vadd.f32 %v7799_v22, %v9300_v5  ;;  %v1236_v38 = vpop.f32.mrb[89].mxu0  ;;  %v9720_v56 = vld [vmem:[#allocation2 + $0x41] sm:$0xff]  ;;  %v10908_v32 = vmax.f32 %v10906_v27, %v10907_v8  ;;  %v10924_v8 = vld [vmem:[#allocation23_spill] sm:$0xff] }
 0x1a5   : > { %v9722_v58 = vld [vmem:[#allocation2 + $0x43] sm:$0xff]  ;;  %1384 = vst.msk [vmem:[#allocation2 + $0x60] sm:$0xff] %vm1371_vm6, %v1359_v39  ;;  %v1337_v41 = vmax.f32 %v10896_v40, %v1313_v10  ;;  %v1237_v43 = vadd.f32 %v9300_v5, %v1236_v38  ;;  %7819 = vmatprep.mubr.msk.f32.mxu0 %vm1371_vm6, %v9720_v56  ;;  %v10909_v10 = vld [vmem:[#allocation29_spill] sm:$0xff] }
 0x1a6   : > { %7867 = vmatprep.mubr.msk.f32.mxu1 %vm1371_vm6, %v9722_v58  ;;  %v1362_v50 = vmax.f32 %v1338_v11, 0.0  ;;  %v1316_v15 = vmax.f32 %v1122_v60, %v1242_v37  ;;  %v1137_v22 = vadd.f32 %v9300_v5, %v10909_v10  ;;  %v10910_v60 = vld [vmem:[#allocation15_spill] sm:$0xff]  ;;  %v10913_v40 = vld [vmem:[#allocation30_spill] sm:$0xff] }
 0x1a7   : > { %v1361_v34 = vmax.f32 %v1337_v41, 0.0  ;;  %v1315_v42 = vmax.f32 %v1117_v35, %v1237_v43  ;;  %v7802_v6 = vpop.f32.mrb[90].mxu0  ;;  %v10912_v33 = vmax.f32 %v10910_v60, %v10911_v49  ;;  %v1152_v41 = vadd.f32 %v10913_v40, %v9300_v5  ;;  %v10914_v43 = vld [vmem:[#allocation17_spill] sm:$0xff]  ;;  %v9837_v49 = vld [vmem:[#allocation2 + $0x30] sm:$0xff]  ;;  %v6955_v40 = vld [vmem:[%s10821_s3 + $0x78] sm:$0x3] }
 0x1a8   : > { %1387 = vst.msk [vmem:[#allocation2 + $0x78] sm:$0xff] %vm1371_vm6, %v1362_v50  ;;  %v1340_v0 = vmax.f32 %v10900_v59, %v1316_v15  ;;  %v1252_v19 = vadd.f32 %v7802_v6, %v9300_v5  ;;  %v1246_v31 = vpop.f32.mrb[91].mxu0  ;;  %v9742_v36 = vld [vmem:[#allocation2 + $0x51] sm:$0xff]  ;;  %v10915_v50 = vld [vmem:[#allocation18_spill] sm:$0xff]  ;;  %v1147_v59 = vadd.f32 %v9300_v5, %v10917_v57 }
 0x1a9   : > { %v9744_v3 = vld [vmem:[#allocation2 + $0x53] sm:$0xff]  ;;  %1386 = vst.msk [vmem:[#allocation2 + $0x70] sm:$0xff] %vm1371_vm6, %v1361_v34  ;;  %v1339_v46 = vmax.f32 %v10904_v30, %v1315_v42  ;;  %v1247_v9 = vadd.f32 %v9300_v5, %v1246_v31  ;;  %7820 = vmatmul.mubr.msk.f32.gmra.mrb[100].mxu0 %vm1371_vm6, %v9742_v36  ;;  %v10916_v15 = vmax.f32 %v10914_v43, %v10915_v50  ;;  %v6944_v30 = vld [vmem:[%s10821_s3 + $0x68] sm:$0x3]  ;;  %v6965_v57 = vld [vmem:[%s10821_s3 + $0x80] sm:$0xff] }
 0x1aa   : > { %7868 = vmatmul.mubr.msk.f32.gmra.mrb[4].mxu1 %vm1371_vm6, %v9744_v3  ;;  %v1364_v23 = vmax.f32 %v1340_v0, 0.0  ;;  %v1318_v12 = vmax.f32 %v1132_v55, %v1252_v19  ;;  %v10918_v0 = vld [vmem:[#allocation19_spill] sm:$0xff]  ;;  %v10919_v19 = vld [vmem:[#allocation20_spill] sm:$0xff]  ;;  %v8416_v27 = vpack.c.bf16 %v6944_v30, %v6943_v45  ;;  %v6987_v30 = vld [vmem:[%s10821_s3 + $0xa0] sm:$0xff] }
 0x1ab   : > { %v1363_v24 = vmax.f32 %v1339_v46, 0.0  ;;  %v1317_v62 = vmax.f32 %v1127_v44, %v1247_v9  ;;  %v7805_v47 = vpop.f32.mrb[92].mxu0  ;;  %v10920_v31 = vmax.f32 %v10918_v0, %v10919_v19  ;;  %v1683_v50 = vld [vmem:[#allocation2 + $0x12] sm:$0xff]  ;;  %v6966_v19 = vld [vmem:[%s10821_s3 + $0x88] sm:$0x3] }
 0x1ac   : > { %1389 = vst.msk [vmem:[#allocation2 + $0x88] sm:$0xff] %vm1371_vm6, %v1364_v23  ;;  %v1342_v21 = vmax.f32 %v10908_v32, %v1318_v12  ;;  %v1262_v51 = vadd.f32 %v7805_v47, %v9300_v5  ;;  %v1256_v48 = vpop.f32.mrb[93].mxu0  ;;  %v9764_v29 = vld [vmem:[#allocation2 + $0x61] sm:$0xff]  ;;  %v10925_v32 = vld [vmem:[#allocation24_spill] sm:$0xff] }
 0x1ad   : > { %v9766_v39 = vld [vmem:[#allocation2 + $0x63] sm:$0xff]  ;;  %1388 = vst.msk [vmem:[#allocation2 + $0x80] sm:$0xff] %vm1371_vm6, %v1363_v24  ;;  %v1341_v11 = vmax.f32 %v10912_v33, %v1317_v62  ;;  %v1257_v37 = vadd.f32 %v9300_v5, %v1256_v48  ;;  %7822 = vmatprep.mubr.msk.f32.mxu0 %vm1371_vm6, %v9764_v29  ;;  %v10921_v12 = vld [vmem:[#allocation21_spill] sm:$0xff] }
 0x1ae   : > { %7870 = vmatprep.mubr.msk.f32.mxu1 %vm1371_vm6, %v9766_v39  ;;  %v1366_v38 = vmax.f32 %v1342_v21, 0.0  ;;  %v1320_v61 = vmax.f32 %v1142_v26, %v1262_v51  ;;  %v10922_v24 = vld [vmem:[#allocation22_spill] sm:$0xff]  ;;  %v9813_v26 = vld [vmem:[#allocation2 + $0x14] sm:$0xff]  ;;  %v10926_v21 = vmax.f32 %v10924_v8, %v10925_v32 }
 0x1af   : > { %v1365_v35 = vmax.f32 %v1341_v11, 0.0  ;;  %v1319_v1 = vmax.f32 %v1137_v22, %v1257_v37  ;;  %v7808_v2 = vpop.f32.mrb[94].mxu0  ;;  %v10923_v62 = vmax.f32 %v10921_v12, %v10922_v24  ;;  %v9822_v48 = vld [vmem:[#allocation2 + $0x20] sm:$0xff]  ;;  %v9839_v33 = vld [vmem:[#allocation2 + $0x34] sm:$0xff] }
 0x1b0   : > { %1391 = vst.msk [vmem:[#allocation2 + $0x98] sm:$0xff] %vm1371_vm6, %v1366_v38  ;;  %v1344_v34 = vmax.f32 %v10916_v15, %v1320_v61  ;;  %v1272_v42 = vadd.f32 %v7808_v2, %v9300_v5  ;;  %v1266_v6 = vpop.f32.mrb[95].mxu0  ;;  %v9786_v18 = vld [vmem:[#allocation2 + $0x71] sm:$0xff]  ;;  %v9829_v22 = vld [vmem:[#allocation2 + $0x24] sm:$0xff] }
 0x1b1   : > { %v9788_v55 = vld [vmem:[#allocation2 + $0x73] sm:$0xff]  ;;  %1390 = vst.msk [vmem:[#allocation2 + $0x90] sm:$0xff] %vm1371_vm6, %v1365_v35  ;;  %v1343_v52 = vmax.f32 %v10920_v31, %v1319_v1  ;;  %v1267_v44 = vadd.f32 %v9300_v5, %v1266_v6  ;;  %7823 = vmatmul.mubr.msk.f32.gmra.mrb[102].mxu0 %vm1371_vm6, %v9786_v18  ;;  %v9864_v38 = vld [vmem:[#allocation2 + $0x60] sm:$0xff]  ;;  %v8428_v31 = vpack.c.bf16 %v6966_v19, %v6965_v57 }
 0x1b2   : > { %7871 = vmatmul.mubr.msk.f32.gmra.mrb[6].mxu1 %vm1371_vm6, %v9788_v55  ;;  %v1368_v46 = vmax.f32 %v1344_v34, 0.0  ;;  %v1322_v9 = vmax.f32 %v1152_v41, %v1272_v42  ;;  %7829 = vmatprep.mubr.msk.f32.mxu0 %vm1371_vm6, %v1396_v28  ;;  %v9856_v11 = vld [vmem:[#allocation2 + $0x50] sm:$0xff]  ;;  %v9866_v61 = vld [vmem:[#allocation2 + $0x64] sm:$0xff]  ;;  %v7021_v8 = vld [vmem:[%s10821_s3 + $0xd8] sm:$0x3] }
 0x1b3   : > { %7877 = vmatprep.mubr.msk.f32.mxu1 %vm1371_vm6, %v1984_v53  ;;  %v1367_v23 = vmax.f32 %v1343_v52, 0.0  ;;  %v1321_v5 = vmax.f32 %v1147_v59, %v1267_v44  ;;  %v9858_v37 = vld [vmem:[#allocation2 + $0x54] sm:$0xff]  ;;  %v1682_v41 = vld [vmem:[#allocation2 + $0x2] sm:$0xff] }
 0x1b4   : > { %1393 = vst.msk [vmem:[#allocation2 + $0xa8] sm:$0xff] %vm1371_vm6, %v1368_v46  ;;  %v1346_v47 = vmax.f32 %v10923_v62, %v1322_v9  ;;  %v6954_v35 = vld [vmem:[%s10821_s3 + $0x70] sm:$0xff]  ;;  %v9891_v15 = vld [vmem:[#allocation2 + $0x22] sm:$0xff]  ;;  %v6977_v44 = vld [vmem:[%s10821_s3 + $0x98] sm:$0x3] }
 0x1b5   : > { %1392 = vst.msk [vmem:[#allocation2 + $0xa0] sm:$0xff] %vm1371_vm6, %v1367_v23  ;;  %v1345_v51 = vmax.f32 %v10926_v21, %v1321_v5  ;;  %7830 = vmatmul.mubr.msk.f32.vlgmr.msra.gmra.mrb[96].mxu0 %vm1371_vm6, %v1397_v17  ;;  %v9875_v1 = vld [vmem:[#allocation2 + $0x70] sm:$0xff]  ;;  %v8422_v43 = vpack.c.bf16 %v6955_v40, %v6954_v35  ;;  %v9907_v42 = vld [vmem:[#allocation2 + $0x42] sm:$0xff]  ;;  %v6999_v5 = vld [vmem:[%s10821_s3 + $0xb8] sm:$0x3] }
 0x1b6   : > { %7878 = vmatmul.mubr.msk.f32.vlgmr.msra.gmra.mrb[0].mxu1 %vm1371_vm6, %v9813_v26  ;;  %v1370_v10 = vmax.f32 %v1346_v47, 0.0  ;;  %7832 = vmatprep.mubr.msk.f32.mxu0 %vm1371_vm6, %v9822_v48  ;;  %v9877_v2 = vld [vmem:[#allocation2 + $0x74] sm:$0xff]  ;;  %v9919_v45 = vld [vmem:[#allocation2 + $0x62] sm:$0xff] }
 0x1b7   : > { %8415 = vmatpush3.bf16.msk.msra.mxu1 %vm9257_vm5, %v9631_v63  ;;  %v1369_v60 = vmax.f32 %v1345_v51, 0.0  ;;  %7880 = vmatprep.mubr.msk.f32.mxu1 %vm1371_vm6, %v9829_v22  ;;  %v9848_v63 = vld [vmem:[#allocation2 + $0x40] sm:$0xff]  ;;  %v9901_v34 = vld [vmem:[#allocation2 + $0x32] sm:$0xff]  ;;  %v6988_v46 = vld [vmem:[%s10821_s3 + $0xa8] sm:$0x3] }
 0x1b8   : > { %8397 = vmatpush3.bf16.msk.msra.mxu0 %vm9257_vm5, %v9633_v4  ;;  %1395 = vst.msk [vmem:[#allocation2 + $0xb8] sm:$0xff] %vm1371_vm6, %v1370_v10  ;;  %8418 = vmatprep.subr.msk.bf16.mxu1 %vm9257_vm5, %v8416_v27  ;;  %v9850_v4 = vld [vmem:[#allocation2 + $0x44] sm:$0xff]  ;;  %v9913_v6 = vld [vmem:[#allocation2 + $0x52] sm:$0xff]  ;;  %v8440_v9 = vpack.c.bf16 %v6988_v46, %v6987_v30 }
 0x1b9   : > { %1394 = vst.msk [vmem:[#allocation2 + $0xb0] sm:$0xff] %vm1371_vm6, %v1369_v60  ;;  %7833 = vmatmul.mubr.msk.f32.gmra.mrb[98].mxu0 %vm1371_vm6, %v9837_v49  ;;  %v9928_v59 = vld [vmem:[#allocation2 + $0x72] sm:$0xff]  ;;  %v9930_v0 = vld [vmem:[#allocation2 + $0x80] sm:$0xff]  ;;  %v7010_v47 = vld [vmem:[%s10821_s3 + $0xc8] sm:$0x3] }
 0x1ba   : > { %7881 = vmatmul.mubr.msk.f32.gmra.mrb[2].mxu1 %vm1371_vm6, %v9839_v33  ;;  %7835 = vmatprep.mubr.msk.f32.mxu0 %vm1371_vm6, %v9848_v63  ;;  %v6976_v52 = vld [vmem:[%s10821_s3 + $0x90] sm:$0xff]  ;;  %v9984_v53 = vld [vmem:[#allocation2 + $0x82] sm:$0xff]  ;;  %v7043_v35 = vld [vmem:[%s10821_s3 + $0xf8] sm:$0x3] }
 0x1bb   : > { %7883 = vmatprep.mubr.msk.f32.mxu1 %vm1371_vm6, %v9850_v4  ;;  %v8434_v28 = vpack.c.bf16 %v6977_v44, %v6976_v52  ;;  %v6998_v23 = vld [vmem:[%s10821_s3 + $0xb0] sm:$0xff]  ;;  %v10040_v24 = vld [vmem:[#allocation2 + $0x84] sm:$0xff]  ;;  %v7065_v57 = vld [vmem:[%s10821_s3 + $0x118] sm:$0x3] }
 0x1bc   : > { %v8446_v12 = vpack.c.bf16 %v6999_v5, %v6998_v23  ;;  %v7009_v62 = vld [vmem:[%s10821_s3 + $0xc0] sm:$0xff]  ;;  %v7032_v51 = vld [vmem:[%s10821_s3 + $0xe8] sm:$0x3]  ;;  %v10124_v10 = vld [vmem:[#allocation2 + $0x92] sm:$0xff] }
 0x1bd   : > { %7836 = vmatmul.mubr.msk.f32.gmra.mrb[100].mxu0 %vm1371_vm6, %v9856_v11  ;;  %v7031_v21 = vld [vmem:[%s10821_s3 + $0xe0] sm:$0xff]  ;;  %v7042_v60 = vld [vmem:[%s10821_s3 + $0xf0] sm:$0xff]  ;;  %v7076_v52 = vld [vmem:[%s10821_s3 + $0x128] sm:$0x3] }
 0x1be   : > { %7884 = vmatmul.mubr.msk.f32.gmra.mrb[4].mxu1 %vm1371_vm6, %v9858_v37  ;;  %7838 = vmatprep.mubr.msk.f32.mxu0 %vm1371_vm6, %v9864_v38  ;;  %v8470_v40 = vpack.c.bf16 %v7043_v35, %v7042_v60  ;;  %v7087_v30 = vld [vmem:[%s10821_s3 + $0x138] sm:$0x3]  ;;  %v7098_v23 = vld [vmem:[%s10821_s3 + $0x148] sm:$0x3]  ;;  %v7119_v35 = vld [vmem:[%s10821_s3 + $0x160] sm:$0xff] }
 0x1bf   : > { %7886 = vmatprep.mubr.msk.f32.mxu1 %vm1371_vm6, %v9866_v61 }
 0x1c0   : > { %v5015_v54 = vld [vmem:[#allocation2 + $0xb4] sm:$0xff] }
 0x1c1   : > { %7839 = vmatmul.mubr.msk.f32.gmra.mrb[102].mxu0 %vm1371_vm6, %v9875_v1 }
 0x1c2   : > { %7887 = vmatmul.mubr.msk.f32.gmra.mrb[6].mxu1 %vm1371_vm6, %v9877_v2  ;;  %7845 = vmatprep.mubr.msk.f32.mxu0 %vm1371_vm6, %v1682_v41  ;;  %v7053_v41 = vld [vmem:[%s10821_s3 + $0x100] sm:$0xff] }
 0x1c3   : > { %7893 = vmatprep.mubr.msk.f32.mxu1 %vm1371_vm6, %v1397_v17  ;;  %v8452_v17 = vpack.c.bf16 %v7010_v47, %v7009_v62 }
 0x1c5   : > { %7846 = vmatmul.mubr.msk.f32.vlgmr.msra.gmra.mrb[96].mxu0 %vm1371_vm6, %v1683_v50 }
 0x1c6   : > { %7894 = vmatmul.mubr.msk.f32.vlgmr.msra.gmra.mrb[0].mxu1 %vm1371_vm6, %v9822_v48  ;;  %7848 = vmatprep.mubr.msk.f32.mxu0 %vm1371_vm6, %v9891_v15 }
 0x1c7   : > { %8421 = vmatpush3.bf16.msk.msra.mxu1 %vm9257_vm5, %v8416_v27  ;;  %7896 = vmatprep.mubr.msk.f32.mxu1 %vm1371_vm6, %v9837_v49  ;;  %v7020_v27 = vld [vmem:[%s10821_s3 + $0xd0] sm:$0xff] }
 0x1c8   : > { %8424 = vmatprep.subr.msk.bf16.mxu1 %vm9257_vm5, %v8422_v43  ;;  %v8458_v32 = vpack.c.bf16 %v7021_v8, %v7020_v27  ;;  %v10302_v27 = vld [vmem:[#allocation2 + $0xa3] sm:$0xff]  ;;  %v7108_v8 = vld [vmem:[%s10821_s3 + $0x150] sm:$0xff] }
 0x1c9   : > { %7849 = vmatmul.mubr.msk.f32.gmra.mrb[98].mxu0 %vm1371_vm6, %v9901_v34 }
 0x1ca   : > { %7897 = vmatmul.mubr.msk.f32.gmra.mrb[2].mxu1 %vm1371_vm6, %v9848_v63  ;;  %7851 = vmatprep.mubr.msk.f32.mxu0 %vm1371_vm6, %v9907_v42 }
 0x1cb   : > { %7899 = vmatprep.mubr.msk.f32.mxu1 %vm1371_vm6, %v9856_v11 }
 0x1cd   : > { %7852 = vmatmul.mubr.msk.f32.gmra.mrb[100].mxu0 %vm1371_vm6, %v9913_v6 }
 0x1ce   : > { %7900 = vmatmul.mubr.msk.f32.gmra.mrb[4].mxu1 %vm1371_vm6, %v9864_v38  ;;  %7854 = vmatprep.mubr.msk.f32.mxu0 %vm1371_vm6, %v9919_v45 }
 0x1cf   : > { %7902 = vmatprep.mubr.msk.f32.mxu1 %vm1371_vm6, %v9875_v1 }
 0x1d1   : > { %7855 = vmatmul.mubr.msk.f32.gmra.mrb[102].mxu0 %vm1371_vm6, %v9928_v59 }
 0x1d2   : > { %7903 = vmatmul.mubr.msk.f32.gmra.mrb[6].mxu1 %vm1371_vm6, %v9930_v0 }
 0x1d3   : > { %7909 = vmatprep.mubr.msk.f32.mxu1 %vm1371_vm6, %v9642_v16  ;;  %v9957_v16 = vld [vmem:[#allocation2 + $0x81] sm:$0xff] }
 0x1d6   : > { %7910 = vmatmul.mubr.msk.f32.vlgmr.msra.gmra.mrb[0].mxu1 %vm1371_vm6, %v9676_v13 }
 0x1d7   : > { %8427 = vmatpush3.bf16.msk.msra.mxu1 %vm9257_vm5, %v8422_v43  ;;  %7912 = vmatprep.mubr.msk.f32.mxu1 %vm1371_vm6, %v9698_v25  ;;  %v7054_v43 = vld [vmem:[%s10821_s3 + $0x108] sm:$0x3] }
 0x1d8   : > { %8430 = vmatprep.subr.msk.bf16.mxu1 %vm9257_vm5, %v8428_v31 }
 0x1da   : > { %7913 = vmatmul.mubr.msk.f32.gmra.mrb[2].mxu1 %vm1371_vm6, %v9720_v56 }
 0x1db   : > { %7915 = vmatprep.mubr.msk.f32.mxu1 %vm1371_vm6, %v9742_v36 }
 0x1de   : > { %7916 = vmatmul.mubr.msk.f32.gmra.mrb[4].mxu1 %vm1371_vm6, %v9764_v29 }
 0x1df   : > { %7918 = vmatprep.mubr.msk.f32.mxu1 %vm1371_vm6, %v9786_v18 }
 0x1e2   : > { %7919 = vmatmul.mubr.msk.f32.gmra.mrb[6].mxu1 %vm1371_vm6, %v9957_v16 }
 0x1e3   : > { %7925 = vmatprep.mubr.msk.f32.mxu1 %vm1371_vm6, %v1683_v50  ;;  %v8476_v50 = vpack.c.bf16 %v7054_v43, %v7053_v41 }
 0x1e6   : > { %7926 = vmatmul.mubr.msk.f32.vlgmr.msra.gmra.mrb[0].mxu1 %vm1371_vm6, %v9891_v15 }
 0x1e7   : > { %8433 = vmatpush3.bf16.msk.msra.mxu1 %vm9257_vm5, %v8428_v31  ;;  %7928 = vmatprep.mubr.msk.f32.mxu1 %vm1371_vm6, %v9901_v34  ;;  %v7075_v31 = vld [vmem:[%s10821_s3 + $0x120] sm:$0xff] }
 0x1e8   : > { %8436 = vmatprep.subr.msk.bf16.mxu1 %vm9257_vm5, %v8434_v28  ;;  %v8488_v44 = vpack.c.bf16 %v7076_v52, %v7075_v31 }
 0x1ea   : > { %7929 = vmatmul.mubr.msk.f32.gmra.mrb[2].mxu1 %vm1371_vm6, %v9907_v42 }
 0x1eb   : > { %7931 = vmatprep.mubr.msk.f32.mxu1 %vm1371_vm6, %v9913_v6 }
 0x1ee   : > { %7932 = vmatmul.mubr.msk.f32.gmra.mrb[4].mxu1 %vm1371_vm6, %v9919_v45 }
 0x1ef   : > { %7934 = vmatprep.mubr.msk.f32.mxu1 %vm1371_vm6, %v9928_v59 }
 0x1f2   : > { %7935 = vmatmul.mubr.msk.f32.gmra.mrb[6].mxu1 %vm1371_vm6, %v9984_v53 }
 0x1f3   : > { %7941 = vmatprep.mubr.msk.f32.mxu1 %vm1371_vm6, %v9644_v20  ;;  %v10012_v20 = vld [vmem:[#allocation2 + $0x83] sm:$0xff] }
 0x1f6   : > { %7942 = vmatmul.mubr.msk.f32.vlgmr.msra.gmra.mrb[0].mxu1 %vm1371_vm6, %v9678_v14 }
 0x1f7   : > { %8439 = vmatpush3.bf16.msk.msra.mxu1 %vm9257_vm5, %v8434_v28  ;;  %7944 = vmatprep.mubr.msk.f32.mxu1 %vm1371_vm6, %v9700_v7  ;;  %v7086_v28 = vld [vmem:[%s10821_s3 + $0x130] sm:$0xff] }
 0x1f8   : > { %8442 = vmatprep.subr.msk.bf16.mxu1 %vm9257_vm5, %v8440_v9  ;;  %v8494_v46 = vpack.c.bf16 %v7087_v30, %v7086_v28 }
 0x1fa   : > { %7945 = vmatmul.mubr.msk.f32.gmra.mrb[2].mxu1 %vm1371_vm6, %v9722_v58 }
 0x1fb   : > { %7947 = vmatprep.mubr.msk.f32.mxu1 %vm1371_vm6, %v9744_v3 }
 0x1fe   : > { %7948 = vmatmul.mubr.msk.f32.gmra.mrb[4].mxu1 %vm1371_vm6, %v9766_v39 }
 0x1ff   : > { %7950 = vmatprep.mubr.msk.f32.mxu1 %vm1371_vm6, %v9788_v55 }
 0x202   : > { %7951 = vmatmul.mubr.msk.f32.gmra.mrb[6].mxu1 %vm1371_vm6, %v10012_v20 }
 0x203   : > { %7957 = vmatprep.mubr.msk.f32.mxu1 %vm1371_vm6, %v9813_v26  ;;  %v10068_v26 = vld [vmem:[#allocation2 + $0x90] sm:$0xff] }
 0x206   : > { %7958 = vmatmul.mubr.msk.f32.vlgmr.msra.gmra.mrb[0].mxu1 %vm1371_vm6, %v9829_v22 }
 0x207   : > { %8445 = vmatpush3.bf16.msk.msra.mxu1 %vm9257_vm5, %v8440_v9  ;;  %7960 = vmatprep.mubr.msk.f32.mxu1 %vm1371_vm6, %v9839_v33  ;;  %v7097_v9 = vld [vmem:[%s10821_s3 + $0x140] sm:$0xff] }
 0x208   : > { %8448 = vmatprep.subr.msk.bf16.mxu1 %vm9257_vm5, %v8446_v12  ;;  %v8500_v5 = vpack.c.bf16 %v7098_v23, %v7097_v9 }
 0x20a   : > { %7961 = vmatmul.mubr.msk.f32.gmra.mrb[2].mxu1 %vm1371_vm6, %v9850_v4 }
 0x20b   : > { %7963 = vmatprep.mubr.msk.f32.mxu1 %vm1371_vm6, %v9858_v37 }
 0x20e   : > { %7964 = vmatmul.mubr.msk.f32.gmra.mrb[4].mxu1 %vm1371_vm6, %v9866_v61 }
 0x20f   : > { %7966 = vmatprep.mubr.msk.f32.mxu1 %vm1371_vm6, %v9877_v2 }
 0x212   : > { %7967 = vmatmul.mubr.msk.f32.gmra.mrb[6].mxu1 %vm1371_vm6, %v10040_v24 }
 0x213   : > { %7973 = vmatprep.mubr.msk.f32.mxu1 %vm1371_vm6, %v9822_v48  ;;  %v8464_v48 = vpack.c.bf16 %v7032_v51, %v7031_v21 }
 0x216   : > { %7974 = vmatmul.mubr.msk.f32.vlgmr.msra.gmra.mrb[0].mxu1 %vm1371_vm6, %v9837_v49 }
 0x217   : > { %8451 = vmatpush3.bf16.msk.msra.mxu1 %vm9257_vm5, %v8446_v12  ;;  %7976 = vmatprep.mubr.msk.f32.mxu1 %vm1371_vm6, %v9848_v63 }
 0x218   : > { %8454 = vmatprep.subr.msk.bf16.mxu1 %vm9257_vm5, %v8452_v17 }
 0x21a   : > { %7977 = vmatmul.mubr.msk.f32.gmra.mrb[2].mxu1 %vm1371_vm6, %v9856_v11 }
 0x21b   : > { %7979 = vmatprep.mubr.msk.f32.mxu1 %vm1371_vm6, %v9864_v38 }
 0x21e   : > { %7980 = vmatmul.mubr.msk.f32.gmra.mrb[4].mxu1 %vm1371_vm6, %v9875_v1 }
 0x21f   : > { %7982 = vmatprep.mubr.msk.f32.mxu1 %vm1371_vm6, %v9930_v0 }
 0x222   : > { %7983 = vmatmul.mubr.msk.f32.gmra.mrb[6].mxu1 %vm1371_vm6, %v10068_v26 }
 0x223   : > { %7989 = vmatprep.mubr.msk.f32.mxu1 %vm1371_vm6, %v9676_v13  ;;  %v10096_v13 = vld [vmem:[#allocation2 + $0x91] sm:$0xff] }
 0x226   : > { %7990 = vmatmul.mubr.msk.f32.vlgmr.msra.gmra.mrb[0].mxu1 %vm1371_vm6, %v9698_v25 }
 0x227   : > { %8457 = vmatpush3.bf16.msk.msra.mxu1 %vm9257_vm5, %v8452_v17  ;;  %7992 = vmatprep.mubr.msk.f32.mxu1 %vm1371_vm6, %v9720_v56 }
 0x228   : > { %8460 = vmatprep.subr.msk.bf16.mxu1 %vm9257_vm5, %v8458_v32 }
 0x22a   : > { %7993 = vmatmul.mubr.msk.f32.gmra.mrb[2].mxu1 %vm1371_vm6, %v9742_v36 }
 0x22b   : > { %7995 = vmatprep.mubr.msk.f32.mxu1 %vm1371_vm6, %v9764_v29 }
 0x22e   : > { %7996 = vmatmul.mubr.msk.f32.gmra.mrb[4].mxu1 %vm1371_vm6, %v9786_v18 }
 0x22f   : > { %7998 = vmatprep.mubr.msk.f32.mxu1 %vm1371_vm6, %v9957_v16 }
 0x232   : > { %7999 = vmatmul.mubr.msk.f32.gmra.mrb[6].mxu1 %vm1371_vm6, %v10096_v13 }
 0x233   : > { %8005 = vmatprep.mubr.msk.f32.mxu1 %vm1371_vm6, %v9891_v15  ;;  %v7064_v15 = vld [vmem:[%s10821_s3 + $0x110] sm:$0xff] }
 0x234   : > { %v8482_v19 = vpack.c.bf16 %v7065_v57, %v7064_v15 }
 0x236   : > { %8006 = vmatmul.mubr.msk.f32.vlgmr.msra.gmra.mrb[0].mxu1 %vm1371_vm6, %v9901_v34 }
 0x237   : > { %8463 = vmatpush3.bf16.msk.msra.mxu1 %vm9257_vm5, %v8458_v32  ;;  %8008 = vmatprep.mubr.msk.f32.mxu1 %vm1371_vm6, %v9907_v42  ;;  %v7109_v32 = vld [vmem:[%s10821_s3 + $0x158] sm:$0x3] }
 0x238   : > { %8466 = vmatprep.subr.msk.bf16.mxu1 %vm9257_vm5, %v8464_v48  ;;  %v8506_v51 = vpack.c.bf16 %v7109_v32, %v7108_v8 }
 0x23a   : > { %8009 = vmatmul.mubr.msk.f32.gmra.mrb[2].mxu1 %vm1371_vm6, %v9913_v6 }
 0x23b   : > { %8011 = vmatprep.mubr.msk.f32.mxu1 %vm1371_vm6, %v9919_v45 }
 0x23e   : > { %8012 = vmatmul.mubr.msk.f32.gmra.mrb[4].mxu1 %vm1371_vm6, %v9928_v59 }
 0x23f   : > { %8014 = vmatprep.mubr.msk.f32.mxu1 %vm1371_vm6, %v9984_v53 }
 0x242   : > { %8015 = vmatmul.mubr.msk.f32.gmra.mrb[6].mxu1 %vm1371_vm6, %v10124_v10 }
 0x243   : > { %8021 = vmatprep.mubr.msk.f32.mxu1 %vm1371_vm6, %v9678_v14  ;;  %v10152_v14 = vld [vmem:[#allocation2 + $0x93] sm:$0xff] }
 0x246   : > { %8022 = vmatmul.mubr.msk.f32.vlgmr.msra.gmra.mrb[0].mxu1 %vm1371_vm6, %v9700_v7 }
 0x247   : > { %8469 = vmatpush3.bf16.msk.msra.mxu1 %vm9257_vm5, %v8464_v48  ;;  %8024 = vmatprep.mubr.msk.f32.mxu1 %vm1371_vm6, %v9722_v58 }
 0x248   : > { %8472 = vmatprep.subr.msk.bf16.mxu1 %vm9257_vm5, %v8470_v40 }
 0x24a   : > { %8025 = vmatmul.mubr.msk.f32.gmra.mrb[2].mxu1 %vm1371_vm6, %v9744_v3 }
 0x24b   : > { %8027 = vmatprep.mubr.msk.f32.mxu1 %vm1371_vm6, %v9766_v39 }
 0x24e   : > { %8028 = vmatmul.mubr.msk.f32.gmra.mrb[4].mxu1 %vm1371_vm6, %v9788_v55 }
 0x24f   : > { %8030 = vmatprep.mubr.msk.f32.mxu1 %vm1371_vm6, %v10012_v20 }
 0x252   : > { %8031 = vmatmul.mubr.msk.f32.gmra.mrb[6].mxu1 %vm1371_vm6, %v10152_v14 }
 0x253   : > { %8037 = vmatprep.mubr.msk.f32.mxu1 %vm1371_vm6, %v9829_v22  ;;  %v10180_v22 = vld [vmem:[#allocation2 + $0x94] sm:$0xff] }
 0x256   : > { %8038 = vmatmul.mubr.msk.f32.vlgmr.msra.gmra.mrb[0].mxu1 %vm1371_vm6, %v9839_v33 }
 0x257   : > { %8475 = vmatpush3.bf16.msk.msra.mxu1 %vm9257_vm5, %v8470_v40  ;;  %8040 = vmatprep.mubr.msk.f32.mxu1 %vm1371_vm6, %v9850_v4  ;;  %v7120_v40 = vld [vmem:[%s10821_s3 + $0x168] sm:$0x3] }
 0x258   : > { %8478 = vmatprep.subr.msk.bf16.mxu1 %vm9257_vm5, %v8476_v50  ;;  %v8512_v41 = vpack.c.bf16 %v7120_v40, %v7119_v35 }
 0x25a   : > { %8041 = vmatmul.mubr.msk.f32.gmra.mrb[2].mxu1 %vm1371_vm6, %v9858_v37 }
 0x25b   : > { %8043 = vmatprep.mubr.msk.f32.mxu1 %vm1371_vm6, %v9866_v61 }
 0x25e   : > { %8044 = vmatmul.mubr.msk.f32.gmra.mrb[4].mxu1 %vm1371_vm6, %v9877_v2 }
 0x25f   : > { %8046 = vmatprep.mubr.msk.f32.mxu1 %vm1371_vm6, %v10040_v24 }
 0x262   : > { %8047 = vmatmul.mubr.msk.f32.gmra.mrb[6].mxu1 %vm1371_vm6, %v10180_v22 }
 0x263   : > { %8053 = vmatprep.mubr.msk.f32.mxu1 %vm1371_vm6, %v9837_v49  ;;  %v10208_v49 = vld [vmem:[#allocation2 + $0xa0] sm:$0xff] }
 0x266   : > { %8054 = vmatmul.mubr.msk.f32.vlgmr.msra.gmra.mrb[0].mxu1 %vm1371_vm6, %v9848_v63 }
 0x267   : > { %8481 = vmatpush3.bf16.msk.msra.mxu1 %vm9257_vm5, %v8476_v50  ;;  %8056 = vmatprep.mubr.msk.f32.mxu1 %vm1371_vm6, %v9856_v11 }
 0x268   : > { %8484 = vmatprep.subr.msk.bf16.mxu1 %vm9257_vm5, %v8482_v19 }
 0x26a   : > { %8057 = vmatmul.mubr.msk.f32.gmra.mrb[2].mxu1 %vm1371_vm6, %v9864_v38 }
 0x26b   : > { %8059 = vmatprep.mubr.msk.f32.mxu1 %vm1371_vm6, %v9875_v1 }
 0x26e   : > { %8060 = vmatmul.mubr.msk.f32.gmra.mrb[4].mxu1 %vm1371_vm6, %v9930_v0 }
 0x26f   : > { %8062 = vmatprep.mubr.msk.f32.mxu1 %vm1371_vm6, %v10068_v26 }
 0x272   : > { %8063 = vmatmul.mubr.msk.f32.gmra.mrb[6].mxu1 %vm1371_vm6, %v10208_v49 }
 0x273   : > { %8069 = vmatprep.mubr.msk.f32.mxu1 %vm1371_vm6, %v9698_v25  ;;  %v10236_v25 = vld [vmem:[#allocation2 + $0xa1] sm:$0xff] }
 0x276   : > { %8070 = vmatmul.mubr.msk.f32.vlgmr.msra.gmra.mrb[0].mxu1 %vm1371_vm6, %v9720_v56 }
 0x277   : > { %8487 = vmatpush3.bf16.msk.msra.mxu1 %vm9257_vm5, %v8482_v19  ;;  %8072 = vmatprep.mubr.msk.f32.mxu1 %vm1371_vm6, %v9742_v36 }
 0x278   : > { %8490 = vmatprep.subr.msk.bf16.mxu1 %vm9257_vm5, %v8488_v44 }
 0x27a   : > { %8073 = vmatmul.mubr.msk.f32.gmra.mrb[2].mxu1 %vm1371_vm6, %v9764_v29 }
 0x27b   : > { %8075 = vmatprep.mubr.msk.f32.mxu1 %vm1371_vm6, %v9786_v18 }
 0x27e   : > { %8076 = vmatmul.mubr.msk.f32.gmra.mrb[4].mxu1 %vm1371_vm6, %v9957_v16 }
 0x27f   : > { %8078 = vmatprep.mubr.msk.f32.mxu1 %vm1371_vm6, %v10096_v13 }
 0x282   : > { %8079 = vmatmul.mubr.msk.f32.gmra.mrb[6].mxu1 %vm1371_vm6, %v10236_v25 }
 0x283   : > { %8085 = vmatprep.mubr.msk.f32.mxu1 %vm1371_vm6, %v9901_v34  ;;  %v10264_v34 = vld [vmem:[#allocation2 + $0xa2] sm:$0xff] }
 0x286   : > { %8086 = vmatmul.mubr.msk.f32.vlgmr.msra.gmra.mrb[0].mxu1 %vm1371_vm6, %v9907_v42 }
 0x287   : > { %8493 = vmatpush3.bf16.msk.msra.mxu1 %vm9257_vm5, %v8488_v44  ;;  %8088 = vmatprep.mubr.msk.f32.mxu1 %vm1371_vm6, %v9913_v6 }
 0x288   : > { %8496 = vmatprep.subr.msk.bf16.mxu1 %vm9257_vm5, %v8494_v46 }
 0x28a   : > { %8089 = vmatmul.mubr.msk.f32.gmra.mrb[2].mxu1 %vm1371_vm6, %v9919_v45 }
 0x28b   : > { %8091 = vmatprep.mubr.msk.f32.mxu1 %vm1371_vm6, %v9928_v59 }
 0x28e   : > { %8092 = vmatmul.mubr.msk.f32.gmra.mrb[4].mxu1 %vm1371_vm6, %v9984_v53 }
 0x28f   : > { %8094 = vmatprep.mubr.msk.f32.mxu1 %vm1371_vm6, %v10124_v10 }
 0x292   : > { %8095 = vmatmul.mubr.msk.f32.gmra.mrb[6].mxu1 %vm1371_vm6, %v10264_v34 }
 0x293   : > { %8101 = vmatprep.mubr.msk.f32.mxu1 %vm1371_vm6, %v9700_v7 }
 0x296   : > { %8102 = vmatmul.mubr.msk.f32.vlgmr.msra.gmra.mrb[0].mxu1 %vm1371_vm6, %v9722_v58 }
 0x297   : > { %8499 = vmatpush3.bf16.msk.msra.mxu1 %vm9257_vm5, %v8494_v46  ;;  %8104 = vmatprep.mubr.msk.f32.mxu1 %vm1371_vm6, %v9744_v3 }
 0x298   : > { %8502 = vmatprep.subr.msk.bf16.mxu1 %vm9257_vm5, %v8500_v5  ;;  %v10284_v12 = vpop.f32.mrb[96].mxu0 }
 0x299   : > { %v10286_v62 = vpop.f32.mrb[97].mxu0 }
 0x29a   : > { %8105 = vmatmul.mubr.msk.f32.gmra.mrb[2].mxu1 %vm1371_vm6, %v9766_v39 }
 0x29b   : > { %8107 = vmatprep.mubr.msk.f32.mxu1 %vm1371_vm6, %v9788_v55 }
 0x29c   : > { %v10292_v7 = vpop.f32.mrb[98].mxu0 }
 0x29d   : > { %v10294_v47 = vpop.f32.mrb[99].mxu0 }
 0x29e   : > { %8108 = vmatmul.mubr.msk.f32.gmra.mrb[4].mxu1 %vm1371_vm6, %v10012_v20 }
 0x29f   : > { %8110 = vmatprep.mubr.msk.f32.mxu1 %vm1371_vm6, %v10152_v14 }
 0x2a0   : > { %v10300_v17 = vpop.f32.mrb[100].mxu0 }
 0x2a1   : > { %v10310_v21 = vpop.f32.mrb[101].mxu0 }
 0x2a2   : > { %8111 = vmatmul.mubr.msk.f32.gmra.mrb[6].mxu1 %vm1371_vm6, %v10302_v27 }
 0x2a3   : > { %8117 = vmatprep.mubr.msk.f32.mxu1 %vm1371_vm6, %v9839_v33  ;;  %v4259_v33 = vld [vmem:[#allocation2 + $0xa4] sm:$0xff] }
 0x2a4   : > { %v10316_v48 = vpop.f32.mrb[102].mxu0 }
 0x2a5   : > { %v10318_v60 = vpop.f32.mrb[103].mxu0 }
 0x2a6   : > { %8118 = vmatmul.mubr.msk.f32.vlgmr.msra.gmra.mrb[0].mxu1 %vm1371_vm6, %v9850_v4 }
 0x2a7   : > { %8505 = vmatpush3.bf16.msk.msra.mxu1 %vm9257_vm5, %v8500_v5  ;;  %8120 = vmatprep.mubr.msk.f32.mxu1 %vm1371_vm6, %v9858_v37 }
 0x2a8   : > { %8508 = vmatprep.subr.msk.bf16.mxu1 %vm9257_vm5, %v8506_v51 }
 0x2aa   : > { %8121 = vmatmul.mubr.msk.f32.gmra.mrb[2].mxu1 %vm1371_vm6, %v9866_v61 }
 0x2ab   : > { %8123 = vmatprep.mubr.msk.f32.mxu1 %vm1371_vm6, %v9877_v2 }
 0x2ae   : > { %8124 = vmatmul.mubr.msk.f32.gmra.mrb[4].mxu1 %vm1371_vm6, %v10040_v24 }
 0x2af   : > { %8126 = vmatprep.mubr.msk.f32.mxu1 %vm1371_vm6, %v10180_v22 }
 0x2b2   : > { %8127 = vmatmul.mubr.msk.f32.gmra.mrb[6].mxu1 %vm1371_vm6, %v4259_v33 }
 0x2b3   : > { %8133 = vmatprep.mubr.msk.f32.mxu1 %vm1371_vm6, %v9848_v63  ;;  %v4411_v63 = vld [vmem:[#allocation2 + $0xb0] sm:$0xff] }
 0x2b6   : > { %8134 = vmatmul.mubr.msk.f32.vlgmr.msra.gmra.mrb[0].mxu1 %vm1371_vm6, %v9856_v11  ;;  %v7130_v11 = vld [vmem:[%s10821_s3 + $0x170] sm:$0xff] }
 0x2b7   : > { %8511 = vmatpush3.bf16.msk.msra.mxu1 %vm9257_vm5, %v8506_v51  ;;  %8136 = vmatprep.mubr.msk.f32.mxu1 %vm1371_vm6, %v9864_v38  ;;  %v7131_v38 = vld [vmem:[%s10821_s3 + $0x178] sm:$0x3] }
 0x2b8   : > { %8514 = vmatprep.subr.msk.bf16.mxu1 %vm9257_vm5, %v8512_v41 }
 0x2ba   : > { %8137 = vmatmul.mubr.msk.f32.gmra.mrb[2].mxu1 %vm1371_vm6, %v9875_v1  ;;  %v8518_v1 = vpack.c.bf16 %v7131_v38, %v7130_v11 }
 0x2bb   : > { %8139 = vmatprep.mubr.msk.f32.mxu1 %vm1371_vm6, %v9930_v0 }
 0x2be   : > { %8140 = vmatmul.mubr.msk.f32.gmra.mrb[4].mxu1 %vm1371_vm6, %v10068_v26 }
 0x2bf   : > { %8142 = vmatprep.mubr.msk.f32.mxu1 %vm1371_vm6, %v10208_v49 }
 0x2c2   : > { %8143 = vmatmul.mubr.msk.f32.gmra.mrb[6].mxu1 %vm1371_vm6, %v4411_v63 }
 0x2c3   : > { %8149 = vmatprep.mubr.msk.f32.mxu1 %vm1371_vm6, %v9720_v56  ;;  %v4562_v56 = vld [vmem:[#allocation2 + $0xb1] sm:$0xff] }
 0x2c6   : > { %8150 = vmatmul.mubr.msk.f32.vlgmr.msra.gmra.mrb[0].mxu1 %vm1371_vm6, %v9742_v36  ;;  %v7141_v36 = vld [vmem:[%s10821_s3 + $0x180] sm:$0xff] }
 0x2c7   : > { %8517 = vmatpush3.bf16.msk.msra.mxu1 %vm9257_vm5, %v8512_v41  ;;  %8152 = vmatprep.mubr.msk.f32.mxu1 %vm1371_vm6, %v9764_v29  ;;  %v7142_v29 = vld [vmem:[%s10821_s3 + $0x188] sm:$0x3] }
 0x2c8   : > { %8520 = vmatprep.subr.msk.bf16.mxu1 %vm9257_vm5, %v8518_v1 }
 0x2ca   : > { %8153 = vmatmul.mubr.msk.f32.gmra.mrb[2].mxu1 %vm1371_vm6, %v9786_v18  ;;  %v8524_v18 = vpack.c.bf16 %v7142_v29, %v7141_v36  ;;  %v7160_v29 = vld [vmem:[%s10823_s5 + $0x30] sm:$0xff] }
 0x2cb   : > { %8155 = vmatprep.mubr.msk.f32.mxu1 %vm1371_vm6, %v9957_v16 }
 0x2ce   : > { %8156 = vmatmul.mubr.msk.f32.gmra.mrb[4].mxu1 %vm1371_vm6, %v10096_v13 }
 0x2cf   : > { %8158 = vmatprep.mubr.msk.f32.mxu1 %vm1371_vm6, %v10236_v25 }
 0x2d2   : > { %8159 = vmatmul.mubr.msk.f32.gmra.mrb[6].mxu1 %vm1371_vm6, %v4562_v56 }
 0x2d3   : > { %8165 = vmatprep.mubr.msk.f32.mxu1 %vm1371_vm6, %v9907_v42  ;;  %v4713_v42 = vld [vmem:[#allocation2 + $0xb2] sm:$0xff] }
 0x2d6   : > { %8166 = vmatmul.mubr.msk.f32.vlgmr.msra.gmra.mrb[0].mxu1 %vm1371_vm6, %v9913_v6  ;;  %v7152_v6 = vld [vmem:[%s10822_s4] ss:$0 sm:$0xff] }
 0x2d7   : > { %8523 = vmatpush3.bf16.msk.msra.mxu1 %vm9257_vm5, %v8518_v1  ;;  %8168 = vmatprep.mubr.msk.f32.mxu1 %vm1371_vm6, %v9919_v45  ;;  %v7157_v1 = vld [vmem:[%s10823_s5 + $0x28] sm:$0xf] }
 0x2d8   : > { %8526 = vmatprep.subr.msk.bf16.mxu1 %vm9257_vm5, %v8524_v18 }
 0x2da   : > { %8169 = vmatmul.mubr.msk.f32.gmra.mrb[2].mxu1 %vm1371_vm6, %v9928_v59 }
 0x2db   : > { %8171 = vmatprep.mubr.msk.f32.mxu1 %vm1371_vm6, %v9984_v53 }
 0x2de   : > { %8172 = vmatmul.mubr.msk.f32.gmra.mrb[4].mxu1 %vm1371_vm6, %v10124_v10 }
 0x2df   : > { %8174 = vmatprep.mubr.msk.f32.mxu1 %vm1371_vm6, %v10264_v34 }
 0x2e2   : > { %8175 = vmatmul.mubr.msk.f32.gmra.mrb[6].mxu1 %vm1371_vm6, %v4713_v42 }
 0x2e3   : > { %8181 = vmatprep.mubr.msk.f32.mxu1 %vm1371_vm6, %v9722_v58  ;;  %v4864_v58 = vld [vmem:[#allocation2 + $0xb3] sm:$0xff] }
 0x2e6   : > { %8182 = vmatmul.mubr.msk.f32.vlgmr.msra.gmra.mrb[0].mxu1 %vm1371_vm6, %v9744_v3  ;;  %v5212_v3 = vld [vmem:[%s10823_s5] sm:$0xff] }
 0x2e7   : > { %8529 = vmatpush3.bf16.msk.msra.mxu1 %vm9257_vm5, %v8524_v18  ;;  %8184 = vmatprep.mubr.msk.f32.mxu1 %vm1371_vm6, %v9766_v39  ;;  %v5213_v39 = vld [vmem:[%s10823_s5 + $0x8] sm:$0xff]  ;;  %v7161_v18 = vld [vmem:[%s10823_s5 + $0x38] sm:$0xff] }
 0x2ea   : > { %8185 = vmatmul.mubr.msk.f32.gmra.mrb[2].mxu1 %vm1371_vm6, %v9788_v55  ;;  %v8531_v55 = vpack.c.bf16 %v5213_v39, %v5212_v3  ;;  %v8537_v39 = vpack.c.bf16 %v7161_v18, %v7160_v29 }
 0x2eb   : > { %8187 = vmatprep.mubr.msk.f32.mxu1 %vm1371_vm6, %v10012_v20 }
 0x2ee   : > { %8188 = vmatmul.mubr.msk.f32.gmra.mrb[4].mxu1 %vm1371_vm6, %v10152_v14 }
 0x2ef   : > { %8190 = vmatprep.mubr.msk.f32.mxu1 %vm1371_vm6, %v10302_v27  ;;  %v7156_v27 = vld [vmem:[%s10823_s5 + $0x20] sm:$0xff] }
 0x2f2   : > { %8191 = vmatmul.mubr.msk.f32.gmra.mrb[6].mxu1 %vm1371_vm6, %v4864_v58 }
 0x2f3   : > { %8197 = vmatprep.mubr.msk.f32.mxu1 %vm1371_vm6, %v9850_v4  ;;  %v8923_v4 = vmov 0.0|0.0  }
 0x2f4   : > { %8530 = vmatprep.subr.bf16.mxu0 %v8923_v4 }
 0x2f5   : > { %8532 = vmatpush3.bf16.msra.mxu0 %v8531_v55 }
 0x2f6   : > { %8198 = vmatmul.mubr.msk.f32.vlgmr.msra.gmra.mrb[0].mxu1 %vm1371_vm6, %v9858_v37  ;;  %v8924_v37 = vmov 0.0  }
 0x2f7   : > { %8200 = vmatprep.mubr.msk.f32.mxu1 %vm1371_vm6, %v9866_v61  ;;  %8213 = vmatprep.subr.mxu0 %v8924_v37  ;;  %v5214_v61 = vld [vmem:[%s10823_s5 + $0x10] sm:$0xf] }
 0x2f8   : > { %8215 = vmatprep.mubr.msk.f32.mxu0 %vm8925_vm8, %v8924_v37 }
 0x2f9   : > { %8214 = vmatpush3.msk.msra.mxu0 %vm5219_vm7, %v5214_v61 }
 0x2fa   : > { %8201 = vmatmul.mubr.msk.f32.gmra.mrb[2].mxu1 %vm1371_vm6, %v9877_v2  ;;  %8533 = vmatprep.subr.bf16.mxu0 %v8923_v4 }
 0x2fb   : > { %8203 = vmatprep.mubr.msk.f32.mxu1 %vm1371_vm6, %v10040_v24 }
 0x2fe   : > { %8204 = vmatmul.mubr.msk.f32.gmra.mrb[4].mxu1 %vm1371_vm6, %v10180_v22 }
 0x2ff   : > { %8206 = vmatprep.mubr.msk.f32.mxu1 %vm1371_vm6, %v4259_v33 }
 0x302   : > { %8207 = vmatmul.mubr.msk.f32.gmra.mrb[6].mxu1 %vm1371_vm6, %v5015_v54 }
 0x3c9   : > { %v8199_v2 = vpop.f32.mrb[0].mxu1 }
 0x3ca   : > { %v8587_v45 = vadd.f32 %v8199_v2, %v10284_v12  ;;  %v5112_v59 = vpop.f32.mrb[1].mxu1 }
 0x3cb   : > { %v8588_v0 = vadd.f32 %v5112_v59, %v10286_v62  ;;  %v7162_v59 = vld [vmem:[%s10823_s5 + $0x40] sm:$0xf] }
 0x3cc   : > { %v5167_v16 = vadd.f32 %v8587_v45, %v7152_v6 }
 0x3cd   : > { %v5166_v53 = vadd.f32 %v8588_v0, %v7152_v6  ;;  %v8202_v20 = vpop.f32.mrb[2].mxu1 }
 0x3ce   : > { %v8589_v24 = vadd.f32 %v8202_v20, %v10292_v7  ;;  %v5122_v26 = vpop.f32.mrb[3].mxu1 }
 0x3cf   : > { %v10464_v13 = vmax.f32 %v5166_v53, %v5167_v16  ;;  %v8590_v10 = vadd.f32 %v5122_v26, %v10294_v47  ;;  %v7165_v16 = vld [vmem:[%s10823_s5 + $0x48] sm:$0xff]  ;;  %v7166_v53 = vld [vmem:[%s10823_s5 + $0x50] sm:$0xff] }
 0x3d0   : > { %v5169_v43 = vadd.f32 %v8589_v24, %v7152_v6  ;;  %v8540_v26 = vpack.c.bf16 %v7166_v53, %v7165_v16  ;;  %v7187_v16 = vld [vmem:[%s10823_s5 + $0xb8] sm:$0xf] }
 0x3d1   : > { %v5180_v14 = vsel %vm5179_vm9, %v10464_v13, -inf  ;;  %v8205_v50 = vpop.f32.mrb[4].mxu1  ;;  %v5168_v57 = vadd.f32 %v8590_v10, %v7152_v6  ;;  %v5538_v58 = vsel %vm5537_vm11, %v10464_v13, -inf }
 0x3d2   : > { %v5181_v22 = vrot.slane %v5180_v14, 4  ;;  %v5132_v15 = vpop.f32.mrb[5].mxu1  ;;  %v8591_v19 = vadd.f32 %v8205_v50, %v10300_v17  ;;  %v7155_v17 = vld [vmem:[%s10823_s5 + $0x18] sm:$0xff]  ;;  %v5539_v55 = vrot.slane %v5538_v58, 4 }
 0x3d3   : > { %v8592_v49 = vadd.f32 %v5132_v15, %v10310_v21  ;;  %v10471_v52 = vmax.f32 %v5168_v57, %v5169_v43  ;;  %v7167_v15 = vld [vmem:[%s10823_s5 + $0x58] sm:$0xf] }
 0x3d4   : > { %v5182_v31 = vmax.f32 %v5180_v14, %v5181_v22  ;;  %v5171_v44 = vadd.f32 %v8591_v19, %v7152_v6  ;;  %v5540_v45 = vmax.f32 %v5538_v58, %v5539_v55  ;;  %v7170_v19 = vld [vmem:[%s10823_s5 + $0x60] sm:$0xff] }
 0x3d5   : > { %v5170_v25 = vadd.f32 %v8592_v49, %v7152_v6  ;;  %v8208_v28 = vpop.f32.mrb[6].mxu1  ;;  %v5187_v34 = vsel %vm5179_vm9, %v10471_v52, -inf  ;;  %v5545_v24 = vsel %vm5537_vm11, %v10471_v52, -inf  ;;  %v7171_v49 = vld [vmem:[%s10823_s5 + $0x68] sm:$0xff]  ;;  %v5902_v55 = vsel %vm5894_vm12, %v10471_v52, -inf }
 0x3d6   : > { %v5183_v30 = vrot.slane %v5182_v31, 2  ;;  %v5142_v46 = vpop.f32.mrb[7].mxu1  ;;  %v5188_v23 = vrot.slane %v5187_v34, 4  ;;  %v8593_v12 = vadd.f32 %v8208_v28, %v10316_v48  ;;  %v8534_v48 = vpack.c.bf16 %v7156_v27, %v7155_v17 }
 0x3d7   : > { %v10475_v5 = vmax.f32 %v5170_v25, %v5171_v44  ;;  %v8594_v62 = vadd.f32 %v5142_v46, %v10318_v60  ;;  %v5541_v10 = vrot.slane %v5540_v45, 2  ;;  %v5546_v14 = vrot.slane %v5545_v24, 4 }
 0x3d8   : > { %v5184_v9 = vmax.f32 %v5182_v31, %v5183_v30  ;;  %v5189_v47 = vmax.f32 %v5187_v34, %v5188_v23  ;;  %v5173_v33 = vadd.f32 %v8593_v12, %v7152_v6  ;;  %v8543_v25 = vpack.c.bf16 %v7171_v49, %v7170_v19  ;;  %v7172_v23 = vld [vmem:[%s10823_s5 + $0x70] sm:$0xf] }
 0x3d9   : > { %v5194_v8 = vsel %vm5179_vm9, %v10475_v5, -inf  ;;  %v5172_v60 = vadd.f32 %v8594_v62, %v7152_v6  ;;  %v5547_v22 = vmax.f32 %v5545_v24, %v5546_v14  ;;  %v5542_v31 = vmax.f32 %v5540_v45, %v5541_v10  ;;  %v7175_v62 = vld [vmem:[%s10823_s5 + $0x78] sm:$0xff]  ;;  %v7191_v24 = vld [vmem:[%s10823_s5 + $0xc8] sm:$0xff]  ;;  %v7192_v19 = vld [vmem:[%s10823_s5 + $0xd0] sm:$0xf] }
 0x3da   : > { %v5185_v7 = vrot.slane %v5184_v9, 1  ;;  %v5190_v21 = vrot.slane %v5189_v47, 2  ;;  %v5195_v51 = vrot.slane %v5194_v8, 4  ;;  %v5552_v44 = vsel %vm5537_vm11, %v10475_v5, -inf }
 0x3db   : > { %v10487_v41 = vmax.f32 %v5172_v60, %v5173_v33  ;;  %v5548_v28 = vrot.slane %v5547_v22, 2  ;;  %v5553_v30 = vrot.slane %v5552_v44, 4  ;;  %v5543_v34 = vrot.slane %v5542_v31, 1  ;;  %v7177_v33 = vld [vmem:[%s10823_s5 + $0x88] sm:$0xf] }
 0x3dc   : > { %v5186_v32 = vmax.f32 %v5184_v9, %v5185_v7  ;;  %v5196_v40 = vmax.f32 %v5194_v8, %v5195_v51  ;;  %v5191_v63 = vmax.f32 %v5189_v47, %v5190_v21  ;;  %v7176_v7 = vld [vmem:[%s10823_s5 + $0x80] sm:$0xff]  ;;  %v5909_v10 = vsel %vm5894_vm12, %v10475_v5, -inf }
 0x3dd   : > { %v5201_v38 = vsel %vm5179_vm9, %v10487_v41, -inf  ;;  %v5554_v9 = vmax.f32 %v5552_v44, %v5553_v30  ;;  %v5544_v12 = vmax.f32 %v5542_v31, %v5543_v34  ;;  %v5549_v47 = vmax.f32 %v5547_v22, %v5548_v28  ;;  %v7195_v31 = vld [vmem:[%s10823_s5 + $0xd8] sm:$0xff]  ;;  %v7196_v44 = vld [vmem:[%s10823_s5 + $0xe0] sm:$0xff] }
 0x3de   : > { %v5208_v35 = vmax.f32 %v5186_v32, 0.0  ;;  %v5197_v11 = vrot.slane %v5196_v40, 2  ;;  %v5202_v56 = vrot.slane %v5201_v38, 4  ;;  %v5192_v36 = vrot.slane %v5191_v63, 1 }
 0x3df   : > { %v5559_v17 = vsel %vm5537_vm11, %v10487_v41, -inf  ;;  %v8546_v27 = vpack.c.bf16 %v7176_v7, %v7175_v62  ;;  %v5555_v8 = vrot.slane %v5554_v9, 2  ;;  %v5566_v21 = vmax.f32 %v5544_v12, 0.0  ;;  %v7197_v62 = vld [vmem:[%s10823_s5 + $0xe8] sm:$0xf] }
 0x3e0   : > { %8216 = vmatmul.mubr.msk.f32.vlgmr.msra.gmra.mrb[104].mxu0 %vm5215_vm10, %v5208_v35  ;;  %v5198_v42 = vmax.f32 %v5196_v40, %v5197_v11  ;;  %v5203_v54 = vmax.f32 %v5201_v38, %v5202_v56  ;;  %v5193_v3 = vmax.f32 %v5191_v63, %v5192_v36  ;;  %v5560_v32 = vrot.slane %v5559_v17, 4  ;;  %v7180_v35 = vld [vmem:[%s10823_s5 + $0x90] sm:$0xff]  ;;  %v7181_v40 = vld [vmem:[%s10823_s5 + $0x98] sm:$0xff] }
 0x3e1   : > { %8535 = vmatpush3.bf16.msra.mxu0 %v8534_v48  ;;  %8224 = vmatprep.mubr.msk.f32.mxu0 %vm8925_vm8, %v8924_v37  ;;  %v5550_v51 = vrot.slane %v5549_v47, 1  ;;  %v5556_v63 = vmax.f32 %v5554_v9, %v5555_v8  ;;  %v5895_v11 = vsel %vm5894_vm12, %v10464_v13, -inf  ;;  %v8549_v38 = vpack.c.bf16 %v7181_v40, %v7180_v35  ;;  %v7205_v40 = vld [vmem:[%s10823_s5 + $0x108] sm:$0xff] }
 0x3e2   : > { %8222 = vmatprep.subr.mxu0 %v8924_v37  ;;  %v5204_v61 = vrot.slane %v5203_v54, 2  ;;  %v5209_v2 = vmax.f32 %v5193_v3, 0.0  ;;  %v5199_v6 = vrot.slane %v5198_v42, 1  ;;  %v5561_v48 = vmax.f32 %v5559_v17, %v5560_v32  ;;  %v7186_v3 = vld [vmem:[%s10823_s5 + $0xb0] sm:$0xff]  ;;  %v7201_v17 = vld [vmem:[%s10823_s5 + $0xf8] sm:$0xff] }
 0x3e3   : > { %v5551_v60 = vmax.f32 %v5549_v47, %v5550_v51  ;;  %v5557_v29 = vrot.slane %v5556_v63, 1  ;;  %v5916_v28 = vsel %vm5894_vm12, %v10487_v41, -inf  ;;  %v8558_v30 = vpack.c.bf16 %v7196_v44, %v7195_v31  ;;  %v7200_v47 = vld [vmem:[%s10823_s5 + $0xf0] sm:$0xff] }
 0x3e4   : > { %v5200_v0 = vmax.f32 %v5198_v42, %v5199_v6  ;;  %v5205_v20 = vmax.f32 %v5203_v54, %v5204_v61  ;;  %v5562_v56 = vrot.slane %v5561_v48, 2  ;;  %v7182_v42 = vld [vmem:[%s10823_s5 + $0xa0] sm:$0xf]  ;;  %v7185_v54 = vld [vmem:[%s10823_s5 + $0xa8] sm:$0xff]  ;;  %v5903_v6 = vrot.slane %v5902_v55, 4 }
 0x3e5   : > { %8223 = vmatpush3.msk.msra.mxu0 %vm5219_vm7, %v7157_v1  ;;  %v5896_v1 = vrot.slane %v5895_v11, 4  ;;  %v5567_v36 = vmax.f32 %v5551_v60, 0.0  ;;  %v5558_v58 = vmax.f32 %v5556_v63, %v5557_v29  ;;  %v8552_v61 = vpack.c.bf16 %v7186_v3, %v7185_v54  ;;  %v7206_v63 = vld [vmem:[%s10823_s5 + $0x110] sm:$0xff]  ;;  %v7210_v54 = vld [vmem:[%s10823_s5 + $0x120] sm:$0xff]  ;;  %v7211_v3 = vld [vmem:[%s10823_s5 + $0x128] sm:$0xff] }
 0x3e6   : > { %8536 = vmatprep.subr.bf16.mxu0 %v8923_v4  ;;  %v5210_v43 = vmax.f32 %v5200_v0, 0.0  ;;  %v5206_v50 = vrot.slane %v5205_v20, 1  ;;  %v5904_v0 = vmax.f32 %v5902_v55, %v5903_v6  ;;  %v5917_v34 = vrot.slane %v5916_v28, 4 }
 0x3e7   : > { %v5897_v18 = vmax.f32 %v5895_v11, %v5896_v1  ;;  %v5568_v45 = vmax.f32 %v5558_v58, 0.0  ;;  %v6252_v8 = vsel %vm6251_vm13, %v10464_v13, -inf  ;;  %v8561_v32 = vpack.c.bf16 %v7201_v17, %v7200_v47  ;;  %v7202_v13 = vld [vmem:[%s10823_s5 + $0x100] sm:$0xf]  ;;  %v7227_v17 = vld [vmem:[%s10823_s5 + $0x178] sm:$0xf] }
 0x3e8   : > { %8225 = vmatmul.mubr.msk.f32.vlgmr.msra.gmra.mrb[104].mxu0 %vm5215_vm10, %v5209_v2  ;;  %v5207_v57 = vmax.f32 %v5205_v20, %v5206_v50  ;;  %v7190_v20 = vld [vmem:[%s10823_s5 + $0xc0] sm:$0xff]  ;;  %v5910_v50 = vrot.slane %v5909_v10, 4  ;;  %v5918_v12 = vmax.f32 %v5916_v28, %v5917_v34  ;;  %v8564_v1 = vpack.c.bf16 %v7206_v63, %v7205_v40  ;;  %v6615_v63 = vld [vmem:[%s10825_s7 + $0x30] sm:$0x3] }
 0x3e9   : > { %8538 = vmatpush3.bf16.msra.mxu0 %v8537_v39  ;;  %8233 = vmatprep.mubr.msk.f32.mxu0 %vm8925_vm8, %v8924_v37  ;;  %v5563_v39 = vmax.f32 %v5561_v48, %v5562_v56  ;;  %v5898_v2 = vrot.slane %v5897_v18, 2  ;;  %v8555_v14 = vpack.c.bf16 %v7191_v24, %v7190_v20  ;;  %v6266_v55 = vsel %vm6251_vm13, %v10475_v5, -inf  ;;  %v7212_v5 = vld [vmem:[%s10823_s5 + $0x130] sm:$0xf]  ;;  %v7216_v20 = vld [vmem:[%s10823_s5 + $0x140] sm:$0xff] }
 0x3ea   : > { %8231 = vmatprep.subr.mxu0 %v8924_v37  ;;  %v5211_v46 = vmax.f32 %v5207_v57, 0.0  ;;  %v5911_v57 = vmax.f32 %v5909_v10, %v5910_v50  ;;  %v5919_v51 = vrot.slane %v5918_v12, 2  ;;  %v6267_v6 = vrot.slane %v6266_v55, 4 }
 0x3ec   : > { %v5920_v11 = vmax.f32 %v5918_v12, %v5919_v51 }
 0x3ed   : > { %8232 = vmatpush3.msk.msra.mxu0 %vm5219_vm7, %v7162_v59  ;;  %v5564_v59 = vrot.slane %v5563_v39, 1 }
 0x3ee   : > { %8539 = vmatprep.subr.bf16.mxu0 %v8923_v4 }
 0x3ef   : > { %v5565_v53 = vmax.f32 %v5563_v39, %v5564_v59 }
 0x3f0   : > { %8234 = vmatmul.mubr.msk.f32.vlgmr.msra.gmra.mrb[104].mxu0 %vm5215_vm10, %v5210_v43  ;;  %v5905_v43 = vrot.slane %v5904_v0, 2 }
 0x3f1   : > { %8541 = vmatpush3.bf16.msra.mxu0 %v8540_v26  ;;  %8242 = vmatprep.mubr.msk.f32.mxu0 %vm8925_vm8, %v8924_v37  ;;  %v5899_v26 = vmax.f32 %v5897_v18, %v5898_v2  ;;  %v5569_v22 = vmax.f32 %v5565_v53, 0.0  ;;  %v5921_v18 = vrot.slane %v5920_v11, 1  ;;  %v7215_v53 = vld [vmem:[%s10823_s5 + $0x138] sm:$0xff] }
 0x3f2   : > { %8240 = vmatprep.subr.mxu0 %v8924_v37  ;;  %v8570_v10 = vpack.c.bf16 %v7216_v20, %v7215_v53 }
 0x3f3   : > { %v5922_v58 = vmax.f32 %v5920_v11, %v5921_v18 }
 0x3f5   : > { %8241 = vmatpush3.msk.msra.mxu0 %vm5219_vm7, %v7167_v15  ;;  %v5900_v15 = vrot.slane %v5899_v26, 1 }
 0x3f6   : > { %8542 = vmatprep.subr.bf16.mxu0 %v8923_v4 }
 0x3f7   : > { %v5901_v49 = vmax.f32 %v5899_v26, %v5900_v15  ;;  %v6273_v26 = vsel %vm6251_vm13, %v10487_v41, -inf  ;;  %v7217_v41 = vld [vmem:[%s10823_s5 + $0x148] sm:$0xf] }
 0x3f8   : > { %8243 = vmatmul.mubr.msk.f32.vlgmr.msra.gmra.mrb[104].mxu0 %vm5215_vm10, %v5211_v46  ;;  %v5912_v46 = vrot.slane %v5911_v57, 2 }
 0x3f9   : > { %8544 = vmatpush3.bf16.msra.mxu0 %v8543_v25  ;;  %8251 = vmatprep.mubr.msk.f32.mxu0 %vm8925_vm8, %v8924_v37  ;;  %v5906_v25 = vmax.f32 %v5904_v0, %v5905_v43  ;;  %v5923_v9 = vmax.f32 %v5901_v49, 0.0  ;;  %v6268_v0 = vmax.f32 %v6266_v55, %v6267_v6  ;;  %v6274_v43 = vrot.slane %v6273_v26, 4  ;;  %v7221_v49 = vld [vmem:[%s10823_s5 + $0x158] sm:$0xff] }
 0x3fa   : > { %8249 = vmatprep.subr.mxu0 %v8924_v37 }
 0x3fb   : > { %v6275_v15 = vmax.f32 %v6273_v26, %v6274_v43 }
 0x3fd   : > { %8250 = vmatpush3.msk.msra.mxu0 %vm5219_vm7, %v7172_v23  ;;  %v5907_v23 = vrot.slane %v5906_v25, 1 }
 0x3fe   : > { %8545 = vmatprep.subr.bf16.mxu0 %v8923_v4 }
 0x3ff   : > { %v5908_v7 = vmax.f32 %v5906_v25, %v5907_v23  ;;  %v6276_v25 = vrot.slane %v6275_v15, 2  ;;  %v7226_v23 = vld [vmem:[%s10823_s5 + $0x170] sm:$0xff] }
 0x400   : > { %8252 = vmatmul.mubr.msk.f32.vlgmr.msra.gmra.mrb[104].mxu0 %vm5215_vm10, %v5566_v21  ;;  %v6253_v21 = vrot.slane %v6252_v8, 4 }
 0x401   : > { %8547 = vmatpush3.bf16.msra.mxu0 %v8546_v27  ;;  %8260 = vmatprep.mubr.msk.f32.mxu0 %vm8925_vm8, %v8924_v37  ;;  %v5913_v27 = vmax.f32 %v5911_v57, %v5912_v46  ;;  %v5924_v48 = vmax.f32 %v5908_v7, 0.0  ;;  %v7222_v46 = vld [vmem:[%s10823_s5 + $0x160] sm:$0xf]  ;;  %v6277_v12 = vmax.f32 %v6275_v15, %v6276_v25 }
 0x402   : > { %8258 = vmatprep.subr.mxu0 %v8924_v37  ;;  %v6254_v60 = vmax.f32 %v6252_v8, %v6253_v21  ;;  %v6609_v8 = vld [vmem:[%s10825_s7] sm:$0xff] }
 0x403   : > { %v6278_v47 = vrot.slane %v6277_v12, 1 }
 0x404   : > { %v6255_v56 = vrot.slane %v6254_v60, 2 }
 0x405   : > { %8259 = vmatpush3.msk.msra.mxu0 %vm5219_vm7, %v7177_v33  ;;  %v5914_v33 = vrot.slane %v5913_v27, 1 }
 0x406   : > { %8548 = vmatprep.subr.bf16.mxu0 %v8923_v4  ;;  %v6256_v39 = vmax.f32 %v6254_v60, %v6255_v56 }
 0x407   : > { %v5915_v35 = vmax.f32 %v5913_v27, %v5914_v33  ;;  %v6279_v27 = vmax.f32 %v6277_v12, %v6278_v47  ;;  %v6612_v33 = vld [vmem:[%s10825_s7 + $0x18] sm:$0xff] }
 0x408   : > { %8261 = vmatmul.mubr.msk.f32.vlgmr.msra.gmra.mrb[104].mxu0 %vm5215_vm10, %v5567_v36  ;;  %v6257_v59 = vrot.slane %v6256_v39, 1 }
 0x409   : > { %8550 = vmatpush3.bf16.msra.mxu0 %v8549_v38  ;;  %8269 = vmatprep.mubr.msk.f32.mxu0 %vm8925_vm8, %v8924_v37  ;;  %v6259_v38 = vsel %vm6251_vm13, %v10471_v52, -inf  ;;  %v5925_v29 = vmax.f32 %v5915_v35, 0.0  ;;  %v7207_v52 = vld [vmem:[%s10823_s5 + $0x118] sm:$0xf]  ;;  %v6283_v51 = vmax.f32 %v6279_v27, 0.0  ;;  %v6614_v35 = vld [vmem:[%s10825_s7 + $0x28] sm:$0xff] }
 0x40a   : > { %8267 = vmatprep.subr.mxu0 %v8924_v37  ;;  %v6260_v36 = vrot.slane %v6259_v38, 4 }
 0x40d   : > { %8268 = vmatpush3.msk.msra.mxu0 %vm5219_vm7, %v7182_v42  ;;  %v6261_v42 = vmax.f32 %v6259_v38, %v6260_v36 }
 0x40e   : > { %8551 = vmatprep.subr.bf16.mxu0 %v8923_v4 }
 0x40f   : > { %v6262_v2 = vrot.slane %v6261_v42, 2 }
 0x410   : > { %8270 = vmatmul.mubr.msk.f32.vlgmr.msra.gmra.mrb[104].mxu0 %vm5215_vm10, %v5568_v45  ;;  %v5926_v45 = vmax.f32 %v5922_v58, 0.0 }
 0x411   : > { %8553 = vmatpush3.bf16.msra.mxu0 %v8552_v61  ;;  %8278 = vmatprep.mubr.msk.f32.mxu0 %vm8925_vm8, %v8924_v37  ;;  %v8567_v61 = vpack.c.bf16 %v7211_v3, %v7210_v54  ;;  %v6263_v24 = vmax.f32 %v6261_v42, %v6262_v2 }
 0x412   : > { %8276 = vmatprep.subr.mxu0 %v8924_v37 }
 0x415   : > { %8277 = vmatpush3.msk.msra.mxu0 %vm5219_vm7, %v7187_v16  ;;  %v6258_v16 = vmax.f32 %v6256_v39, %v6257_v59 }
 0x416   : > { %8554 = vmatprep.subr.bf16.mxu0 %v8923_v4 }
 0x417   : > { %v6280_v50 = vmax.f32 %v6258_v16, 0.0 }
 0x418   : > { %8279 = vmatmul.mubr.msk.f32.vlgmr.msra.gmra.mrb[104].mxu0 %vm5215_vm10, %v5569_v22  ;;  %v6264_v22 = vrot.slane %v6263_v24, 1 }
 0x419   : > { %8556 = vmatpush3.bf16.msra.mxu0 %v8555_v14  ;;  %8287 = vmatprep.mubr.msk.f32.mxu0 %vm8925_vm8, %v8924_v37  ;;  %v6269_v14 = vrot.slane %v6268_v0, 2 }
 0x41a   : > { %8285 = vmatprep.subr.mxu0 %v8924_v37  ;;  %v6265_v57 = vmax.f32 %v6263_v24, %v6264_v22 }
 0x41b   : > { %v6270_v31 = vmax.f32 %v6268_v0, %v6269_v14 }
 0x41c   : > { %v6281_v28 = vmax.f32 %v6265_v57, 0.0 }
 0x41d   : > { %8286 = vmatpush3.msk.msra.mxu0 %vm5219_vm7, %v7192_v19  ;;  %v7220_v19 = vld [vmem:[%s10823_s5 + $0x150] sm:$0xff] }
 0x41e   : > { %8557 = vmatprep.subr.bf16.mxu0 %v8923_v4  ;;  %v8573_v44 = vpack.c.bf16 %v7221_v49, %v7220_v19 }
 0x420   : > { %8288 = vmatmul.mubr.msk.f32.vlgmr.msra.gmra.mrb[104].mxu0 %vm5215_vm10, %v5923_v9  ;;  %v7225_v9 = vld [vmem:[%s10823_s5 + $0x168] sm:$0xff] }
 0x421   : > { %8559 = vmatpush3.bf16.msra.mxu0 %v8558_v30  ;;  %8296 = vmatprep.mubr.msk.f32.mxu0 %vm8925_vm8, %v8924_v37  ;;  %v6271_v30 = vrot.slane %v6270_v31, 1 }
 0x422   : > { %8294 = vmatprep.subr.mxu0 %v8924_v37 }
 0x423   : > { %v6272_v34 = vmax.f32 %v6270_v31, %v6271_v30 }
 0x425   : > { %8295 = vmatpush3.msk.msra.mxu0 %vm5219_vm7, %v7197_v62  ;;  %v8576_v62 = vpack.c.bf16 %v7226_v23, %v7225_v9  ;;  %v6282_v7 = vmax.f32 %v6272_v34, 0.0 }
 0x426   : > { %8560 = vmatprep.subr.bf16.mxu0 %v8923_v4 }
 0x428   : > { %8297 = vmatmul.mubr.msk.f32.vlgmr.msra.gmra.mrb[104].mxu0 %vm5215_vm10, %v5924_v48  ;;  %v6611_v48 = vld [vmem:[%s10825_s7 + $0x10] sm:$0xff] }
 0x429   : > { %8562 = vmatpush3.bf16.msra.mxu0 %v8561_v32  ;;  %8305 = vmatprep.mubr.msk.f32.mxu0 %vm8925_vm8, %v8924_v37  ;;  %v6610_v32 = vld [vmem:[%s10825_s7 + $0x8] sm:$0xff]  ;;  %v8582_v60 = vpack.c.bf16 %v6612_v33, %v6611_v48 }
 0x42a   : > { %8303 = vmatprep.subr.mxu0 %v8924_v37  ;;  %v8579_v21 = vpack.c.bf16 %v6610_v32, %v6609_v8 }
 0x42d   : > { %8304 = vmatpush3.msk.msra.mxu0 %vm5219_vm7, %v7202_v13  ;;  %v6613_v13 = vld [vmem:[%s10825_s7 + $0x20] sm:$0xff] }
 0x42e   : > { %8563 = vmatprep.subr.bf16.mxu0 %v8923_v4  ;;  %v8585_v40 = vpack.c.bf16 %v6614_v35, %v6613_v13 }
 0x430   : > { %8306 = vmatmul.mubr.msk.f32.vlgmr.msra.gmra.mrb[104].mxu0 %vm5215_vm10, %v5925_v29 }
 0x431   : > { %8565 = vmatpush3.bf16.msra.mxu0 %v8564_v1  ;;  %8314 = vmatprep.mubr.msk.f32.mxu0 %vm8925_vm8, %v8924_v37 }
 0x432   : > { %8312 = vmatprep.subr.mxu0 %v8924_v37 }
 0x435   : > { %8313 = vmatpush3.msk.msra.mxu0 %vm5219_vm7, %v7207_v52 }
 0x436   : > { %8566 = vmatprep.subr.bf16.mxu0 %v8923_v4 }
 0x438   : > { %8315 = vmatmul.mubr.msk.f32.vlgmr.msra.gmra.mrb[104].mxu0 %vm5215_vm10, %v5926_v45 }
 0x439   : > { %8568 = vmatpush3.bf16.msra.mxu0 %v8567_v61  ;;  %8323 = vmatprep.mubr.msk.f32.mxu0 %vm8925_vm8, %v8924_v37 }
 0x43a   : > { %8321 = vmatprep.subr.mxu0 %v8924_v37 }
 0x43d   : > { %8322 = vmatpush3.msk.msra.mxu0 %vm5219_vm7, %v7212_v5 }
 0x43e   : > { %8569 = vmatprep.subr.bf16.mxu0 %v8923_v4 }
 0x440   : > { %8324 = vmatmul.mubr.msk.f32.vlgmr.msra.gmra.mrb[104].mxu0 %vm5215_vm10, %v6280_v50 }
 0x441   : > { %8571 = vmatpush3.bf16.msra.mxu0 %v8570_v10  ;;  %8332 = vmatprep.mubr.msk.f32.mxu0 %vm8925_vm8, %v8924_v37 }
 0x442   : > { %8330 = vmatprep.subr.mxu0 %v8924_v37 }
 0x445   : > { %8331 = vmatpush3.msk.msra.mxu0 %vm5219_vm7, %v7217_v41 }
 0x446   : > { %8572 = vmatprep.subr.bf16.mxu0 %v8923_v4 }
 0x448   : > { %8333 = vmatmul.mubr.msk.f32.vlgmr.msra.gmra.mrb[104].mxu0 %vm5215_vm10, %v6281_v28 }
 0x449   : > { %8574 = vmatpush3.bf16.msra.mxu0 %v8573_v44  ;;  %8341 = vmatprep.mubr.msk.f32.mxu0 %vm8925_vm8, %v8924_v37 }
 0x44a   : > { %8339 = vmatprep.subr.mxu0 %v8924_v37 }
 0x44d   : > { %8340 = vmatpush3.msk.msra.mxu0 %vm5219_vm7, %v7222_v46 }
 0x44e   : > { %8575 = vmatprep.subr.bf16.mxu0 %v8923_v4 }
 0x450   : > { %8342 = vmatmul.mubr.msk.f32.vlgmr.msra.gmra.mrb[104].mxu0 %vm5215_vm10, %v6282_v7 }
 0x451   : > { %8577 = vmatpush3.bf16.msra.mxu0 %v8576_v62  ;;  %8350 = vmatprep.mubr.msk.f32.mxu0 %vm8925_vm8, %v8924_v37 }
 0x452   : > { %8348 = vmatprep.subr.mxu0 %v8924_v37 }
 0x455   : > { %8349 = vmatpush3.msk.msra.mxu0 %vm5219_vm7, %v7227_v17 }
 0x456   : > { %8578 = vmatprep.subr.bf16.mxu0 %v8923_v4 }
 0x458   : > { %8351 = vmatmul.mubr.msk.f32.vlgmr.msra.gmra.mrb[104].mxu0 %vm5215_vm10, %v6283_v51 }
 0x459   : > { %8580 = vmatpush3.bf16.msra.mxu0 %v8579_v21  ;;  %8367 = vmatprep.mubr.msk.f32.mxu0 %vm8925_vm8, %v8924_v37 }
 0x45a   : > { %8581 = vmatprep.subr.bf16.mxu0 %v8923_v4 }
 0x45d   : > { %8583 = vmatpush3.bf16.msra.mxu0 %v8582_v60 }
 0x45e   : > { %8584 = vmatprep.subr.bf16.mxu0 %v8923_v4  ;;  %v5178_v4 = vld [vmem:[%s10824_s6] sm:$0x1] }
 0x461   : > { %8586 = vmatpush3.bf16.msra.mxu0 %v8585_v40 }
 0x462   : > { %8365 = vmatprep.subr.mxu0 %v8924_v37  ;;  %v6616_v37 = vld [vmem:[%s10826_s8] sm:$0x1] }
 0x465   : > { %8366 = vmatpush3.msk.msra.mxu0 %vm1441_vm4, %v6615_v63 }
 0x52b   : > { %v6603_v11 = vpop.f32.mrb[104].mxu0 }
 0x52c   : > { %v8595_v38 = vadd.f32 %v6603_v11, %v5178_v4  ;;  %v8352_v1 = vpop.f32.mrb[105].mxu0 }
 0x52e   : > { %v6608_v56 = vmax.f32 %v8595_v38, 0.0 }
 0x530   : > { %8368 = vmatmul.mubr.msk.f32.vlgmr.msra.gmra.mrb[106].mxu0 %vm6617_vm14, %v6608_v56 }
 0x603   : > { %v6690_v36 = vpop.f32.mrb[106].mxu0 }
 0x604   : > { %v6691_v29 = vadd.f32 %v6690_v36, %v6616_v37  ;;  %v8369_v18 = vpop.f32.mrb[107].mxu0 }
 0x606   : > { %v6695_v42 = vsel %vm6694_vm15, %v6691_v29, -inf }
 0x607   : > { %6696 = vmax.xlane.f32.xlu0 %v6695_v42 }
 0x694   : > { %v6697_v52 = vpop.xlane.xlu0 %6696 }
 0x695   : > { %v6698_v58 = vsub.f32 %v6691_v29, %v6697_v52 }
 0x697   : > { %v6699_v54 = vmul.f32 1.442695, %v6698_v58 }
 0x699   : > { %8854 = vpow2.f32 %v6699_v54 }
 0x6a3   : > { %v8855_v3 = vpop.eup %8854 }
 0x6a4   : > { %v6701_v39 = vsel %vm6694_vm15, %v8855_v3, 0.0 }
 0x6a5   : > { %6702 = vadd.xlane.f32.xlu0 %v6701_v39 }
 0x732   : > { %v6703_v55 = vpop.xlane.xlu0 %6702 }
 0x733   : > { %8856 = vlog2.f32 %v6703_v55 }
 0x73d   : > { %v8857_v61 = vpop.eup %8856 }
 0x73e   : > { %v6705_v2 = vmul.f32 0.6931472, %v8857_v61 }
 0x740   : > { %v6706_v6 = vsub.f32 %v6698_v58, %v6705_v2 }
 0x742   : > { %6707 = vst.msk [vmem:[%s324_s26] sm:$0x1] %vm6694_vm15, %v6706_v6 }
 0x743   : > { %8871 = shalt.err (!%p8868_p3)
}
 0x744   : > { %s8872_s23 = scalar_lea.hbm %s10775_s14, 16  ;;  %s8876_s26 = scalar_lea.hbm %s10827_s9, 32 }
 0x745   : > { %p8873_p4 = scmp.ne.s32.totalorder %s10775_s14, %s8872_s23  ;;  %p8877_p9 = scmp.lt.u32.totalorder %s10775_s14, %s10827_s9 }
 0x746   : > { %p8878_p10 = scmp.lt.u32.totalorder %s8876_s26, %s8872_s23  ;;  %p8880_p12 = scmp.lt.u32.totalorder %s8872_s23, %s10775_s14 }
 0x747   : > { %p8874_p7 = pnand %p8873_p4, %p9015_p5 }
 0x748   : > { %p8879_p11 = por %p8878_p10, %p8877_p9 }
 0x749   : > { %p8875_p8 = pneg %p8874_p7 }
 0x74a   : > { %p8881_p13 = por %p8880_p12, %p8879_p11 }
 0x74c   : > { %p8882_p0 = pnand %p8881_p13, %p8875_p8 }
 0x74e   : > { %8885 = shalt.err (!%p8882_p0)
}
 0x74f   : > { %8811 = dma.vmem_to_hbm [thread:$0]  (%p9015_p5), %s10777_s27, 16, %s10775_s14, %s6709_s16  }
 0x750 PF: > { %p8817_p1 = scmp.ge.s32.totalorder %s8920_s12, 2  ;;  %s6733_s17 = sand.u32 1, %s8908_s30  }
 0x751   : > { %s6734_s13 = scalar_lea.sflag [#allocation4], %s6733_s17 }
 0x752   : > { %p8814_p2 = pnand %p8817_p1, %p9019_p6 }
 0x754   : > { %8903 = dma.done.wait (!%p8814_p2), %s6734_s13, 16  }
 0x755   : > { %8905 = vsyncadd (!%p8814_p2), %s6734_s13, 4294967280  ;;  %p19_p3 = scmp.ge.s32.totalorder %s9002_s15, 4   ;;  %s10927_s30 = smov %s8912_s10 }
 0x756   : > { %s10928_s10 = smov %s8916_s11  ;;  %s10929_s11 = smov %s9013_s18 }
 0x757   : > { %s10930_s12 = smov %s9002_s15  ;;  %21 = sbr.rel (!%p19_p3) target bundleno = 3 (0x3), region = 134 }
 0x75e   :  { %6738 = vsyncpa [#allocation4], 1 }
 0x75f   :  { %6740 = vsyncpa [#allocation4 + $0x1], 1 }

</bundles_post_ra>
